<compile_context>
chip_gen: v7x
topology: tpu7x:2x2x1
jax: 0.10.0
libtpu: 0.0.40
codegen_flags: <defaults>
</compile_context>

<pallas_src>
import functools

import jax
import jax.numpy as jnp
from jax.experimental import pallas as pl
from jax.experimental.pallas import tpu as pltpu


PARAM_ORDER = ['w_in', 'b_in', 'w_sq', 'b_sq', 'w_sk', 'b_sk',
               'w_tq', 'b_tq', 'w_tk', 'b_tk', 'w_tv', 'b_tv', 'w_to', 'b_to',
               'w_g1', 'b_g1', 'w_g2', 'b_g2', 'w_out', 'b_out']


def astgcn_kernel(x_ref,
                  w_in, b_in, w_sq, b_sq, w_sk, b_sk,
                  w_tq, b_tq, w_tk, b_tk, w_tv, b_tv, w_to, b_to,
                  w_g1, b_g1, w_g2, b_g2, w_out, b_out,
                  o_ref, *, num_heads):
    """One batch tile: full ASTGCN forward. Blocks: x (Bt,T,N,F), out (Bt,N,P*F)."""
    f32 = jnp.float32
    Bt, T, N, F = x_ref.shape
    H = w_in.shape[1]
    dh = H // num_heads

    def proj(a2d, w_ref, b_ref):
        # Cast activations to the weight dtype at the MXU boundary (bf16-friendly),
        # accumulate in f32, add bias in f32.
        w = w_ref[...]
        return (jnp.dot(a2d.astype(w.dtype), w, preferred_element_type=f32)
                + b_ref[...].astype(f32))

    # ---- input_fc : one big (Bt*T*N, F) @ (F, H) matmul ----
    x2 = x_ref[...].astype(f32).reshape(Bt * T * N, F)
    h = proj(x2, w_in, b_in)                                    # (Bt*T*N, H)

    # ---- spatial attention over nodes, batched over (b, t) ----
    sq = proj(h, w_sq, b_sq).reshape(Bt * T, N, H)
    sk = proj(h, w_sk, b_sk).reshape(Bt * T, N, H)
    h3 = h.reshape(Bt * T, N, H)
    s = jnp.einsum('gnk,gmk->gnm', sq, sk,
                   preferred_element_type=f32) * (1.0 / (H ** 0.5))
    s = s - jnp.max(s, axis=-1, keepdims=True)
    e = jnp.exp(s)
    attn = e * pl.reciprocal(jnp.sum(e, axis=-1, keepdims=True), approx=True)
    xs = jnp.einsum('gnm,gmh->gnh', attn, h3,
                    preferred_element_type=f32)                 # (Bt*T, N, H)

    # ---- temporal MHA: only the last query position is consumed downstream ----
    xs4 = xs.reshape(Bt, T, N, H)
    q_in = xs4[:, T - 1].reshape(Bt * N, H)                     # queries @ t = T-1
    xs2 = xs.reshape(Bt * T * N, H)
    q = proj(q_in, w_tq, b_tq) * (1.0 / (dh ** 0.5))            # scale folded into q
    k = proj(xs2, w_tk, b_tk).reshape(Bt, T, N, H)
    v = proj(xs2, w_tv, b_tv).reshape(Bt, T, N, H)

    # Head-segment masks: mask[d, g] = 1 iff feature d belongs to head g
    # (contiguous chunks, matching nn.MultiheadAttention's head split).
    d_ids = jax.lax.broadcasted_iota(jnp.int32, (H, num_heads), 0)
    g_ids = jax.lax.broadcasted_iota(jnp.int32, (H, num_heads), 1)
    head_mask = ((d_ids >= g_ids * dh) & (d_ids < (g_ids + 1) * dh)).astype(f32)
    g_ids_t = jax.lax.broadcasted_iota(jnp.int32, (num_heads, H), 0)
    d_ids_t = jax.lax.broadcasted_iota(jnp.int32, (num_heads, H), 1)
    head_mask_t = ((d_ids_t >= g_ids_t * dh)
                   & (d_ids_t < (g_ids_t + 1) * dh)).astype(f32)

    # Per-head scores for the single query: s[b,t,n,g] = sum_{d in head g} q*k.
    prod = (q.reshape(Bt, 1, N, H) * k).reshape(Bt * T * N, H)
    s_h = jnp.dot(prod, head_mask,
                  preferred_element_type=f32).reshape(Bt, T, N, num_heads)
    s_h = s_h - jnp.max(s_h, axis=1, keepdims=True)
    e_h = jnp.exp(s_h)
    a_h = e_h * pl.reciprocal(jnp.sum(e_h, axis=1, keepdims=True), approx=True)
    # Broadcast per-head weights back over each head's feature lanes, then weight V.
    a_full = jnp.dot(a_h.reshape(Bt * T * N, num_heads), head_mask_t,
                     preferred_element_type=f32).reshape(Bt, T, N, H)
    ctx = jnp.sum(a_full * v, axis=1).reshape(Bt * N, H)        # (Bt*N, H)
    to = proj(ctx, w_to, b_to)                                  # MHA out_proj

    # ---- gc1 / gc2 / output_fc: pointwise in (t, n), so last-step-only is exact ----
    g1 = jnp.maximum(proj(to, w_g1, b_g1), 0.0)
    g2 = jnp.maximum(proj(g1, w_g2, b_g2), 0.0)
    out = proj(g2, w_out, b_out)                                # (Bt*N, PF)

    o_ref[...] = out.reshape(Bt, N, o_ref.shape[-1]).astype(o_ref.dtype)


def _pick_batch_tile(B, requested):
    if requested is not None:
        if B % requested != 0:
            raise ValueError(f"batch_tile {requested} must divide batch {B}")
        return requested
    bt = 1
    for cand in range(1, min(B, 8) + 1):   # largest divisor of B that is <= 8
        if B % cand == 0:
            bt = cand
    return bt


def astgcn_forward(x, adj, params, *, num_heads, prediction_length, num_features,
                   batch_tile=None):
    del adj  # unused by the PyTorch forward as well
    B, T, N, F = x.shape
    H = params['w_in'].shape[1]
    assert H % num_heads == 0
    PF = prediction_length * num_features
    Bt = _pick_batch_tile(B, batch_tile)

    weights = [params[n] for n in PARAM_ORDER]

    def full_spec(w):
        zeros = (0,) * w.ndim
        return pl.BlockSpec(w.shape, lambda b, _z=zeros: _z)

    kernel = functools.partial(astgcn_kernel, num_heads=num_heads)
    out = pl.pallas_call(
        kernel,
        out_shape=jax.ShapeDtypeStruct((B, N, PF), jnp.float32),
        grid=(B // Bt,),
        in_specs=[pl.BlockSpec((Bt, T, N, F), lambda b: (b, 0, 0, 0))]
                 + [full_spec(w) for w in weights],
        out_specs=pl.BlockSpec((Bt, N, PF), lambda b: (b, 0, 0)),
        compiler_params=pltpu.CompilerParams(
            dimension_semantics=("parallel",),
            vmem_limit_bytes=32 * 1024 * 1024),
    )(x, *weights)

    out = out.reshape(B, N, prediction_length, num_features)
    return jnp.transpose(out, (0, 2, 1, 3))      # (B, prediction_length, N, F)


def astgcn_reference(x, params, *, num_heads, prediction_length, num_features):
    """Pure-JAX forward mirroring the PyTorch module (full temporal attention)."""
    B, T, N, F = x.shape
    H = params['w_in'].shape[1]
    dh = H // num_heads
    lin = lambda a, w, b: a @ w + b

    h = lin(x, params['w_in'], params['b_in'])                       # (B,T,N,H)
    sq = lin(h, params['w_sq'], params['b_sq'])
    sk = lin(h, params['w_sk'], params['b_sk'])
    s = jnp.einsum('btnh,btmh->btnm', sq, sk) / jnp.sqrt(float(H))
    attn = jax.nn.softmax(s, axis=-1)
    xs = jnp.einsum('btnm,btmh->btnh', attn, h)

    xt = jnp.transpose(xs, (0, 2, 1, 3)).reshape(B * N, T, H)
    q = lin(xt, params['w_tq'], params['b_tq'])
    k = lin(xt, params['w_tk'], params['b_tk'])
    v = lin(xt, params['w_tv'], params['b_tv'])
    split = lambda a: a.reshape(B * N, T, num_heads, dh).transpose(0, 2, 1, 3)
    qh, kh, vh = split(q), split(k), split(v)
    sc = jnp.einsum('rhtd,rhsd->rhts', qh, kh) / jnp.sqrt(float(dh))
    ah = jax.nn.softmax(sc, axis=-1)
    oh = jnp.einsum('rhts,rhsd->rhtd', ah, vh).transpose(0, 2, 1, 3).reshape(B * N, T, H)
    to = lin(oh, params['w_to'], params['b_to'])
    to = to.reshape(B, N, T, H).transpose(0, 2, 1, 3)                # (B,T,N,H)

    g1 = jax.nn.relu(lin(to, params['w_g1'], params['b_g1']))
    g2 = jax.nn.relu(lin(g1, params['w_g2'], params['b_g2']))
    xl = g2[:, -1]                                                   # (B,N,H)
    out = lin(xl, params['w_out'], params['b_out'])                  # (B,N,P*F)
    out = out.reshape(B, N, prediction_length, num_features)
    return jnp.transpose(out, (0, 2, 1, 3))


def init_params(key, *, num_features, hidden_dim, prediction_length):
    """Deterministic Linear-style init; weights stored (in, out), biases (1, out)."""
    H, F = hidden_dim, num_features
    PF = prediction_length * num_features
    shapes = {
        'w_in': (F, H), 'b_in': (1, H),
        'w_sq': (H, H), 'b_sq': (1, H),
        'w_sk': (H, H), 'b_sk': (1, H),
        'w_tq': (H, H), 'b_tq': (1, H),
        'w_tk': (H, H), 'b_tk': (1, H),
        'w_tv': (H, H), 'b_tv': (1, H),
        'w_to': (H, H), 'b_to': (1, H),
        'w_g1': (H, H), 'b_g1': (1, H),
        'w_g2': (H, H), 'b_g2': (1, H),
        'w_out': (H, PF), 'b_out': (1, PF),
    }
    keys = jax.random.split(key, len(shapes))
    params = {}
    for (name, shp), k in zip(shapes.items(), keys):
        fan_in = shp[0] if name.startswith('w') else shp[1]
        lim = 1.0 / (fan_in ** 0.5)
        params[name] = jax.random.uniform(k, shp, jnp.float32, -lim, lim)
    return params


if __name__ == "__main__":
    # Small but shape-consistent configuration.
    B, T, N = 2, 8, 16          # batch, seq_length, num_nodes
    F_FEAT, H = 4, 32           # num_features, hidden_dim
    NUM_HEADS = 4               # hidden_dim % num_heads == 0 -> head_dim = 8
    P_LEN = 3                   # prediction_length

    key = jax.random.PRNGKey(0)
    k_x, k_adj, k_p = jax.random.split(key, 3)

    x = jax.random.normal(k_x, (B, T, N, F_FEAT), dtype=jnp.float32)
    adj = jax.random.uniform(k_adj, (N, N), dtype=jnp.float32)   # unused (as in PyTorch)
    params = init_params(k_p, num_features=F_FEAT, hidden_dim=H, prediction_length=P_LEN)

    fwd = jax.jit(functools.partial(astgcn_forward,
                                    num_heads=NUM_HEADS,
                                    prediction_length=P_LEN,
                                    num_features=F_FEAT))
    out = fwd(x, adj, params)
    out = jax.block_until_ready(out)

    assert out.shape == (B, P_LEN, N, F_FEAT), out.shape
    assert bool(jnp.all(jnp.isfinite(out)))

    ref = astgcn_reference(x, params, num_heads=NUM_HEADS,
                           prediction_length=P_LEN, num_features=F_FEAT)
    max_err = float(jnp.max(jnp.abs(out - ref)))
    assert max_err < 5e-2, f"max abs error vs reference: {max_err}"

    print("KERNEL_OK")
</pallas_src>

<mosaic_0001>
module attributes {stable_mosaic.version = 11 : i64} {
  func.func @astgcn_kernel(%arg0: i32, %arg1: memref<2x8x16x4xf32, #tpu.memory_space<vmem>>, %arg2: memref<4x32xf32, #tpu.memory_space<vmem>>, %arg3: memref<1x32xf32, #tpu.memory_space<vmem>>, %arg4: memref<32x32xf32, #tpu.memory_space<vmem>>, %arg5: memref<1x32xf32, #tpu.memory_space<vmem>>, %arg6: memref<32x32xf32, #tpu.memory_space<vmem>>, %arg7: memref<1x32xf32, #tpu.memory_space<vmem>>, %arg8: memref<32x32xf32, #tpu.memory_space<vmem>>, %arg9: memref<1x32xf32, #tpu.memory_space<vmem>>, %arg10: memref<32x32xf32, #tpu.memory_space<vmem>>, %arg11: memref<1x32xf32, #tpu.memory_space<vmem>>, %arg12: memref<32x32xf32, #tpu.memory_space<vmem>>, %arg13: memref<1x32xf32, #tpu.memory_space<vmem>>, %arg14: memref<32x32xf32, #tpu.memory_space<vmem>>, %arg15: memref<1x32xf32, #tpu.memory_space<vmem>>, %arg16: memref<32x32xf32, #tpu.memory_space<vmem>>, %arg17: memref<1x32xf32, #tpu.memory_space<vmem>>, %arg18: memref<32x32xf32, #tpu.memory_space<vmem>>, %arg19: memref<1x32xf32, #tpu.memory_space<vmem>>, %arg20: memref<32x12xf32, #tpu.memory_space<vmem>>, %arg21: memref<1x12xf32, #tpu.memory_space<vmem>>, %arg22: memref<2x16x12xf32, #tpu.memory_space<vmem>>) attributes {dimension_semantics = [#tpu.dimension_semantics<parallel>], iteration_bounds = array<i64: 1>, scalar_prefetch = 0 : i64, scratch_operands = 0 : i64, tpu.core_type = #tpu.core_type<tc>, window_params = [{transform_indices = @transform_0, window_bounds = array<i64: 2, 8, 16, 4>}, {pipeline_mode = #tpu.pipeline_mode<synchronous>, transform_indices = @transform_1, window_bounds = array<i64: 4, 32>}, {pipeline_mode = #tpu.pipeline_mode<synchronous>, transform_indices = @transform_2, window_bounds = array<i64: 1, 32>}, {pipeline_mode = #tpu.pipeline_mode<synchronous>, transform_indices = @transform_3, window_bounds = array<i64: 32, 32>}, {pipeline_mode = #tpu.pipeline_mode<synchronous>, transform_indices = @transform_4, window_bounds = array<i64: 1, 32>}, {pipeline_mode = #tpu.pipeline_mode<synchronous>, transform_indices = @transform_5, window_bounds = array<i64: 32, 32>}, {pipeline_mode = #tpu.pipeline_mode<synchronous>, transform_indices = @transform_6, window_bounds = array<i64: 1, 32>}, {pipeline_mode = #tpu.pipeline_mode<synchronous>, transform_indices = @transform_7, window_bounds = array<i64: 32, 32>}, {pipeline_mode = #tpu.pipeline_mode<synchronous>, transform_indices = @transform_8, window_bounds = array<i64: 1, 32>}, {pipeline_mode = #tpu.pipeline_mode<synchronous>, transform_indices = @transform_9, window_bounds = array<i64: 32, 32>}, {pipeline_mode = #tpu.pipeline_mode<synchronous>, transform_indices = @transform_10, window_bounds = array<i64: 1, 32>}, {pipeline_mode = #tpu.pipeline_mode<synchronous>, transform_indices = @transform_11, window_bounds = array<i64: 32, 32>}, {pipeline_mode = #tpu.pipeline_mode<synchronous>, transform_indices = @transform_12, window_bounds = array<i64: 1, 32>}, {pipeline_mode = #tpu.pipeline_mode<synchronous>, transform_indices = @transform_13, window_bounds = array<i64: 32, 32>}, {pipeline_mode = #tpu.pipeline_mode<synchronous>, transform_indices = @transform_14, window_bounds = array<i64: 1, 32>}, {pipeline_mode = #tpu.pipeline_mode<synchronous>, transform_indices = @transform_15, window_bounds = array<i64: 32, 32>}, {pipeline_mode = #tpu.pipeline_mode<synchronous>, transform_indices = @transform_16, window_bounds = array<i64: 1, 32>}, {pipeline_mode = #tpu.pipeline_mode<synchronous>, transform_indices = @transform_17, window_bounds = array<i64: 32, 32>}, {pipeline_mode = #tpu.pipeline_mode<synchronous>, transform_indices = @transform_18, window_bounds = array<i64: 1, 32>}, {pipeline_mode = #tpu.pipeline_mode<synchronous>, transform_indices = @transform_19, window_bounds = array<i64: 32, 12>}, {pipeline_mode = #tpu.pipeline_mode<synchronous>, transform_indices = @transform_20, window_bounds = array<i64: 1, 12>}, {transform_indices = @transform_21, window_bounds = array<i64: 2, 16, 12>}]} {
    %c0 = arith.constant 0 : index
    %c0_0 = arith.constant 0 : index
    %c0_1 = arith.constant 0 : index
    %c0_2 = arith.constant 0 : index
    %0 = vector.load %arg1[%c0, %c0_0, %c0_1, %c0_2] : memref<2x8x16x4xf32, #tpu.memory_space<vmem>>, vector<2x8x16x4xf32>
    %1 = vector.shape_cast %0 : vector<2x8x16x4xf32> to vector<256x4xf32>
    %c0_3 = arith.constant 0 : index
    %c0_4 = arith.constant 0 : index
    %2 = vector.load %arg2[%c0_3, %c0_4] : memref<4x32xf32, #tpu.memory_space<vmem>>, vector<4x32xf32>
    %cst = arith.constant dense<0.000000e+00> : vector<256x32xf32>
    %3 = tpu.matmul %1, %2, %cst {dimension_numbers = #tpu.dot_dimension_numbers<[1], [0], [0], [1], [0, 0, 1, 1], [], []>} : vector<256x4xf32>, vector<4x32xf32>, vector<256x32xf32> -> vector<256x32xf32>
    %c0_5 = arith.constant 0 : index
    %c0_6 = arith.constant 0 : index
    %4 = vector.load %arg3[%c0_5, %c0_6] : memref<1x32xf32, #tpu.memory_space<vmem>>, vector<1x32xf32>
    %5 = vector.broadcast %4 : vector<1x32xf32> to vector<256x32xf32>
    %6 = arith.addf %3, %5 : vector<256x32xf32>
    %c0_7 = arith.constant 0 : index
    %c0_8 = arith.constant 0 : index
    %7 = vector.load %arg4[%c0_7, %c0_8] : memref<32x32xf32, #tpu.memory_space<vmem>>, vector<32x32xf32>
    %cst_9 = arith.constant dense<0.000000e+00> : vector<256x32xf32>
    %8 = tpu.matmul %6, %7, %cst_9 {dimension_numbers = #tpu.dot_dimension_numbers<[1], [0], [0], [1], [0, 0, 1, 1], [], []>} : vector<256x32xf32>, vector<32x32xf32>, vector<256x32xf32> -> vector<256x32xf32>
    %c0_10 = arith.constant 0 : index
    %c0_11 = arith.constant 0 : index
    %9 = vector.load %arg5[%c0_10, %c0_11] : memref<1x32xf32, #tpu.memory_space<vmem>>, vector<1x32xf32>
    %10 = vector.broadcast %9 : vector<1x32xf32> to vector<256x32xf32>
    %11 = arith.addf %8, %10 : vector<256x32xf32>
    %12 = vector.shape_cast %11 : vector<256x32xf32> to vector<16x16x32xf32>
    %c0_12 = arith.constant 0 : index
    %c0_13 = arith.constant 0 : index
    %13 = vector.load %arg6[%c0_12, %c0_13] : memref<32x32xf32, #tpu.memory_space<vmem>>, vector<32x32xf32>
    %cst_14 = arith.constant dense<0.000000e+00> : vector<256x32xf32>
    %14 = tpu.matmul %6, %13, %cst_14 {dimension_numbers = #tpu.dot_dimension_numbers<[1], [0], [0], [1], [0, 0, 1, 1], [], []>} : vector<256x32xf32>, vector<32x32xf32>, vector<256x32xf32> -> vector<256x32xf32>
    %c0_15 = arith.constant 0 : index
    %c0_16 = arith.constant 0 : index
    %15 = vector.load %arg7[%c0_15, %c0_16] : memref<1x32xf32, #tpu.memory_space<vmem>>, vector<1x32xf32>
    %16 = vector.broadcast %15 : vector<1x32xf32> to vector<256x32xf32>
    %17 = arith.addf %14, %16 : vector<256x32xf32>
    %18 = vector.shape_cast %17 : vector<256x32xf32> to vector<16x16x32xf32>
    %19 = vector.shape_cast %6 : vector<256x32xf32> to vector<16x16x32xf32>
    "tpu.trace_start"() <{level = 10 : i32, message = "gnk,gmk->gnm"}> : () -> ()
    %cst_17 = arith.constant dense<0.000000e+00> : vector<16x16x16xf32>
    %20 = tpu.matmul %12, %18, %cst_17 {dimension_numbers = #tpu.dot_dimension_numbers<[2], [2], [1], [1], [0, 0, 0, 1, 1, 1], [0], [0]>} : vector<16x16x32xf32>, vector<16x16x32xf32>, vector<16x16x16xf32> -> vector<16x16x16xf32>
    "tpu.trace_stop"() : () -> ()
    %cst_18 = arith.constant 0.176776692 : f32
    %21 = vector.broadcast %cst_18 : f32 to vector<16x16x16xf32>
    %22 = arith.mulf %20, %21 : vector<16x16x16xf32>
    %cst_19 = arith.constant dense<0xFF800000> : vector<16x16xf32>
    %23 = vector.multi_reduction <maximumf>, %22, %cst_19 [2] : vector<16x16x16xf32> to vector<16x16xf32>
    %24 = vector.shape_cast %23 : vector<16x16xf32> to vector<16x16x1xf32>
    %25 = vector.broadcast %24 : vector<16x16x1xf32> to vector<16x16x16xf32>
    %26 = arith.subf %22, %25 : vector<16x16x16xf32>
    %27 = math.exp %26 : vector<16x16x16xf32>
    %cst_20 = arith.constant dense<0.000000e+00> : vector<16x16xf32>
    %28 = vector.multi_reduction <add>, %27, %cst_20 [2] : vector<16x16x16xf32> to vector<16x16xf32>
    %29 = vector.shape_cast %28 : vector<16x16xf32> to vector<16x16x1xf32>
    %30 = tpu.reciprocal %29 {approx = true} : vector<16x16x1xf32> -> vector<16x16x1xf32>
    %31 = vector.broadcast %30 : vector<16x16x1xf32> to vector<16x16x16xf32>
    %32 = arith.mulf %27, %31 : vector<16x16x16xf32>
    "tpu.trace_start"() <{level = 10 : i32, message = "gnm,gmh->gnh"}> : () -> ()
    %cst_21 = arith.constant dense<0.000000e+00> : vector<16x16x32xf32>
    %33 = tpu.matmul %32, %19, %cst_21 {dimension_numbers = #tpu.dot_dimension_numbers<[2], [1], [1], [2], [0, 0, 0, 1, 1, 2], [0], [0]>} : vector<16x16x16xf32>, vector<16x16x32xf32>, vector<16x16x32xf32> -> vector<16x16x32xf32>
    "tpu.trace_stop"() : () -> ()
    %34 = vector.shape_cast %33 : vector<16x16x32xf32> to vector<2x8x16x32xf32>
    %35 = vector.extract_strided_slice %34 {offsets = [0, 7, 0, 0], sizes = [2, 1, 16, 32], strides = [1, 1, 1, 1]} : vector<2x8x16x32xf32> to vector<2x1x16x32xf32>
    %36 = vector.shape_cast %35 : vector<2x1x16x32xf32> to vector<2x16x32xf32>
    %37 = vector.shape_cast %36 : vector<2x16x32xf32> to vector<32x32xf32>
    %38 = vector.shape_cast %33 : vector<16x16x32xf32> to vector<256x32xf32>
    %c0_22 = arith.constant 0 : index
    %c0_23 = arith.constant 0 : index
    %39 = vector.load %arg8[%c0_22, %c0_23] : memref<32x32xf32, #tpu.memory_space<vmem>>, vector<32x32xf32>
    %cst_24 = arith.constant dense<0.000000e+00> : vector<32x32xf32>
    %40 = tpu.matmul %37, %39, %cst_24 {dimension_numbers = #tpu.dot_dimension_numbers<[1], [0], [0], [1], [0, 0, 1, 1], [], []>} : vector<32x32xf32>, vector<32x32xf32>, vector<32x32xf32> -> vector<32x32xf32>
    %c0_25 = arith.constant 0 : index
    %c0_26 = arith.constant 0 : index
    %41 = vector.load %arg9[%c0_25, %c0_26] : memref<1x32xf32, #tpu.memory_space<vmem>>, vector<1x32xf32>
    %42 = vector.broadcast %41 : vector<1x32xf32> to vector<32x32xf32>
    %43 = arith.addf %40, %42 : vector<32x32xf32>
    %cst_27 = arith.constant 0.353553385 : f32
    %44 = vector.broadcast %cst_27 : f32 to vector<32x32xf32>
    %45 = arith.mulf %43, %44 : vector<32x32xf32>
    %c0_28 = arith.constant 0 : index
    %c0_29 = arith.constant 0 : index
    %46 = vector.load %arg10[%c0_28, %c0_29] : memref<32x32xf32, #tpu.memory_space<vmem>>, vector<32x32xf32>
    %cst_30 = arith.constant dense<0.000000e+00> : vector<256x32xf32>
    %47 = tpu.matmul %38, %46, %cst_30 {dimension_numbers = #tpu.dot_dimension_numbers<[1], [0], [0], [1], [0, 0, 1, 1], [], []>} : vector<256x32xf32>, vector<32x32xf32>, vector<256x32xf32> -> vector<256x32xf32>
    %c0_31 = arith.constant 0 : index
    %c0_32 = arith.constant 0 : index
    %48 = vector.load %arg11[%c0_31, %c0_32] : memref<1x32xf32, #tpu.memory_space<vmem>>, vector<1x32xf32>
    %49 = vector.broadcast %48 : vector<1x32xf32> to vector<256x32xf32>
    %50 = arith.addf %47, %49 : vector<256x32xf32>
    %51 = vector.shape_cast %50 : vector<256x32xf32> to vector<2x8x16x32xf32>
    %c0_33 = arith.constant 0 : index
    %c0_34 = arith.constant 0 : index
    %52 = vector.load %arg12[%c0_33, %c0_34] : memref<32x32xf32, #tpu.memory_space<vmem>>, vector<32x32xf32>
    %cst_35 = arith.constant dense<0.000000e+00> : vector<256x32xf32>
    %53 = tpu.matmul %38, %52, %cst_35 {dimension_numbers = #tpu.dot_dimension_numbers<[1], [0], [0], [1], [0, 0, 1, 1], [], []>} : vector<256x32xf32>, vector<32x32xf32>, vector<256x32xf32> -> vector<256x32xf32>
    %c0_36 = arith.constant 0 : index
    %c0_37 = arith.constant 0 : index
    %54 = vector.load %arg13[%c0_36, %c0_37] : memref<1x32xf32, #tpu.memory_space<vmem>>, vector<1x32xf32>
    %55 = vector.broadcast %54 : vector<1x32xf32> to vector<256x32xf32>
    %56 = arith.addf %53, %55 : vector<256x32xf32>
    %57 = vector.shape_cast %56 : vector<256x32xf32> to vector<2x8x16x32xf32>
    %58 = tpu.iota {dimensions = array<i32: 0>} : vector<32x4xi32>
    %59 = tpu.iota {dimensions = array<i32: 1>} : vector<32x4xi32>
    %c8_i32 = arith.constant 8 : i32
    %60 = vector.broadcast %c8_i32 : i32 to vector<32x4xi32>
    %61 = arith.muli %59, %60 : vector<32x4xi32>
    %62 = arith.cmpi sge, %58, %61 : vector<32x4xi32>
    %c1_i32 = arith.constant 1 : i32
    %63 = vector.broadcast %c1_i32 : i32 to vector<32x4xi32>
    %64 = arith.addi %59, %63 : vector<32x4xi32>
    %c8_i32_38 = arith.constant 8 : i32
    %65 = vector.broadcast %c8_i32_38 : i32 to vector<32x4xi32>
    %66 = arith.muli %64, %65 : vector<32x4xi32>
    %67 = arith.cmpi slt, %58, %66 : vector<32x4xi32>
    %68 = arith.andi %62, %67 : vector<32x4xi1>
    %69 = arith.extui %68 : vector<32x4xi1> to vector<32x4xi32>
    %70 = arith.sitofp %69 : vector<32x4xi32> to vector<32x4xf32>
    %71 = tpu.iota {dimensions = array<i32: 0>} : vector<4x32xi32>
    %72 = tpu.iota {dimensions = array<i32: 1>} : vector<4x32xi32>
    %c8_i32_39 = arith.constant 8 : i32
    %73 = vector.broadcast %c8_i32_39 : i32 to vector<4x32xi32>
    %74 = arith.muli %71, %73 : vector<4x32xi32>
    %75 = arith.cmpi sge, %72, %74 : vector<4x32xi32>
    %c1_i32_40 = arith.constant 1 : i32
    %76 = vector.broadcast %c1_i32_40 : i32 to vector<4x32xi32>
    %77 = arith.addi %71, %76 : vector<4x32xi32>
    %c8_i32_41 = arith.constant 8 : i32
    %78 = vector.broadcast %c8_i32_41 : i32 to vector<4x32xi32>
    %79 = arith.muli %77, %78 : vector<4x32xi32>
    %80 = arith.cmpi slt, %72, %79 : vector<4x32xi32>
    %81 = arith.andi %75, %80 : vector<4x32xi1>
    %82 = arith.extui %81 : vector<4x32xi1> to vector<4x32xi32>
    %83 = arith.sitofp %82 : vector<4x32xi32> to vector<4x32xf32>
    %84 = vector.shape_cast %45 : vector<32x32xf32> to vector<2x1x16x32xf32>
    %85 = vector.broadcast %84 : vector<2x1x16x32xf32> to vector<2x8x16x32xf32>
    %86 = arith.mulf %85, %51 : vector<2x8x16x32xf32>
    %87 = vector.shape_cast %86 : vector<2x8x16x32xf32> to vector<256x32xf32>
    %cst_42 = arith.constant dense<0.000000e+00> : vector<256x4xf32>
    %88 = tpu.matmul %87, %70, %cst_42 {dimension_numbers = #tpu.dot_dimension_numbers<[1], [0], [0], [1], [0, 0, 1, 1], [], []>} : vector<256x32xf32>, vector<32x4xf32>, vector<256x4xf32> -> vector<256x4xf32>
    %89 = vector.shape_cast %88 : vector<256x4xf32> to vector<2x8x16x4xf32>
    %cst_43 = arith.constant dense<0xFF800000> : vector<2x16x4xf32>
    %90 = vector.multi_reduction <maximumf>, %89, %cst_43 [1] : vector<2x8x16x4xf32> to vector<2x16x4xf32>
    %91 = vector.shape_cast %90 : vector<2x16x4xf32> to vector<2x1x16x4xf32>
    %92 = vector.broadcast %91 : vector<2x1x16x4xf32> to vector<2x8x16x4xf32>
    %93 = arith.subf %89, %92 : vector<2x8x16x4xf32>
    %94 = math.exp %93 : vector<2x8x16x4xf32>
    %cst_44 = arith.constant dense<0.000000e+00> : vector<2x16x4xf32>
    %95 = vector.multi_reduction <add>, %94, %cst_44 [1] : vector<2x8x16x4xf32> to vector<2x16x4xf32>
    %96 = vector.shape_cast %95 : vector<2x16x4xf32> to vector<2x1x16x4xf32>
    %97 = tpu.reciprocal %96 {approx = true} : vector<2x1x16x4xf32> -> vector<2x1x16x4xf32>
    %98 = vector.broadcast %97 : vector<2x1x16x4xf32> to vector<2x8x16x4xf32>
    %99 = arith.mulf %94, %98 : vector<2x8x16x4xf32>
    %100 = vector.shape_cast %99 : vector<2x8x16x4xf32> to vector<256x4xf32>
    %cst_45 = arith.constant dense<0.000000e+00> : vector<256x32xf32>
    %101 = tpu.matmul %100, %83, %cst_45 {dimension_numbers = #tpu.dot_dimension_numbers<[1], [0], [0], [1], [0, 0, 1, 1], [], []>} : vector<256x4xf32>, vector<4x32xf32>, vector<256x32xf32> -> vector<256x32xf32>
    %102 = vector.shape_cast %101 : vector<256x32xf32> to vector<2x8x16x32xf32>
    %103 = arith.mulf %102, %57 : vector<2x8x16x32xf32>
    %cst_46 = arith.constant dense<0.000000e+00> : vector<2x16x32xf32>
    %104 = vector.multi_reduction <add>, %103, %cst_46 [1] : vector<2x8x16x32xf32> to vector<2x16x32xf32>
    %105 = vector.shape_cast %104 : vector<2x16x32xf32> to vector<32x32xf32>
    %c0_47 = arith.constant 0 : index
    %c0_48 = arith.constant 0 : index
    %106 = vector.load %arg14[%c0_47, %c0_48] : memref<32x32xf32, #tpu.memory_space<vmem>>, vector<32x32xf32>
    %cst_49 = arith.constant dense<0.000000e+00> : vector<32x32xf32>
    %107 = tpu.matmul %105, %106, %cst_49 {dimension_numbers = #tpu.dot_dimension_numbers<[1], [0], [0], [1], [0, 0, 1, 1], [], []>} : vector<32x32xf32>, vector<32x32xf32>, vector<32x32xf32> -> vector<32x32xf32>
    %c0_50 = arith.constant 0 : index
    %c0_51 = arith.constant 0 : index
    %108 = vector.load %arg15[%c0_50, %c0_51] : memref<1x32xf32, #tpu.memory_space<vmem>>, vector<1x32xf32>
    %109 = vector.broadcast %108 : vector<1x32xf32> to vector<32x32xf32>
    %110 = arith.addf %107, %109 : vector<32x32xf32>
    %c0_52 = arith.constant 0 : index
    %c0_53 = arith.constant 0 : index
    %111 = vector.load %arg16[%c0_52, %c0_53] : memref<32x32xf32, #tpu.memory_space<vmem>>, vector<32x32xf32>
    %cst_54 = arith.constant dense<0.000000e+00> : vector<32x32xf32>
    %112 = tpu.matmul %110, %111, %cst_54 {dimension_numbers = #tpu.dot_dimension_numbers<[1], [0], [0], [1], [0, 0, 1, 1], [], []>} : vector<32x32xf32>, vector<32x32xf32>, vector<32x32xf32> -> vector<32x32xf32>
    %c0_55 = arith.constant 0 : index
    %c0_56 = arith.constant 0 : index
    %113 = vector.load %arg17[%c0_55, %c0_56] : memref<1x32xf32, #tpu.memory_space<vmem>>, vector<1x32xf32>
    %114 = vector.broadcast %113 : vector<1x32xf32> to vector<32x32xf32>
    %115 = arith.addf %112, %114 : vector<32x32xf32>
    %cst_57 = arith.constant 0.000000e+00 : f32
    %116 = vector.broadcast %cst_57 : f32 to vector<32x32xf32>
    %117 = arith.maximumf %115, %116 : vector<32x32xf32>
    %c0_58 = arith.constant 0 : index
    %c0_59 = arith.constant 0 : index
    %118 = vector.load %arg18[%c0_58, %c0_59] : memref<32x32xf32, #tpu.memory_space<vmem>>, vector<32x32xf32>
    %cst_60 = arith.constant dense<0.000000e+00> : vector<32x32xf32>
    %119 = tpu.matmul %117, %118, %cst_60 {dimension_numbers = #tpu.dot_dimension_numbers<[1], [0], [0], [1], [0, 0, 1, 1], [], []>} : vector<32x32xf32>, vector<32x32xf32>, vector<32x32xf32> -> vector<32x32xf32>
    %c0_61 = arith.constant 0 : index
    %c0_62 = arith.constant 0 : index
    %120 = vector.load %arg19[%c0_61, %c0_62] : memref<1x32xf32, #tpu.memory_space<vmem>>, vector<1x32xf32>
    %121 = vector.broadcast %120 : vector<1x32xf32> to vector<32x32xf32>
    %122 = arith.addf %119, %121 : vector<32x32xf32>
    %cst_63 = arith.constant 0.000000e+00 : f32
    %123 = vector.broadcast %cst_63 : f32 to vector<32x32xf32>
    %124 = arith.maximumf %122, %123 : vector<32x32xf32>
    %c0_64 = arith.constant 0 : index
    %c0_65 = arith.constant 0 : index
    %125 = vector.load %arg20[%c0_64, %c0_65] : memref<32x12xf32, #tpu.memory_space<vmem>>, vector<32x12xf32>
    %cst_66 = arith.constant dense<0.000000e+00> : vector<32x12xf32>
    %126 = tpu.matmul %124, %125, %cst_66 {dimension_numbers = #tpu.dot_dimension_numbers<[1], [0], [0], [1], [0, 0, 1, 1], [], []>} : vector<32x32xf32>, vector<32x12xf32>, vector<32x12xf32> -> vector<32x12xf32>
    %c0_67 = arith.constant 0 : index
    %c0_68 = arith.constant 0 : index
    %127 = vector.load %arg21[%c0_67, %c0_68] : memref<1x12xf32, #tpu.memory_space<vmem>>, vector<1x12xf32>
    %128 = vector.broadcast %127 : vector<1x12xf32> to vector<32x12xf32>
    %129 = arith.addf %126, %128 : vector<32x12xf32>
    %130 = vector.shape_cast %129 : vector<32x12xf32> to vector<2x16x12xf32>
    %c0_69 = arith.constant 0 : index
    %c0_70 = arith.constant 0 : index
    %c0_71 = arith.constant 0 : index
    %131 = vector.load %arg22[%c0_69, %c0_70, %c0_71] : memref<2x16x12xf32, #tpu.memory_space<vmem>>, vector<2x16x12xf32>
    tpu.vector_store %arg22[%c0_69, %c0_70, %c0_71], %130 {strides = array<i32>} : memref<2x16x12xf32, #tpu.memory_space<vmem>>, vector<2x16x12xf32>,
    return
  }
  func.func @transform_0(%arg0: i32) -> (i32, i32, i32, i32) {
    %c0_i32 = arith.constant 0 : i32
    %c0_i32_0 = arith.constant 0 : i32
    %c0_i32_1 = arith.constant 0 : i32
    %c0_i32_2 = arith.constant 0 : i32
    return %arg0, %c0_i32, %c0_i32_0, %c0_i32_1 : i32, i32, i32, i32
  }
  func.func @transform_1(%arg0: i32) -> (i32, i32) {
    %c0_i32 = arith.constant 0 : i32
    %c0_i32_0 = arith.constant 0 : i32
    %c0_i32_1 = arith.constant 0 : i32
    return %c0_i32, %c0_i32_0 : i32, i32
  }
  func.func @transform_2(%arg0: i32) -> (i32, i32) {
    %c0_i32 = arith.constant 0 : i32
    %c0_i32_0 = arith.constant 0 : i32
    %c0_i32_1 = arith.constant 0 : i32
    return %c0_i32, %c0_i32_0 : i32, i32
  }
  func.func @transform_3(%arg0: i32) -> (i32, i32) {
    %c0_i32 = arith.constant 0 : i32
    %c0_i32_0 = arith.constant 0 : i32
    %c0_i32_1 = arith.constant 0 : i32
    return %c0_i32, %c0_i32_0 : i32, i32
  }
  func.func @transform_4(%arg0: i32) -> (i32, i32) {
    %c0_i32 = arith.constant 0 : i32
    %c0_i32_0 = arith.constant 0 : i32
    %c0_i32_1 = arith.constant 0 : i32
    return %c0_i32, %c0_i32_0 : i32, i32
  }
  func.func @transform_5(%arg0: i32) -> (i32, i32) {
    %c0_i32 = arith.constant 0 : i32
    %c0_i32_0 = arith.constant 0 : i32
    %c0_i32_1 = arith.constant 0 : i32
    return %c0_i32, %c0_i32_0 : i32, i32
  }
  func.func @transform_6(%arg0: i32) -> (i32, i32) {
    %c0_i32 = arith.constant 0 : i32
    %c0_i32_0 = arith.constant 0 : i32
    %c0_i32_1 = arith.constant 0 : i32
    return %c0_i32, %c0_i32_0 : i32, i32
  }
  func.func @transform_7(%arg0: i32) -> (i32, i32) {
    %c0_i32 = arith.constant 0 : i32
    %c0_i32_0 = arith.constant 0 : i32
    %c0_i32_1 = arith.constant 0 : i32
    return %c0_i32, %c0_i32_0 : i32, i32
  }
  func.func @transform_8(%arg0: i32) -> (i32, i32) {
    %c0_i32 = arith.constant 0 : i32
    %c0_i32_0 = arith.constant 0 : i32
    %c0_i32_1 = arith.constant 0 : i32
    return %c0_i32, %c0_i32_0 : i32, i32
  }
  func.func @transform_9(%arg0: i32) -> (i32, i32) {
    %c0_i32 = arith.constant 0 : i32
    %c0_i32_0 = arith.constant 0 : i32
    %c0_i32_1 = arith.constant 0 : i32
    return %c0_i32, %c0_i32_0 : i32, i32
  }
  func.func @transform_10(%arg0: i32) -> (i32, i32) {
    %c0_i32 = arith.constant 0 : i32
    %c0_i32_0 = arith.constant 0 : i32
    %c0_i32_1 = arith.constant 0 : i32
    return %c0_i32, %c0_i32_0 : i32, i32
  }
  func.func @transform_11(%arg0: i32) -> (i32, i32) {
    %c0_i32 = arith.constant 0 : i32
    %c0_i32_0 = arith.constant 0 : i32
    %c0_i32_1 = arith.constant 0 : i32
    return %c0_i32, %c0_i32_0 : i32, i32
  }
  func.func @transform_12(%arg0: i32) -> (i32, i32) {
    %c0_i32 = arith.constant 0 : i32
    %c0_i32_0 = arith.constant 0 : i32
    %c0_i32_1 = arith.constant 0 : i32
    return %c0_i32, %c0_i32_0 : i32, i32
  }
  func.func @transform_13(%arg0: i32) -> (i32, i32) {
    %c0_i32 = arith.constant 0 : i32
    %c0_i32_0 = arith.constant 0 : i32
    %c0_i32_1 = arith.constant 0 : i32
    return %c0_i32, %c0_i32_0 : i32, i32
  }
  func.func @transform_14(%arg0: i32) -> (i32, i32) {
    %c0_i32 = arith.constant 0 : i32
    %c0_i32_0 = arith.constant 0 : i32
    %c0_i32_1 = arith.constant 0 : i32
    return %c0_i32, %c0_i32_0 : i32, i32
  }
  func.func @transform_15(%arg0: i32) -> (i32, i32) {
    %c0_i32 = arith.constant 0 : i32
    %c0_i32_0 = arith.constant 0 : i32
    %c0_i32_1 = arith.constant 0 : i32
    return %c0_i32, %c0_i32_0 : i32, i32
  }
  func.func @transform_16(%arg0: i32) -> (i32, i32) {
    %c0_i32 = arith.constant 0 : i32
    %c0_i32_0 = arith.constant 0 : i32
    %c0_i32_1 = arith.constant 0 : i32
    return %c0_i32, %c0_i32_0 : i32, i32
  }
  func.func @transform_17(%arg0: i32) -> (i32, i32) {
    %c0_i32 = arith.constant 0 : i32
    %c0_i32_0 = arith.constant 0 : i32
    %c0_i32_1 = arith.constant 0 : i32
    return %c0_i32, %c0_i32_0 : i32, i32
  }
  func.func @transform_18(%arg0: i32) -> (i32, i32) {
    %c0_i32 = arith.constant 0 : i32
    %c0_i32_0 = arith.constant 0 : i32
    %c0_i32_1 = arith.constant 0 : i32
    return %c0_i32, %c0_i32_0 : i32, i32
  }
  func.func @transform_19(%arg0: i32) -> (i32, i32) {
    %c0_i32 = arith.constant 0 : i32
    %c0_i32_0 = arith.constant 0 : i32
    %c0_i32_1 = arith.constant 0 : i32
    return %c0_i32, %c0_i32_0 : i32, i32
  }
  func.func @transform_20(%arg0: i32) -> (i32, i32) {
    %c0_i32 = arith.constant 0 : i32
    %c0_i32_0 = arith.constant 0 : i32
    %c0_i32_1 = arith.constant 0 : i32
    return %c0_i32, %c0_i32_0 : i32, i32
  }
  func.func @transform_21(%arg0: i32) -> (i32, i32, i32) {
    %c0_i32 = arith.constant 0 : i32
    %c0_i32_0 = arith.constant 0 : i32
    %c0_i32_1 = arith.constant 0 : i32
    return %arg0, %c0_i32, %c0_i32_0 : i32, i32, i32
  }
}

</mosaic_0001>

<bundles_post_ra>
// kernel: astgcn_forward.1
= control target key start
LH: loop header
LB: loop body
LE: loop exit
PB: predicated region body
PF: predicated region fallthrough
CT: control target
= control target key end

     0   :  { %vm205_vm0 = vcmask 1043456   ;;  %vm108_vm1 = vcmask 31744   ;;  %vm445_vm2 = vcmask 261120   ;;  %vm2427_vm4 = vcmask 130048   ;;  %s9992_s1 = inlined_call_operand.vmem [shape: f32[4,32], index: 1, kind: input, shape index: {}]   ;;  %s9993_s0 = inlined_call_operand.vmem [shape: f32[2,8,16,4], index: 0, kind: input, shape index: {}]   ;;  %s9994_s5 = inlined_call_operand.vmem [shape: f32[32,32], index: 5, kind: input, shape index: {}]   ;;  %s9995_s3 = inlined_call_operand.vmem [shape: f32[32,32], index: 3, kind: input, shape index: {}]   ;;  %s9996_s2 = inlined_call_operand.vmem [shape: f32[1,32], index: 2, kind: input, shape index: {}]   ;;  %s9997_s6 = inlined_call_operand.vmem [shape: f32[1,32], index: 6, kind: input, shape index: {}]   ;;  %s9998_s4 = inlined_call_operand.vmem [shape: f32[1,32], index: 4, kind: input, shape index: {}]   ;;  %s9999_s9 = inlined_call_operand.vmem [shape: f32[32,32], index: 9, kind: input, shape index: {}]   ;;  %s10000_s7 = inlined_call_operand.vmem [shape: f32[32,32], index: 7, kind: input, shape index: {}]   ;;  %s10001_s11 = inlined_call_operand.vmem [shape: f32[32,32], index: 11, kind: input, shape index: {}]   ;;  %s10002_s8 = inlined_call_operand.vmem [shape: f32[1,32], index: 8, kind: input, shape index: {}]   ;;  %s10003_s10 = inlined_call_operand.vmem [shape: f32[1,32], index: 10, kind: input, shape index: {}]   ;;  %s10004_s13 = inlined_call_operand.vmem [shape: f32[32,32], index: 13, kind: input, shape index: {}]   ;;  %s10005_s15 = inlined_call_operand.vmem [shape: f32[32,32], index: 15, kind: input, shape index: {}]   ;;  %s10006_s12 = inlined_call_operand.vmem [shape: f32[1,32], index: 12, kind: input, shape index: {}]   ;;  %s10007_s17 = inlined_call_operand.vmem [shape: f32[32,32], index: 17, kind: input, shape index: {}]   ;;  %s10008_s14 = inlined_call_operand.vmem [shape: f32[1,32], index: 14, kind: input, shape index: {}]   ;;  %s10009_s19 = inlined_call_operand.vmem [shape: f32[32,12], index: 19, kind: input, shape index: {}]   ;;  %s10010_s16 = inlined_call_operand.vmem [shape: f32[1,32], index: 16, kind: input, shape index: {}]   ;;  %s10011_s18 = inlined_call_operand.vmem [shape: f32[1,32], index: 18, kind: input, shape index: {}]   ;;  %s10012_s20 = inlined_call_operand.vmem [shape: f32[1,12], index: 20, kind: input, shape index: {}]   ;;  %s10013_s21 = inlined_call_operand.vmem [shape: f32[2,16,12], index: 21, kind: output, shape index: {}]  }
   0x1   :  { %10017 = sst [smem:[#allocation20_spill]] %s9992_s1  ;;  %vm8560_vm3 = vmpackc.low %vm445_vm2, %vm445_vm2 }
   0x2   :  { %10018 = sst [smem:[#allocation21_spill]] %s9993_s0  ;;  %s10023_s26 = sld [smem:[#allocation20_spill]] }
   0x3   :  { %10019 = sst [smem:[#allocation22_spill]] %s9994_s5  ;;  %s10024_s28 = sld [smem:[#allocation21_spill]] }
   0x4   :  { %10020 = sst [smem:[#allocation23_spill]] %s9995_s3  ;;  %s10025_s29 = sld [smem:[#allocation22_spill]] }
   0x5   :  { %10021 = sst [smem:[#allocation24_spill]] %s9996_s2  ;;  %s10026_s22 = sld [smem:[#allocation23_spill]] }
   0x6   :  { %10022 = sst [smem:[#allocation25_spill]] %s9997_s6  ;;  %s10027_s0 = sld [smem:[#allocation24_spill]] }
   0x7   :  { %s10028_s24 = sld [smem:[#allocation25_spill]] }
   0x8   :  { %v100_v0 = vld [vmem:[%s10023_s26] sm:$0xf] }
   0x9   :  { %v68_v1 = vld [vmem:[%s10024_s28] sm:$0xff]  ;;  %v69_v2 = vld [vmem:[%s10024_s28 + $0x8] sm:$0xff]  ;;  %7027 = vmatprep.subr.msk.mxu0 %vm205_vm0, %v100_v0  ;;  %v70_v3 = vld [vmem:[%s10024_s28 + $0x10] sm:$0xff] }
   0xa   :  { %7029 = vmatprep.mubr.msk.f32.mxu0 %vm108_vm1, %v68_v1  ;;  %7028 = vmatpush3.msk.msra.mxu0 %vm205_vm0, %v100_v0  ;;  %v71_v4 = vld [vmem:[%s10024_s28 + $0x18] sm:$0xff]  ;;  %v72_v5 = vld [vmem:[%s10024_s28 + $0x20] sm:$0xff]  ;;  %v73_v6 = vld [vmem:[%s10024_s28 + $0x28] sm:$0xff] }
   0xb   :  { %7030 = vmatmul.mubr.msk.f32.vlgmr.msra.gmra.mrb[0].mxu0 %vm108_vm1, %v69_v2  ;;  %v74_v7 = vld [vmem:[%s10024_s28 + $0x30] sm:$0xff]  ;;  %v767_v8 = vld [vmem:[%s10025_s29] sm:$0xff]  ;;  %v768_v9 = vld [vmem:[%s10025_s29 + $0x8] sm:$0xff] }
   0xc   :  { %7032 = vmatprep.mubr.msk.f32.mxu0 %vm108_vm1, %v70_v3  ;;  %v434_v10 = vld [vmem:[%s10026_s22] sm:$0xff]  ;;  %v75_v11 = vld [vmem:[%s10024_s28 + $0x38] sm:$0xff]  ;;  %v7709_v12 = vpack.c.bf16 %v768_v9, %v767_v8  ;;  %v435_v13 = vld [vmem:[%s10026_s22 + $0x8] sm:$0xff] }
   0xd   :  { %v76_v14 = vld [vmem:[%s10024_s28 + $0x40] sm:$0xff]  ;;  %v7701_v15 = vpack.c.bf16 %v435_v13, %v434_v10  ;;  %v77_v16 = vld [vmem:[%s10024_s28 + $0x48] sm:$0xff]  ;;  %v78_v17 = vld [vmem:[%s10024_s28 + $0x50] sm:$0xff] }
   0xe   :  { %7710 = vmatprep.subr.bf16.mxu0 %v7709_v12  ;;  %v79_v18 = vld [vmem:[%s10024_s28 + $0x58] sm:$0xff]  ;;  %v80_v19 = vld [vmem:[%s10024_s28 + $0x60] sm:$0xff]  ;;  %v81_v20 = vld [vmem:[%s10024_s28 + $0x68] sm:$0xff] }
   0xf   :  { %7033 = vmatmul.mubr.msk.f32.gmra.mrb[2].mxu0 %vm108_vm1, %v71_v4  ;;  %7702 = vmatprep.subr.bf16.mxu1 %v7701_v15  ;;  %v82_v21 = vld [vmem:[%s10024_s28 + $0x70] sm:$0xff]  ;;  %v83_v22 = vld [vmem:[%s10024_s28 + $0x78] sm:$0xff]  ;;  %v84_v23 = vld [vmem:[%s10024_s28 + $0x80] sm:$0xff] }
  0x10   :  { %7035 = vmatprep.mubr.msk.f32.mxu0 %vm108_vm1, %v72_v5  ;;  %7712 = vmatpush3.bf16.msra.mxu0 %v7709_v12  ;;  %v85_v24 = vld [vmem:[%s10024_s28 + $0x88] sm:$0xff]  ;;  %v86_v25 = vld [vmem:[%s10024_s28 + $0x90] sm:$0xff]  ;;  %v87_v26 = vld [vmem:[%s10024_s28 + $0x98] sm:$0xff] }
  0x11   :  { %7704 = vmatpush3.bf16.msra.mxu1 %v7701_v15  ;;  %v88_v27 = vld [vmem:[%s10024_s28 + $0xa0] sm:$0xff]  ;;  %v89_v28 = vld [vmem:[%s10024_s28 + $0xa8] sm:$0xff]  ;;  %v90_v29 = vld [vmem:[%s10024_s28 + $0xb0] sm:$0xff] }
  0x12   :  { %v91_v30 = vld [vmem:[%s10024_s28 + $0xb8] sm:$0xff]  ;;  %v92_v31 = vld [vmem:[%s10024_s28 + $0xc0] sm:$0xff]  ;;  %v93_v32 = vld [vmem:[%s10024_s28 + $0xc8] sm:$0xff] }
  0x13   :  { %7036 = vmatmul.mubr.msk.f32.gmra.mrb[4].mxu0 %vm108_vm1, %v73_v6  ;;  %v94_v33 = vld [vmem:[%s10024_s28 + $0xd0] sm:$0xff]  ;;  %v95_v34 = vld [vmem:[%s10024_s28 + $0xd8] sm:$0xff]  ;;  %v96_v35 = vld [vmem:[%s10024_s28 + $0xe0] sm:$0xff] }
  0x14   :  { %7038 = vmatprep.mubr.msk.f32.mxu0 %vm108_vm1, %v74_v7  ;;  %v97_v36 = vld [vmem:[%s10024_s28 + $0xe8] sm:$0xff]  ;;  %v98_v37 = vld [vmem:[%s10024_s28 + $0xf0] sm:$0xff]  ;;  %v99_v38 = vld [vmem:[%s10024_s28 + $0xf8] sm:$0xff] }
  0x15   :  { %v436_v39 = vld [vmem:[%s10026_s22 + $0x10] sm:$0xff]  ;;  %v437_v40 = vld [vmem:[%s10026_s22 + $0x18] sm:$0xff]  ;;  %v8415_v45 = vld [vmem:[%s10027_s0] ss:$0 sm:$0xff] }
  0x16   :  { %v769_v41 = vld [vmem:[%s10025_s29 + $0x10] sm:$0xff]  ;;  %v7705_v42 = vpack.c.bf16 %v437_v40, %v436_v39  ;;  %v770_v43 = vld [vmem:[%s10025_s29 + $0x18] sm:$0xff] }
  0x17   :  { %7039 = vmatmul.mubr.msk.f32.gmra.mrb[6].mxu0 %vm108_vm1, %v75_v11  ;;  %v7713_v44 = vpack.c.bf16 %v770_v43, %v769_v41 }
  0x18   :  { %7041 = vmatprep.mubr.msk.f32.mxu0 %vm108_vm1, %v76_v14  ;;  %7706 = vmatprep.subr.bf16.mxu1 %v7705_v42 }
  0x19   :  { %7714 = vmatprep.subr.bf16.mxu0 %v7713_v44  ;;  %7708 = vmatpush3.bf16.msra.mxu1 %v7705_v42 }
  0x1a   :  { %7716 = vmatpush3.bf16.msra.mxu0 %v7713_v44 }
  0x1b   :  { %7042 = vmatmul.mubr.msk.f32.gmra.mrb[8].mxu0 %vm108_vm1, %v77_v16 }
  0x1c   :  { %7044 = vmatprep.mubr.msk.f32.mxu0 %vm108_vm1, %v78_v17 }
  0x1f   :  { %7045 = vmatmul.mubr.msk.f32.gmra.mrb[10].mxu0 %vm108_vm1, %v79_v18 }
  0x20   :  { %7047 = vmatprep.mubr.msk.f32.mxu0 %vm108_vm1, %v80_v19 }
  0x23   :  { %7048 = vmatmul.mubr.msk.f32.gmra.mrb[12].mxu0 %vm108_vm1, %v81_v20 }
  0x24   :  { %7050 = vmatprep.mubr.msk.f32.mxu0 %vm108_vm1, %v82_v21 }
  0x27   :  { %7051 = vmatmul.mubr.msk.f32.gmra.mrb[14].mxu0 %vm108_vm1, %v83_v22 }
  0x28   :  { %7053 = vmatprep.mubr.msk.f32.mxu0 %vm108_vm1, %v84_v23 }
  0x2b   :  { %7054 = vmatmul.mubr.msk.f32.gmra.mrb[16].mxu0 %vm108_vm1, %v85_v24 }
  0x2c   :  { %7056 = vmatprep.mubr.msk.f32.mxu0 %vm108_vm1, %v86_v25 }
  0x2f   :  { %7057 = vmatmul.mubr.msk.f32.gmra.mrb[18].mxu0 %vm108_vm1, %v87_v26 }
  0x30   :  { %7059 = vmatprep.mubr.msk.f32.mxu0 %vm108_vm1, %v88_v27 }
  0x33   :  { %7060 = vmatmul.mubr.msk.f32.gmra.mrb[20].mxu0 %vm108_vm1, %v89_v28 }
  0x34   :  { %7062 = vmatprep.mubr.msk.f32.mxu0 %vm108_vm1, %v90_v29 }
  0x37   :  { %7063 = vmatmul.mubr.msk.f32.gmra.mrb[22].mxu0 %vm108_vm1, %v91_v30 }
  0x38   :  { %7065 = vmatprep.mubr.msk.f32.mxu0 %vm108_vm1, %v92_v31 }
  0x3b   :  { %7066 = vmatmul.mubr.msk.f32.gmra.mrb[24].mxu0 %vm108_vm1, %v93_v32 }
  0x3c   :  { %7068 = vmatprep.mubr.msk.f32.mxu0 %vm108_vm1, %v94_v33 }
  0x3f   :  { %7069 = vmatmul.mubr.msk.f32.gmra.mrb[26].mxu0 %vm108_vm1, %v95_v34 }
  0x40   :  { %7071 = vmatprep.mubr.msk.f32.mxu0 %vm108_vm1, %v96_v35 }
  0x43   :  { %7072 = vmatmul.mubr.msk.f32.gmra.mrb[28].mxu0 %vm108_vm1, %v97_v36 }
  0x44   :  { %7074 = vmatprep.mubr.msk.f32.mxu0 %vm108_vm1, %v98_v37 }
  0x47   :  { %7075 = vmatmul.mubr.msk.f32.gmra.mrb[30].mxu0 %vm108_vm1, %v99_v38 }
  0xde   :  { %v7031_v46 = vpop.f32.mrb[0].mxu0 }
  0xdf   :  { %v281_v47 = vadd.f32 %v7031_v46, %v8415_v45  ;;  %v275_v48 = vpop.f32.mrb[1].mxu0 }
  0xe0   :  { %v276_v49 = vadd.f32 %v8415_v45, %v275_v48 }
  0xe2   :  { %v7034_v50 = vpop.f32.mrb[2].mxu0  ;;  %7085 = vmatprep.mubr.msk.f32.mxu1 %vm445_vm2, %v276_v49  ;;  %7141 = vmatprep.mubr.msk.f32.mxu0 %vm445_vm2, %v276_v49  ;;  %v8421_v51 = vpack.c.bf16 %v281_v47, %v276_v49 }
  0xe3   :  { %v291_v52 = vadd.f32 %v7034_v50, %v8415_v45  ;;  %v285_v53 = vpop.f32.mrb[3].mxu0  ;;  %7086 = vmatmul.mubr.msk.f32.vlgmr.msra.gmra.mrb[0].mxu1 %vm445_vm2, %v281_v47  ;;  %7142 = vmatmul.mubr.msk.f32.vlgmr.msra.gmra.mrb[32].mxu0 %vm445_vm2, %v281_v47 }
  0xe4   :  { %v286_v54 = vadd.f32 %v8415_v45, %v285_v53 }
  0xe6   :  { %v7037_v55 = vpop.f32.mrb[4].mxu0  ;;  %7144 = vmatprep.mubr.msk.f32.mxu0 %vm445_vm2, %v286_v54  ;;  %7088 = vmatprep.mubr.msk.f32.mxu1 %vm445_vm2, %v286_v54  ;;  %v8429_v56 = vpack.c.bf16 %v291_v52, %v286_v54 }
  0xe7   :  { %v301_v57 = vadd.f32 %v7037_v55, %v8415_v45  ;;  %v295_v58 = vpop.f32.mrb[5].mxu0  ;;  %7145 = vmatmul.mubr.msk.f32.gmra.mrb[34].mxu0 %vm445_vm2, %v291_v52  ;;  %7089 = vmatmul.mubr.msk.f32.gmra.mrb[2].mxu1 %vm445_vm2, %v291_v52 }
  0xe8   :  { %v296_v59 = vadd.f32 %v8415_v45, %v295_v58 }
  0xea   :  { %v7040_v60 = vpop.f32.mrb[6].mxu0  ;;  %7147 = vmatprep.mubr.msk.f32.mxu0 %vm445_vm2, %v296_v59  ;;  %7091 = vmatprep.mubr.msk.f32.mxu1 %vm445_vm2, %v296_v59  ;;  %v8437_v61 = vpack.c.bf16 %v301_v57, %v296_v59 }
  0xeb   :  { %v311_v62 = vadd.f32 %v7040_v60, %v8415_v45  ;;  %v305_v63 = vpop.f32.mrb[7].mxu0  ;;  %7148 = vmatmul.mubr.msk.f32.gmra.mrb[36].mxu0 %vm445_vm2, %v301_v57  ;;  %7092 = vmatmul.mubr.msk.f32.gmra.mrb[4].mxu1 %vm445_vm2, %v301_v57 }
  0xec   :  { %v306_v0 = vadd.f32 %v8415_v45, %v305_v63 }
  0xee   :  { %v7043_v1 = vpop.f32.mrb[8].mxu0  ;;  %7150 = vmatprep.mubr.msk.f32.mxu0 %vm445_vm2, %v306_v0  ;;  %7094 = vmatprep.mubr.msk.f32.mxu1 %vm445_vm2, %v306_v0  ;;  %v8445_v2 = vpack.c.bf16 %v311_v62, %v306_v0 }
  0xef   :  { %v321_v3 = vadd.f32 %v7043_v1, %v8415_v45  ;;  %v315_v4 = vpop.f32.mrb[9].mxu0  ;;  %7151 = vmatmul.mubr.msk.f32.gmra.mrb[38].mxu0 %vm445_vm2, %v311_v62  ;;  %7095 = vmatmul.mubr.msk.f32.gmra.mrb[6].mxu1 %vm445_vm2, %v311_v62 }
  0xf0   :  { %v316_v5 = vadd.f32 %v8415_v45, %v315_v4  ;;  %v8553_v4 = vld [vmem:[%s9998_s4] ss:$0 sm:$0xff] }
  0xf2   :  { %v7046_v6 = vpop.f32.mrb[10].mxu0  ;;  %7153 = vmatprep.mubr.msk.f32.mxu0 %vm445_vm2, %v316_v5  ;;  %7097 = vmatprep.mubr.msk.f32.mxu1 %vm445_vm2, %v316_v5  ;;  %v8453_v7 = vpack.c.bf16 %v321_v3, %v316_v5 }
  0xf3   :  { %v331_v8 = vadd.f32 %v7046_v6, %v8415_v45  ;;  %v325_v9 = vpop.f32.mrb[11].mxu0  ;;  %7154 = vmatmul.mubr.msk.f32.gmra.mrb[40].mxu0 %vm445_vm2, %v321_v3  ;;  %7098 = vmatmul.mubr.msk.f32.gmra.mrb[8].mxu1 %vm445_vm2, %v321_v3  ;;  %v8548_v3 = vld [vmem:[%s10028_s24] ss:$0 sm:$0xff] }
  0xf4   :  { %v326_v10 = vadd.f32 %v8415_v45, %v325_v9 }
  0xf6   :  { %v7049_v11 = vpop.f32.mrb[12].mxu0  ;;  %7156 = vmatprep.mubr.msk.f32.mxu0 %vm445_vm2, %v326_v10  ;;  %7100 = vmatprep.mubr.msk.f32.mxu1 %vm445_vm2, %v326_v10  ;;  %v8461_v12 = vpack.c.bf16 %v331_v8, %v326_v10 }
  0xf7   :  { %v341_v13 = vadd.f32 %v7049_v11, %v8415_v45  ;;  %v335_v14 = vpop.f32.mrb[13].mxu0  ;;  %7157 = vmatmul.mubr.msk.f32.gmra.mrb[42].mxu0 %vm445_vm2, %v331_v8  ;;  %7101 = vmatmul.mubr.msk.f32.gmra.mrb[10].mxu1 %vm445_vm2, %v331_v8 }
  0xf8   :  { %v336_v15 = vadd.f32 %v8415_v45, %v335_v14 }
  0xfa   :  { %v7052_v16 = vpop.f32.mrb[14].mxu0  ;;  %7159 = vmatprep.mubr.msk.f32.mxu0 %vm445_vm2, %v336_v15  ;;  %7103 = vmatprep.mubr.msk.f32.mxu1 %vm445_vm2, %v336_v15  ;;  %v8469_v17 = vpack.c.bf16 %v341_v13, %v336_v15 }
  0xfb   :  { %v351_v18 = vadd.f32 %v7052_v16, %v8415_v45  ;;  %v345_v19 = vpop.f32.mrb[15].mxu0  ;;  %7160 = vmatmul.mubr.msk.f32.gmra.mrb[44].mxu0 %vm445_vm2, %v341_v13  ;;  %7104 = vmatmul.mubr.msk.f32.gmra.mrb[12].mxu1 %vm445_vm2, %v341_v13 }
  0xfc   :  { %v346_v20 = vadd.f32 %v8415_v45, %v345_v19 }
  0xfe   :  { %v7055_v21 = vpop.f32.mrb[16].mxu0  ;;  %7162 = vmatprep.mubr.msk.f32.mxu0 %vm445_vm2, %v346_v20  ;;  %7106 = vmatprep.mubr.msk.f32.mxu1 %vm445_vm2, %v346_v20  ;;  %v8477_v22 = vpack.c.bf16 %v351_v18, %v346_v20 }
  0xff   :  { %v361_v23 = vadd.f32 %v7055_v21, %v8415_v45  ;;  %v355_v24 = vpop.f32.mrb[17].mxu0  ;;  %7163 = vmatmul.mubr.msk.f32.gmra.mrb[46].mxu0 %vm445_vm2, %v351_v18  ;;  %7107 = vmatmul.mubr.msk.f32.gmra.mrb[14].mxu1 %vm445_vm2, %v351_v18 }
 0x100   :  { %v356_v25 = vadd.f32 %v8415_v45, %v355_v24 }
 0x102   :  { %v7058_v26 = vpop.f32.mrb[18].mxu0  ;;  %7165 = vmatprep.mubr.msk.f32.mxu0 %vm445_vm2, %v356_v25  ;;  %7109 = vmatprep.mubr.msk.f32.mxu1 %vm445_vm2, %v356_v25  ;;  %v8485_v27 = vpack.c.bf16 %v361_v23, %v356_v25 }
 0x103   :  { %v371_v28 = vadd.f32 %v7058_v26, %v8415_v45  ;;  %v365_v29 = vpop.f32.mrb[19].mxu0  ;;  %7166 = vmatmul.mubr.msk.f32.gmra.mrb[48].mxu0 %vm445_vm2, %v361_v23  ;;  %7110 = vmatmul.mubr.msk.f32.gmra.mrb[16].mxu1 %vm445_vm2, %v361_v23 }
 0x104   :  { %v366_v30 = vadd.f32 %v8415_v45, %v365_v29 }
 0x106   :  { %v7061_v31 = vpop.f32.mrb[20].mxu0  ;;  %7168 = vmatprep.mubr.msk.f32.mxu0 %vm445_vm2, %v366_v30  ;;  %7112 = vmatprep.mubr.msk.f32.mxu1 %vm445_vm2, %v366_v30  ;;  %v8493_v32 = vpack.c.bf16 %v371_v28, %v366_v30 }
 0x107   :  { %v381_v33 = vadd.f32 %v7061_v31, %v8415_v45  ;;  %v375_v34 = vpop.f32.mrb[21].mxu0  ;;  %7169 = vmatmul.mubr.msk.f32.gmra.mrb[50].mxu0 %vm445_vm2, %v371_v28  ;;  %7113 = vmatmul.mubr.msk.f32.gmra.mrb[18].mxu1 %vm445_vm2, %v371_v28 }
 0x108   :  { %v376_v35 = vadd.f32 %v8415_v45, %v375_v34 }
 0x10a   :  { %v7064_v36 = vpop.f32.mrb[22].mxu0  ;;  %7171 = vmatprep.mubr.msk.f32.mxu0 %vm445_vm2, %v376_v35  ;;  %7115 = vmatprep.mubr.msk.f32.mxu1 %vm445_vm2, %v376_v35  ;;  %v8501_v37 = vpack.c.bf16 %v381_v33, %v376_v35 }
 0x10b   :  { %v391_v38 = vadd.f32 %v7064_v36, %v8415_v45  ;;  %v385_v39 = vpop.f32.mrb[23].mxu0  ;;  %7172 = vmatmul.mubr.msk.f32.gmra.mrb[52].mxu0 %vm445_vm2, %v381_v33  ;;  %7116 = vmatmul.mubr.msk.f32.gmra.mrb[20].mxu1 %vm445_vm2, %v381_v33 }
 0x10c   :  { %v386_v40 = vadd.f32 %v8415_v45, %v385_v39 }
 0x10e   :  { %v7067_v41 = vpop.f32.mrb[24].mxu0  ;;  %7174 = vmatprep.mubr.msk.f32.mxu0 %vm445_vm2, %v386_v40  ;;  %7118 = vmatprep.mubr.msk.f32.mxu1 %vm445_vm2, %v386_v40  ;;  %v8509_v42 = vpack.c.bf16 %v391_v38, %v386_v40 }
 0x10f   :  { %v401_v43 = vadd.f32 %v7067_v41, %v8415_v45  ;;  %v395_v44 = vpop.f32.mrb[25].mxu0  ;;  %7175 = vmatmul.mubr.msk.f32.gmra.mrb[54].mxu0 %vm445_vm2, %v391_v38  ;;  %7119 = vmatmul.mubr.msk.f32.gmra.mrb[22].mxu1 %vm445_vm2, %v391_v38 }
 0x110   :  { %v396_v46 = vadd.f32 %v8415_v45, %v395_v44 }
 0x112   :  { %v7070_v47 = vpop.f32.mrb[26].mxu0  ;;  %7177 = vmatprep.mubr.msk.f32.mxu0 %vm445_vm2, %v396_v46  ;;  %7121 = vmatprep.mubr.msk.f32.mxu1 %vm445_vm2, %v396_v46  ;;  %v8517_v48 = vpack.c.bf16 %v401_v43, %v396_v46 }
 0x113   :  { %v411_v49 = vadd.f32 %v7070_v47, %v8415_v45  ;;  %v405_v50 = vpop.f32.mrb[27].mxu0  ;;  %7178 = vmatmul.mubr.msk.f32.gmra.mrb[56].mxu0 %vm445_vm2, %v401_v43  ;;  %7122 = vmatmul.mubr.msk.f32.gmra.mrb[24].mxu1 %vm445_vm2, %v401_v43 }
 0x114   :  { %v406_v52 = vadd.f32 %v8415_v45, %v405_v50 }
 0x116   :  { %v7073_v53 = vpop.f32.mrb[28].mxu0  ;;  %7180 = vmatprep.mubr.msk.f32.mxu0 %vm445_vm2, %v406_v52  ;;  %7124 = vmatprep.mubr.msk.f32.mxu1 %vm445_vm2, %v406_v52  ;;  %v8525_v54 = vpack.c.bf16 %v411_v49, %v406_v52 }
 0x117   :  { %v421_v55 = vadd.f32 %v7073_v53, %v8415_v45  ;;  %v415_v57 = vpop.f32.mrb[29].mxu0  ;;  %7181 = vmatmul.mubr.msk.f32.gmra.mrb[58].mxu0 %vm445_vm2, %v411_v49  ;;  %7125 = vmatmul.mubr.msk.f32.gmra.mrb[26].mxu1 %vm445_vm2, %v411_v49 }
 0x118   :  { %v416_v58 = vadd.f32 %v8415_v45, %v415_v57 }
 0x11a   :  { %7183 = vmatprep.mubr.msk.f32.mxu0 %vm445_vm2, %v416_v58  ;;  %7127 = vmatprep.mubr.msk.f32.mxu1 %vm445_vm2, %v416_v58  ;;  %v7076_v59 = vpop.f32.mrb[30].mxu0  ;;  %v8533_v60 = vpack.c.bf16 %v421_v55, %v416_v58 }
 0x11b   :  { %7184 = vmatmul.mubr.msk.f32.gmra.mrb[60].mxu0 %vm445_vm2, %v421_v55  ;;  %7128 = vmatmul.mubr.msk.f32.gmra.mrb[28].mxu1 %vm445_vm2, %v421_v55  ;;  %v431_v62 = vadd.f32 %v7076_v59, %v8415_v45  ;;  %v425_v63 = vpop.f32.mrb[31].mxu0 }
 0x11c   :  { %v426_v0 = vadd.f32 %v8415_v45, %v425_v63 }
 0x11e   :  { %7186 = vmatprep.mubr.msk.f32.mxu0 %vm445_vm2, %v426_v0  ;;  %7130 = vmatprep.mubr.msk.f32.mxu1 %vm445_vm2, %v426_v0  ;;  %v8541_v1 = vpack.c.bf16 %v431_v62, %v426_v0 }
 0x11f   :  { %7187 = vmatmul.mubr.msk.f32.gmra.mrb[62].mxu0 %vm445_vm2, %v431_v62  ;;  %7131 = vmatmul.mubr.msk.f32.gmra.mrb[30].mxu1 %vm445_vm2, %v431_v62 }
 0x1b6   :  { %v7087_v45 = vpop.f32.mrb[0].mxu1  ;;  %v7143_v5 = vpop.f32.mrb[32].mxu0 }
 0x1b7   :  { %v850_v6 = vadd.f32 %v7143_v5, %v8548_v3  ;;  %v608_v8 = vpop.f32.mrb[1].mxu1  ;;  %v844_v9 = vpop.f32.mrb[33].mxu0  ;;  %v614_v31 = vadd.f32 %v7087_v45, %v8553_v4 }
 0x1b8   :  { %v609_v10 = vadd.f32 %v8553_v4, %v608_v8  ;;  %v845_v11 = vadd.f32 %v8548_v3, %v844_v9 }
 0x1ba   :  { %v7717_v14 = vpack.c.bf16 %v850_v6, %v845_v11  ;;  %7193 = vmatprep.mubr.msk.f32.mxu1 %vm445_vm2, %v609_v10  ;;  %v7146_v15 = vpop.f32.mrb[34].mxu0  ;;  %v7090_v16 = vpop.f32.mrb[2].mxu1 }
 0x1bb   :  { %v860_v18 = vadd.f32 %v7146_v15, %v8548_v3  ;;  %v854_v19 = vpop.f32.mrb[35].mxu0  ;;  %v618_v20 = vpop.f32.mrb[3].mxu1  ;;  %v624_v53 = vadd.f32 %v7090_v16, %v8553_v4 }
 0x1bc   :  { %7719 = vmatprep.subr.msk.bf16.mxu1 %vm8560_vm3, %v7717_v14  ;;  %v855_v21 = vadd.f32 %v8548_v3, %v854_v19  ;;  %v619_v36 = vadd.f32 %v8553_v4, %v618_v20 }
 0x1bd   :  { %7722 = vmatpush3.bf16.xpose.msk.msra.mxu1 %vm8560_vm3, %v7717_v14 }
 0x1be   :  { %v7723_v23 = vpack.c.bf16 %v860_v18, %v855_v21  ;;  %v7149_v24 = vpop.f32.mrb[36].mxu0  ;;  %v7093_v25 = vpop.f32.mrb[4].mxu1 }
 0x1bf   :  { %v870_v26 = vadd.f32 %v7149_v24, %v8548_v3  ;;  %v864_v28 = vpop.f32.mrb[37].mxu0  ;;  %v628_v29 = vpop.f32.mrb[5].mxu1  ;;  %v634_v15 = vadd.f32 %v7093_v25, %v8553_v4 }
 0x1c0   :  { %7725 = vmatprep.subr.msk.bf16.mxu1 %vm8560_vm3, %v7723_v23  ;;  %v865_v30 = vadd.f32 %v8548_v3, %v864_v28  ;;  %v629_v59 = vadd.f32 %v8553_v4, %v628_v29 }
 0x1c2   :  { %v7729_v33 = vpack.c.bf16 %v870_v26, %v865_v30  ;;  %v7152_v34 = vpop.f32.mrb[38].mxu0  ;;  %v7096_v35 = vpop.f32.mrb[6].mxu1 }
 0x1c3   :  { %v880_v38 = vadd.f32 %v7152_v34, %v8548_v3  ;;  %v874_v39 = vpop.f32.mrb[39].mxu0  ;;  %v638_v40 = vpop.f32.mrb[7].mxu1 }
 0x1c4   :  { %7194 = vmatmul.mubr.msk.f32.vlgmr.msra.gmra.mrb[32].mxu1 %vm445_vm2, %v614_v31  ;;  %v875_v41 = vadd.f32 %v8548_v3, %v874_v39  ;;  %v644_v39 = vadd.f32 %v7096_v35, %v8553_v4 }
 0x1c5   :  { %7728 = vmatpush3.bf16.xpose.msk.msra.mxu1 %vm8560_vm3, %v7723_v23  ;;  %7200 = vmatprep.mubr.msk.f32.mxu1 %vm445_vm2, %v619_v36  ;;  %v639_v23 = vadd.f32 %v8553_v4, %v638_v40 }
 0x1c6   :  { %7731 = vmatprep.subr.msk.bf16.mxu1 %vm8560_vm3, %v7729_v33  ;;  %v7735_v43 = vpack.c.bf16 %v880_v38, %v875_v41  ;;  %v7155_v44 = vpop.f32.mrb[40].mxu0  ;;  %v8585_v46 = vpop.f32.mrb[8].mxu1 }
 0x1c7   :  { %v890_v47 = vadd.f32 %v7155_v44, %v8548_v3  ;;  %v884_v49 = vpop.f32.mrb[41].mxu0  ;;  %v648_v50 = vpop.f32.mrb[9].mxu1 }
 0x1c8   :  { %v885_v52 = vadd.f32 %v8548_v3, %v884_v49 }
 0x1ca   :  { %v7741_v55 = vpack.c.bf16 %v890_v47, %v885_v52  ;;  %v7158_v57 = vpop.f32.mrb[42].mxu0  ;;  %v8590_v58 = vpop.f32.mrb[10].mxu1 }
 0x1cb   :  { %v900_v62 = vadd.f32 %v7158_v57, %v8548_v3  ;;  %v894_v63 = vpop.f32.mrb[43].mxu0  ;;  %v8594_v0 = vpop.f32.mrb[11].mxu1 }
 0x1cc   :  { %7201 = vmatmul.mubr.msk.f32.vlgmr.msra.gmra.mrb[34].mxu1 %vm445_vm2, %v624_v53  ;;  %v895_v45 = vadd.f32 %v8548_v3, %v894_v63  ;;  %v649_v53 = vadd.f32 %v8553_v4, %v648_v50 }
 0x1cd   :  { %7734 = vmatpush3.bf16.xpose.msk.msra.mxu1 %vm8560_vm3, %v7729_v33  ;;  %7207 = vmatprep.mubr.msk.f32.mxu1 %vm445_vm2, %v629_v59 }
 0x1ce   :  { %v8601_v5 = vpack.c.bf16 %v900_v62, %v895_v45  ;;  %v7161_v6 = vpop.f32.mrb[44].mxu0  ;;  %7737 = vmatprep.subr.msk.bf16.mxu1 %vm8560_vm3, %v7735_v43  ;;  %v8605_v8 = vpop.f32.mrb[12].mxu1 }
 0x1cf   :  { %v910_v9 = vadd.f32 %v7161_v6, %v8548_v3  ;;  %v904_v10 = vpop.f32.mrb[45].mxu0  ;;  %v8608_v11 = vpop.f32.mrb[13].mxu1 }
 0x1d0   :  { %v905_v14 = vadd.f32 %v8548_v3, %v904_v10  ;;  %v654_v10 = vadd.f32 %v8585_v46, %v8553_v4 }
 0x1d2   :  { %v8612_v16 = vpack.c.bf16 %v910_v9, %v905_v14  ;;  %v7164_v18 = vpop.f32.mrb[46].mxu0  ;;  %v7108_v19 = vpop.f32.mrb[14].mxu1 }
 0x1d3   :  { %v920_v20 = vadd.f32 %v7164_v18, %v8548_v3  ;;  %v914_v21 = vpop.f32.mrb[47].mxu0  ;;  %v8617_v24 = vadd.f32 %v7108_v19, %v8553_v4  ;;  %v8619_v26 = vpop.f32.mrb[15].mxu1 }
 0x1d4   :  { %7208 = vmatmul.mubr.msk.f32.vlgmr.msra.gmra.mrb[36].mxu1 %vm445_vm2, %v634_v15  ;;  %v915_v28 = vadd.f32 %v8548_v3, %v914_v21 }
 0x1d5   :  { %7740 = vmatpush3.bf16.xpose.msk.msra.mxu1 %vm8560_vm3, %v7735_v43  ;;  %7214 = vmatprep.mubr.msk.f32.mxu1 %vm445_vm2, %v639_v23 }
 0x1d6   :  { %v8626_v25 = vpack.c.bf16 %v920_v20, %v915_v28  ;;  %v7167_v29 = vpop.f32.mrb[48].mxu0  ;;  %7743 = vmatprep.subr.msk.bf16.mxu1 %vm8560_vm3, %v7741_v55  ;;  %v7111_v30 = vpop.f32.mrb[16].mxu1 }
 0x1d7   :  { %v930_v31 = vadd.f32 %v7167_v29, %v8548_v3  ;;  %v924_v33 = vpop.f32.mrb[49].mxu0  ;;  %v688_v34 = vpop.f32.mrb[17].mxu1  ;;  %v659_v29 = vadd.f32 %v8553_v4, %v8594_v0 }
 0x1d8   :  { %v925_v36 = vadd.f32 %v8548_v3, %v924_v33  ;;  %v689_v38 = vadd.f32 %v8553_v4, %v688_v34 }
 0x1da   :  { %v7765_v40 = vpack.c.bf16 %v930_v31, %v925_v36  ;;  %v7170_v41 = vpop.f32.mrb[50].mxu0  ;;  %7249 = vmatprep.mubr.msk.f32.mxu0 %vm445_vm2, %v689_v38  ;;  %v7114_v43 = vpop.f32.mrb[18].mxu1 }
 0x1db   :  { %v940_v44 = vadd.f32 %v7170_v41, %v8548_v3  ;;  %v934_v47 = vpop.f32.mrb[51].mxu0  ;;  %v8637_v49 = vadd.f32 %v7114_v43, %v8553_v4  ;;  %v698_v52 = vpop.f32.mrb[19].mxu1 }
 0x1dc   :  { %7215 = vmatmul.mubr.msk.f32.vlgmr.msra.gmra.mrb[38].mxu1 %vm445_vm2, %v644_v39  ;;  %7767 = vmatprep.subr.msk.bf16.mxu0 %vm8560_vm3, %v7765_v40  ;;  %v935_v35 = vadd.f32 %v8548_v3, %v934_v47  ;;  %v8645_v57 = vadd.f32 %v8553_v4, %v698_v52 }
 0x1dd   :  { %7746 = vmatpush3.bf16.xpose.msk.msra.mxu1 %vm8560_vm3, %v7741_v55  ;;  %7770 = vmatpush3.bf16.xpose.msk.msra.mxu0 %vm8560_vm3, %v7765_v40  ;;  %v694_v55 = vadd.f32 %v7111_v30, %v8553_v4  ;;  %v664_v40 = vadd.f32 %v8590_v58, %v8553_v4 }
 0x1de   :  { %v8651_v59 = vpack.c.bf16 %v940_v44, %v935_v35  ;;  %v7173_v62 = vpop.f32.mrb[52].mxu0  ;;  %7221 = vmatprep.mubr.msk.f32.mxu1 %vm445_vm2, %v649_v53  ;;  %7749 = vmatprep.subr.msk.bf16.mxu1 %vm8560_vm3, %v8601_v5  ;;  %v7117_v50 = vpop.f32.mrb[20].mxu1 }
 0x1df   :  { %v950_v63 = vadd.f32 %v7173_v62, %v8548_v3  ;;  %v944_v45 = vpop.f32.mrb[53].mxu0  ;;  %v708_v6 = vpop.f32.mrb[21].mxu1  ;;  %v714_v39 = vadd.f32 %v7117_v50, %v8553_v4 }
 0x1e0   :  { %v945_v9 = vadd.f32 %v8548_v3, %v944_v45  ;;  %v709_v21 = vadd.f32 %v8553_v4, %v708_v6 }
 0x1e2   :  { %v7777_v14 = vpack.c.bf16 %v950_v63, %v945_v9  ;;  %v7176_v15 = vpop.f32.mrb[54].mxu0  ;;  %v7120_v18 = vpop.f32.mrb[22].mxu1  ;;  %v669_v63 = vadd.f32 %v8553_v4, %v8608_v11 }
 0x1e3   :  { %v960_v19 = vadd.f32 %v7176_v15, %v8548_v3  ;;  %v954_v20 = vpop.f32.mrb[55].mxu0  ;;  %v8665_v23 = vadd.f32 %v7120_v18, %v8553_v4  ;;  %v718_v28 = vpop.f32.mrb[23].mxu1  ;;  %v674_v18 = vadd.f32 %v8605_v8, %v8553_v4 }
 0x1e4   :  { %7779 = vmatprep.subr.msk.bf16.mxu0 %vm8560_vm3, %v7777_v14  ;;  %v955_v46 = vadd.f32 %v8548_v3, %v954_v20  ;;  %7222 = vmatmul.mubr.msk.f32.vlgmr.msra.gmra.mrb[40].mxu1 %vm445_vm2, %v654_v10  ;;  %v8674_v30 = vadd.f32 %v8553_v4, %v718_v28  ;;  %v679_v28 = vadd.f32 %v8553_v4, %v8619_v26 }
 0x1e5   :  { %7752 = vmatpush3.bf16.xpose.msk.msra.mxu1 %vm8560_vm3, %v8601_v5  ;;  %7250 = vmatmul.mubr.msk.f32.vlgmr.msra.gmra.mrb[64].mxu0 %vm445_vm2, %v694_v55 }
 0x1e6   :  { %v8680_v31 = vpack.c.bf16 %v960_v19, %v955_v46  ;;  %7782 = vmatpush3.bf16.xpose.msk.msra.mxu0 %vm8560_vm3, %v7777_v14  ;;  %v7179_v0 = vpop.f32.mrb[56].mxu0  ;;  %7228 = vmatprep.mubr.msk.f32.mxu1 %vm445_vm2, %v659_v29  ;;  %v7123_v33 = vpop.f32.mrb[24].mxu1 }
 0x1e7   :  { %v970_v34 = vadd.f32 %v7179_v0, %v8548_v3  ;;  %v964_v36 = vpop.f32.mrb[57].mxu0  ;;  %7755 = vmatprep.subr.msk.bf16.mxu1 %vm8560_vm3, %v8612_v16  ;;  %7263 = vmatprep.mubr.msk.f32.mxu0 %vm445_vm2, %v709_v21  ;;  %v728_v5 = vpop.f32.mrb[25].mxu1  ;;  %v734_v15 = vadd.f32 %v7123_v33, %v8553_v4 }
 0x1e8   :  { %v965_v38 = vadd.f32 %v8548_v3, %v964_v36  ;;  %v729_v53 = vadd.f32 %v8553_v4, %v728_v5 }
 0x1ea   :  { %v7789_v41 = vpack.c.bf16 %v970_v34, %v965_v38  ;;  %v7182_v43 = vpop.f32.mrb[58].mxu0  ;;  %v7126_v44 = vpop.f32.mrb[26].mxu1 }
 0x1eb   :  { %v980_v47 = vadd.f32 %v7182_v43, %v8548_v3  ;;  %v974_v52 = vpop.f32.mrb[59].mxu0  ;;  %v744_v35 = vadd.f32 %v7126_v44, %v8553_v4  ;;  %v738_v62 = vpop.f32.mrb[27].mxu1 }
 0x1ec   :  { %7229 = vmatmul.mubr.msk.f32.vlgmr.msra.gmra.mrb[42].mxu1 %vm445_vm2, %v664_v40  ;;  %7791 = vmatprep.subr.msk.bf16.mxu0 %vm8560_vm3, %v7789_v41  ;;  %v975_v58 = vadd.f32 %v8548_v3, %v974_v52  ;;  %v739_v50 = vadd.f32 %v8553_v4, %v738_v62 }
 0x1ed   :  { %7758 = vmatpush3.bf16.xpose.msk.msra.mxu1 %vm8560_vm3, %v8612_v16  ;;  %7264 = vmatmul.mubr.msk.f32.vlgmr.msra.gmra.mrb[66].mxu0 %vm445_vm2, %v714_v39 }
 0x1ee   :  { %v7795_v45 = vpack.c.bf16 %v980_v47, %v975_v58  ;;  %7794 = vmatpush3.bf16.xpose.msk.msra.mxu0 %vm8560_vm3, %v7789_v41  ;;  %v7185_v11 = vpop.f32.mrb[60].mxu0  ;;  %7235 = vmatprep.mubr.msk.f32.mxu1 %vm445_vm2, %v669_v63  ;;  %v7129_v6 = vpop.f32.mrb[28].mxu1 }
 0x1ef   :  { %v990_v9 = vadd.f32 %v7185_v11, %v8548_v3  ;;  %v984_v55 = vpop.f32.mrb[61].mxu0  ;;  %7761 = vmatprep.subr.msk.bf16.mxu1 %vm8560_vm3, %v8626_v25  ;;  %7277 = vmatprep.mubr.msk.f32.mxu0 %vm445_vm2, %v729_v53  ;;  %v754_v16 = vadd.f32 %v7129_v6, %v8553_v4  ;;  %v748_v10 = vpop.f32.mrb[29].mxu1 }
 0x1f0   :  { %v985_v14 = vadd.f32 %v8548_v3, %v984_v55  ;;  %v749_v33 = vadd.f32 %v8553_v4, %v748_v10 }
 0x1f2   :  { %v7801_v19 = vpack.c.bf16 %v990_v9, %v985_v14  ;;  %v7188_v20 = vpop.f32.mrb[62].mxu0  ;;  %v7132_v21 = vpop.f32.mrb[30].mxu1 }
 0x1f3   :  { %v1000_v29 = vadd.f32 %v7188_v20, %v8548_v3  ;;  %v994_v46 = vpop.f32.mrb[63].mxu0  ;;  %v764_v0 = vadd.f32 %v7132_v21, %v8553_v4  ;;  %v758_v34 = vpop.f32.mrb[31].mxu1 }
 0x1f4   :  { %7803 = vmatprep.subr.msk.bf16.mxu0 %vm8560_vm3, %v7801_v19  ;;  %7236 = vmatmul.mubr.msk.f32.vlgmr.msra.gmra.mrb[44].mxu1 %vm445_vm2, %v674_v18  ;;  %v995_v8 = vadd.f32 %v8548_v3, %v994_v46  ;;  %v759_v36 = vadd.f32 %v8553_v4, %v758_v34 }
 0x1f5   :  { %7764 = vmatpush3.bf16.xpose.msk.msra.mxu1 %vm8560_vm3, %v8626_v25  ;;  %7278 = vmatmul.mubr.msk.f32.vlgmr.msra.gmra.mrb[68].mxu0 %vm445_vm2, %v734_v15 }
 0x1f6   :  { %7806 = vmatpush3.bf16.xpose.msk.msra.mxu0 %vm8560_vm3, %v7801_v19  ;;  %7242 = vmatprep.mubr.msk.f32.mxu1 %vm445_vm2, %v679_v28  ;;  %v7807_v26 = vpack.c.bf16 %v1000_v29, %v995_v8 }
 0x1f7   :  { %7814 = vmatprep.subr.bf16.mxu0 %v8421_v51  ;;  %7773 = vmatprep.subr.msk.bf16.mxu1 %vm8560_vm3, %v8651_v59 }
 0x1f8   :  { %7291 = vmatprep.mubr.msk.f32.mxu0 %vm445_vm2, %v749_v33 }
 0x1fc   :  { %7243 = vmatmul.mubr.msk.f32.vlgmr.msra.gmra.mrb[46].mxu1 %vm445_vm2, %v8617_v24 }
 0x1fd   :  { %7776 = vmatpush3.bf16.xpose.msk.msra.mxu1 %vm8560_vm3, %v8651_v59  ;;  %7292 = vmatmul.mubr.msk.f32.vlgmr.msra.gmra.mrb[70].mxu0 %vm445_vm2, %v754_v16 }
 0x1fe   :  { %7816 = vmatpush3.bf16.msra.mxu0 %v8421_v51  ;;  %7256 = vmatprep.mubr.msk.f32.mxu1 %vm445_vm2, %v8645_v57 }
 0x1ff   :  { %7818 = vmatprep.subr.bf16.mxu0 %v8429_v56  ;;  %7785 = vmatprep.subr.msk.bf16.mxu1 %vm8560_vm3, %v8680_v31 }
 0x204   :  { %7257 = vmatmul.mubr.msk.f32.vlgmr.msra.gmra.mrb[48].mxu1 %vm445_vm2, %v8637_v49 }
 0x205   :  { %7788 = vmatpush3.bf16.xpose.msk.msra.mxu1 %vm8560_vm3, %v8680_v31  ;;  %7270 = vmatprep.mubr.msk.f32.mxu1 %vm445_vm2, %v8674_v30 }
 0x206   :  { %7797 = vmatprep.subr.msk.bf16.mxu1 %vm8560_vm3, %v7795_v45 }
 0x20c   :  { %7271 = vmatmul.mubr.msk.f32.vlgmr.msra.gmra.mrb[50].mxu1 %vm445_vm2, %v8665_v23 }
 0x20d   :  { %7800 = vmatpush3.bf16.xpose.msk.msra.mxu1 %vm8560_vm3, %v7795_v45  ;;  %7284 = vmatprep.mubr.msk.f32.mxu1 %vm445_vm2, %v739_v50 }
 0x20e   :  { %7809 = vmatprep.subr.msk.bf16.mxu1 %vm8560_vm3, %v7807_v26 }
 0x214   :  { %7285 = vmatmul.mubr.msk.f32.vlgmr.msra.gmra.mrb[52].mxu1 %vm445_vm2, %v744_v35 }
 0x215   :  { %7812 = vmatpush3.bf16.xpose.msk.msra.mxu1 %vm8560_vm3, %v7807_v26  ;;  %7298 = vmatprep.mubr.msk.f32.mxu1 %vm445_vm2, %v759_v36 }
 0x216   :  { %7830 = vmatprep.subr.bf16.mxu1 %v8453_v7 }
 0x21c   :  { %7299 = vmatmul.mubr.msk.f32.vlgmr.msra.gmra.mrb[54].mxu1 %vm445_vm2, %v764_v0 }
 0x21d   :  { %7832 = vmatpush3.bf16.msra.mxu1 %v8453_v7 }
 0x21e   :  { %7838 = vmatprep.subr.bf16.mxu1 %v8469_v17 }
 0x297   :  { %v7195_v51 = vpop.f32.mrb[32].mxu1 }
 0x298   :  { %v1081_v3 = vpop.f32.mrb[33].mxu1  ;;  %v8782_v24 = vmul.f32 0.17677669, %v7195_v51 }
 0x299   :  { %v8780_v4 = vmul.f32 0.17677669, %v1081_v3 }
 0x29a   :  { %v2431_v49 = vsel %vm2427_vm4, %v8782_v24, -inf }
 0x29b   :  { %v2428_v13 = vsel %vm2427_vm4, %v8780_v4, -inf }
 0x29c   :  { %2429 = vmax.xlane.f32.xlu0 %v2428_v13 }
 0x29f   :  { %v7202_v25 = vpop.f32.mrb[34].mxu1 }
 0x2a0   :  { %2432 = vmax.xlane.f32.xlu0 %v2431_v49  ;;  %v1168_v57 = vpop.f32.mrb[35].mxu1  ;;  %v8790_v59 = vmul.f32 0.17677669, %v7202_v25 }
 0x2a1   :  { %v8788_v7 = vmul.f32 0.17677669, %v1168_v57 }
 0x2a2   :  { %v2437_v31 = vsel %vm2427_vm4, %v8790_v59, -inf }
 0x2a3   :  { %v2434_v23 = vsel %vm2427_vm4, %v8788_v7, -inf }
 0x2a4   :  { %2435 = vmax.xlane.f32.xlu1 %v2434_v23 }
 0x2a7   :  { %v7209_v30 = vpop.f32.mrb[36].mxu1 }
 0x2a8   :  { %v8796_v5 = vmul.f32 0.17677669, %v7209_v30  ;;  %2438 = vmax.xlane.f32.xlu1 %v2437_v31  ;;  %v1255_v38 = vpop.f32.mrb[37].mxu1 }
 0x2a9   :  { %v8798_v39 = vmul.f32 0.17677669, %v1255_v38 }
 0x2aa   :  { %v2443_v40 = vsel %vm2427_vm4, %v8796_v5, -inf }
 0x2ab   :  { %v2440_v41 = vsel %vm2427_vm4, %v8798_v39, -inf }
 0x2ac   :  { %2444 = vmax.xlane.f32.xlu1 %v2443_v40  ;;  %2441 = vmax.xlane.f32.xlu0 %v2440_v41 }
 0x2af   :  { %v7216_v43 = vpop.f32.mrb[38].mxu1 }
 0x2b0   :  { %v8804_v44 = vmul.f32 0.17677669, %v7216_v43  ;;  %v1342_v47 = vpop.f32.mrb[39].mxu1 }
 0x2b1   :  { %v8806_v52 = vmul.f32 0.17677669, %v1342_v47 }
 0x2b2   :  { %v2449_v53 = vsel %vm2427_vm4, %v8804_v44, -inf }
 0x2b3   :  { %2450 = vmax.xlane.f32.xlu1 %v2449_v53  ;;  %v2446_v35 = vsel %vm2427_vm4, %v8806_v52, -inf }
 0x2b4   :  { %2447 = vmax.xlane.f32.xlu0 %v2446_v35 }
 0x2b7   :  { %v7223_v62 = vpop.f32.mrb[40].mxu1 }
 0x2b8   :  { %v1429_v63 = vpop.f32.mrb[41].mxu1  ;;  %v8812_v58 = vpop.f32.mrb[64].mxu0  ;;  %v8840_v33 = vmul.f32 0.17677669, %v7223_v62 }
 0x2b9   :  { %v8814_v50 = vpop.f32.mrb[65].mxu0  ;;  %v8844_v36 = vmul.f32 0.17677669, %v1429_v63 }
 0x2ba   :  { %v2455_v3 = vsel %vm2427_vm4, %v8840_v33, -inf }
 0x2bb   :  { %v2452_v25 = vsel %vm2427_vm4, %v8844_v36, -inf }
 0x2bf   :  { %v7230_v45 = vpop.f32.mrb[42].mxu1 }
 0x2c0   :  { %v8816_v11 = vmul.f32 0.17677669, %v7230_v45  ;;  %v1516_v6 = vpop.f32.mrb[43].mxu1  ;;  %v8818_v9 = vpop.f32.mrb[66].mxu0 }
 0x2c1   :  { %v8820_v55 = vmul.f32 0.17677669, %v1516_v6  ;;  %v8822_v16 = vpop.f32.mrb[67].mxu0 }
 0x2c2   :  { %v2461_v10 = vsel %vm2427_vm4, %v8816_v11, -inf }
 0x2c3   :  { %2462 = vmax.xlane.f32.xlu1 %v2461_v10  ;;  %v2458_v14 = vsel %vm2427_vm4, %v8820_v55, -inf }
 0x2c4   :  { %2459 = vmax.xlane.f32.xlu0 %v2458_v14 }
 0x2c7   :  { %v7237_v15 = vpop.f32.mrb[44].mxu1 }
 0x2c8   :  { %v1603_v18 = vpop.f32.mrb[45].mxu1  ;;  %v8828_v19 = vpop.f32.mrb[68].mxu0  ;;  %v8848_v51 = vmul.f32 0.17677669, %v7237_v15 }
 0x2c9   :  { %v8830_v20 = vpop.f32.mrb[69].mxu0  ;;  %v8852_v13 = vmul.f32 0.17677669, %v1603_v18 }
 0x2ca   :  { %v2467_v23 = vsel %vm2427_vm4, %v8848_v51, -inf }
 0x2cb   :  { %v2464_v31 = vsel %vm2427_vm4, %v8852_v13, -inf }
 0x2cf   :  { %v7244_v21 = vpop.f32.mrb[46].mxu1 }
 0x2d0   :  { %v8832_v28 = vmul.f32 0.17677669, %v7244_v21  ;;  %v1690_v29 = vpop.f32.mrb[47].mxu1  ;;  %v8834_v46 = vpop.f32.mrb[70].mxu0 }
 0x2d1   :  { %v8836_v0 = vmul.f32 0.17677669, %v1690_v29  ;;  %v8838_v34 = vpop.f32.mrb[71].mxu0 }
 0x2d2   :  { %v2473_v8 = vsel %vm2427_vm4, %v8832_v28, -inf }
 0x2d3   :  { %2474 = vmax.xlane.f32.xlu1 %v2473_v8  ;;  %v2470_v26 = vsel %vm2427_vm4, %v8836_v0, -inf }
 0x2d4   :  { %2471 = vmax.xlane.f32.xlu0 %v2470_v26 }
 0x2d7   :  { %2456 = vmax.xlane.f32.xlu1 %v2455_v3  ;;  %v7258_v49 = vpop.f32.mrb[48].mxu1  ;;  %v8889_v3 = vmul.f32 0.17677669, %v8812_v58  ;;  %v8904_v58 = vmul.f32 0.17677669, %v8822_v16 }
 0x2d8   :  { %2453 = vmax.xlane.f32.xlu0 %v2452_v25  ;;  %v1864_v57 = vpop.f32.mrb[49].mxu1  ;;  %v8858_v30 = vmul.f32 0.17677669, %v7258_v49  ;;  %v8894_v49 = vmul.f32 0.17677669, %v8814_v50 }
 0x2d9   :  { %v8862_v38 = vmul.f32 0.17677669, %v1864_v57  ;;  %v8909_v50 = vmul.f32 0.17677669, %v8828_v19  ;;  %v8919_v16 = vmul.f32 0.17677669, %v8834_v46 }
 0x2da   :  { %v2485_v40 = vsel %vm2427_vm4, %v8858_v30, -inf  ;;  %v8924_v19 = vmul.f32 0.17677669, %v8838_v34 }
 0x2db   :  { %2468 = vmax.xlane.f32.xlu1 %v2467_v23  ;;  %v2482_v43 = vsel %vm2427_vm4, %v8862_v38, -inf  ;;  %v8899_v23 = vmul.f32 0.17677669, %v8818_v9  ;;  %v8914_v9 = vmul.f32 0.17677669, %v8830_v20  ;;  %v2515_v20 = vsel %vm2427_vm4, %v8919_v16, -inf }
 0x2dc   :  { %2465 = vmax.xlane.f32.xlu0 %v2464_v31  ;;  %v2479_v31 = vsel %vm2427_vm4, %v8889_v3, -inf }
 0x2df   :  { %2486 = vmax.xlane.f32.xlu1 %v2485_v40  ;;  %v7272_v41 = vpop.f32.mrb[50].mxu1  ;;  %v2476_v40 = vsel %vm2427_vm4, %v8894_v49, -inf }
 0x2e0   :  { %v8868_v47 = vmul.f32 0.17677669, %v7272_v41  ;;  %2483 = vmax.xlane.f32.xlu0 %v2482_v43  ;;  %v2038_v53 = vpop.f32.mrb[51].mxu1  ;;  %v2491_v41 = vsel %vm2427_vm4, %v8899_v23, -inf  ;;  %v2488_v43 = vsel %vm2427_vm4, %v8904_v58, -inf }
 0x2e1   :  { %v8870_v35 = vmul.f32 0.17677669, %v2038_v53  ;;  %v2503_v53 = vsel %vm2427_vm4, %v8909_v50, -inf }
 0x2e2   :  { %v2497_v62 = vsel %vm2427_vm4, %v8868_v47, -inf }
 0x2e3   :  { %2498 = vmax.xlane.f32.xlu1 %v2497_v62  ;;  %v2494_v63 = vsel %vm2427_vm4, %v8870_v35, -inf  ;;  %v2500_v62 = vsel %vm2427_vm4, %v8914_v9, -inf }
 0x2e4   :  { %2495 = vmax.xlane.f32.xlu0 %v2494_v63  ;;  %v2512_v63 = vsel %vm2427_vm4, %v8924_v19, -inf }
 0x2e7   :  { %v7286_v45 = vpop.f32.mrb[52].mxu1 }
 0x2e8   :  { %v8876_v6 = vmul.f32 0.17677669, %v7286_v45  ;;  %v2212_v10 = vpop.f32.mrb[53].mxu1 }
 0x2e9   :  { %v8878_v14 = vmul.f32 0.17677669, %v2212_v10 }
 0x2ea   :  { %v2509_v15 = vsel %vm2427_vm4, %v8876_v6, -inf }
 0x2eb   :  { %2510 = vmax.xlane.f32.xlu1 %v2509_v15  ;;  %v2506_v18 = vsel %vm2427_vm4, %v8878_v14, -inf }
 0x2ec   :  { %2507 = vmax.xlane.f32.xlu0 %v2506_v18 }
 0x2ef   :  { %v7300_v21 = vpop.f32.mrb[54].mxu1 }
 0x2f0   :  { %v8884_v29 = vmul.f32 0.17677669, %v7300_v21  ;;  %v2386_v8 = vpop.f32.mrb[55].mxu1 }
 0x2f1   :  { %v8886_v26 = vmul.f32 0.17677669, %v2386_v8 }
 0x2f2   :  { %v2521_v25 = vsel %vm2427_vm4, %v8884_v29, -inf }
 0x2f3   :  { %2522 = vmax.xlane.f32.xlu1 %v2521_v25  ;;  %v2518_v57 = vsel %vm2427_vm4, %v8886_v26, -inf }
 0x2f4   :  { %2519 = vmax.xlane.f32.xlu0 %v2518_v57 }
 0x2f7   :  { %2480 = vmax.xlane.f32.xlu1 %v2479_v31 }
 0x2f8   :  { %2477 = vmax.xlane.f32.xlu0 %v2476_v40 }
 0x2fb   :  { %2492 = vmax.xlane.f32.xlu1 %v2491_v41 }
 0x2fc   :  { %2489 = vmax.xlane.f32.xlu0 %v2488_v43 }
 0x2ff   :  { %2504 = vmax.xlane.f32.xlu1 %v2503_v53 }
 0x300   :  { %2501 = vmax.xlane.f32.xlu0 %v2500_v62 }
 0x303   :  { %2516 = vmax.xlane.f32.xlu1 %v2515_v20 }
 0x304   :  { %2513 = vmax.xlane.f32.xlu0 %v2512_v63 }
 0x329   :  { %v2430_v46 = vpop.xlane.xlu0 %2429 }
 0x32a   :  { %v2524_v45 = vsub.f32 %v8780_v4, %v2430_v46 }
 0x32c   :  { %v2556_v10 = vmul.f32 1.442695, %v2524_v45 }
 0x32d   :  { %v2433_v15 = vpop.xlane.xlu0 %2432 }
 0x32e   :  { %7943 = vpow2.f32 %v2556_v10  ;;  %v2525_v34 = vsub.f32 %v8782_v24, %v2433_v15 }
 0x330   :  { %v2558_v18 = vmul.f32 1.442695, %v2525_v34 }
 0x331   :  { %v2436_v21 = vpop.xlane.xlu1 %2435 }
 0x332   :  { %7945 = vpow2.f32 %v2558_v18  ;;  %v2526_v8 = vsub.f32 %v8788_v7, %v2436_v21 }
 0x334   :  { %v2560_v25 = vmul.f32 1.442695, %v2526_v8 }
 0x335   :  { %v2439_v57 = vpop.xlane.xlu1 %2438 }
 0x336   :  { %7947 = vpow2.f32 %v2560_v25  ;;  %v2527_v31 = vsub.f32 %v8790_v59, %v2439_v57 }
 0x338   :  { %v8936_v40 = vpop.eup %7943  ;;  %v2562_v41 = vmul.f32 1.442695, %v2527_v31 }
 0x339   :  { %v2445_v43 = vpop.xlane.xlu1 %2444  ;;  %v2442_v4 = vpop.xlane.xlu0 %2441  ;;  %v2620_v53 = vsel %vm2427_vm4, %v8936_v40, 0.0 }
 0x33a   :  { %7949 = vpow2.f32 %v2562_v41  ;;  %v2529_v24 = vsub.f32 %v8796_v5, %v2445_v43  ;;  %v2528_v62 = vsub.f32 %v8798_v39, %v2442_v4  ;;  %2621 = vadd.xlane.f32.xlu0 %v2620_v53 }
 0x33c   :  { %v8942_v7 = vpop.eup %7945  ;;  %v2566_v20 = vmul.f32 1.442695, %v2529_v24  ;;  %v2564_v63 = vmul.f32 1.442695, %v2528_v62 }
 0x33d   :  { %v2623_v59 = vsel %vm2427_vm4, %v8942_v7, 0.0 }
 0x33e   :  { %7951 = vpow2.f32 %v2566_v20  ;;  %2624 = vadd.xlane.f32.xlu1 %v2623_v59 }
 0x33f   :  { %7953 = vpow2.f32 %v2564_v63 }
 0x340   :  { %v8946_v46 = vpop.eup %7947  ;;  %v2451_v45 = vpop.xlane.xlu1 %2450 }
 0x341   :  { %v2531_v10 = vsub.f32 %v8804_v44, %v2451_v45  ;;  %v2448_v15 = vpop.xlane.xlu0 %2447  ;;  %v2626_v5 = vsel %vm2427_vm4, %v8946_v46, 0.0 }
 0x342   :  { %v2530_v39 = vsub.f32 %v8806_v52, %v2448_v15  ;;  %2627 = vadd.xlane.f32.xlu0 %v2626_v5 }
 0x343   :  { %v2570_v34 = vmul.f32 1.442695, %v2531_v10 }
 0x344   :  { %v8952_v18 = vpop.eup %7949  ;;  %v2568_v21 = vmul.f32 1.442695, %v2530_v39 }
 0x345   :  { %7955 = vpow2.f32 %v2570_v34  ;;  %v2629_v8 = vsel %vm2427_vm4, %v8952_v18, 0.0 }
 0x346   :  { %7957 = vpow2.f32 %v2568_v21  ;;  %2630 = vadd.xlane.f32.xlu1 %v2629_v8 }
 0x348   :  { %v8956_v25 = vpop.eup %7951 }
 0x349   :  { %v8958_v44 = vpop.eup %7953  ;;  %v2635_v57 = vsel %vm2427_vm4, %v8956_v25, 0.0 }
 0x34a   :  { %2636 = vadd.xlane.f32.xlu1 %v2635_v57  ;;  %v2632_v52 = vsel %vm2427_vm4, %v8958_v44, 0.0 }
 0x34b   :  { %2633 = vadd.xlane.f32.xlu0 %v2632_v52 }
 0x34f   :  { %v8964_v31 = vpop.eup %7955 }
 0x350   :  { %v8966_v41 = vpop.eup %7957  ;;  %v2463_v43 = vpop.xlane.xlu1 %2462  ;;  %v2641_v4 = vsel %vm2427_vm4, %v8964_v31, 0.0 }
 0x351   :  { %v2535_v53 = vsub.f32 %v8816_v11, %v2463_v43  ;;  %v2460_v24 = vpop.xlane.xlu0 %2459  ;;  %2642 = vadd.xlane.f32.xlu1 %v2641_v4  ;;  %v2638_v62 = vsel %vm2427_vm4, %v8966_v41, 0.0 }
 0x352   :  { %v2534_v20 = vsub.f32 %v8820_v55, %v2460_v24  ;;  %2639 = vadd.xlane.f32.xlu0 %v2638_v62 }
 0x353   :  { %v2578_v63 = vmul.f32 1.442695, %v2535_v53 }
 0x354   :  { %v2576_v59 = vmul.f32 1.442695, %v2534_v20 }
 0x355   :  { %7959 = vpow2.f32 %v2578_v63 }
 0x356   :  { %7961 = vpow2.f32 %v2576_v59 }
 0x35f   :  { %v8974_v45 = vpop.eup %7959 }
 0x360   :  { %v8976_v10 = vpop.eup %7961  ;;  %v2475_v15 = vpop.xlane.xlu1 %2474  ;;  %v2653_v11 = vsel %vm2427_vm4, %v8974_v45, 0.0 }
 0x361   :  { %v2539_v5 = vsub.f32 %v8832_v28, %v2475_v15  ;;  %v2472_v39 = vpop.xlane.xlu0 %2471  ;;  %2654 = vadd.xlane.f32.xlu1 %v2653_v11  ;;  %v2650_v55 = vsel %vm2427_vm4, %v8976_v10, 0.0 }
 0x362   :  { %v2538_v34 = vsub.f32 %v8836_v0, %v2472_v39  ;;  %2651 = vadd.xlane.f32.xlu0 %v2650_v55 }
 0x363   :  { %v2586_v21 = vmul.f32 1.442695, %v2539_v5 }
 0x364   :  { %v2584_v8 = vmul.f32 1.442695, %v2538_v34  ;;  %v2457_v57 = vpop.xlane.xlu1 %2456 }
 0x365   :  { %7963 = vpow2.f32 %v2586_v21  ;;  %v2533_v52 = vsub.f32 %v8840_v33, %v2457_v57  ;;  %v2454_v43 = vpop.xlane.xlu0 %2453 }
 0x366   :  { %7965 = vpow2.f32 %v2584_v8  ;;  %v2532_v4 = vsub.f32 %v8844_v36, %v2454_v43 }
 0x367   :  { %v2574_v53 = vmul.f32 1.442695, %v2533_v52 }
 0x368   :  { %v2572_v28 = vmul.f32 1.442695, %v2532_v4  ;;  %v2469_v24 = vpop.xlane.xlu1 %2468 }
 0x369   :  { %7967 = vpow2.f32 %v2574_v53  ;;  %v2537_v62 = vsub.f32 %v8848_v51, %v2469_v24  ;;  %v2466_v20 = vpop.xlane.xlu0 %2465 }
 0x36a   :  { %7969 = vpow2.f32 %v2572_v28  ;;  %v2536_v0 = vsub.f32 %v8852_v13, %v2466_v20 }
 0x36b   :  { %v2582_v63 = vmul.f32 1.442695, %v2537_v62 }
 0x36c   :  { %v2580_v59 = vmul.f32 1.442695, %v2536_v0  ;;  %v2487_v15 = vpop.xlane.xlu1 %2486 }
 0x36d   :  { %7971 = vpow2.f32 %v2582_v63  ;;  %v2543_v33 = vsub.f32 %v8858_v30, %v2487_v15  ;;  %v2484_v11 = vpop.xlane.xlu0 %2483 }
 0x36e   :  { %7973 = vpow2.f32 %v2580_v59  ;;  %v2542_v36 = vsub.f32 %v8862_v38, %v2484_v11 }
 0x36f   :  { %v8990_v5 = vpop.eup %7963  ;;  %v2594_v39 = vmul.f32 1.442695, %v2543_v33 }
 0x370   :  { %v8992_v55 = vpop.eup %7965  ;;  %v2592_v51 = vmul.f32 1.442695, %v2542_v36  ;;  %v2499_v34 = vpop.xlane.xlu1 %2498  ;;  %v2665_v13 = vsel %vm2427_vm4, %v8990_v5, 0.0 }
 0x371   :  { %7975 = vpow2.f32 %v2594_v39  ;;  %v2547_v21 = vsub.f32 %v8868_v47, %v2499_v34  ;;  %v2496_v8 = vpop.xlane.xlu0 %2495  ;;  %2666 = vadd.xlane.f32.xlu1 %v2665_v13  ;;  %v2662_v30 = vsel %vm2427_vm4, %v8992_v55, 0.0 }
 0x372   :  { %7977 = vpow2.f32 %v2592_v51  ;;  %v2546_v38 = vsub.f32 %v8870_v35, %v2496_v8  ;;  %2663 = vadd.xlane.f32.xlu0 %v2662_v30 }
 0x373   :  { %v9000_v57 = vpop.eup %7967  ;;  %v2602_v52 = vmul.f32 1.442695, %v2547_v21 }
 0x374   :  { %v9002_v43 = vpop.eup %7969  ;;  %v2600_v4 = vmul.f32 1.442695, %v2546_v38  ;;  %v2647_v53 = vsel %vm2427_vm4, %v9000_v57, 0.0 }
 0x375   :  { %7979 = vpow2.f32 %v2602_v52  ;;  %2648 = vadd.xlane.f32.xlu1 %v2647_v53  ;;  %v2644_v47 = vsel %vm2427_vm4, %v9002_v43, 0.0 }
 0x376   :  { %7981 = vpow2.f32 %v2600_v4  ;;  %2645 = vadd.xlane.f32.xlu0 %v2644_v47 }
 0x377   :  { %v9008_v28 = vpop.eup %7971 }
 0x378   :  { %v9010_v35 = vpop.eup %7973  ;;  %v2511_v24 = vpop.xlane.xlu1 %2510  ;;  %v2659_v62 = vsel %vm2427_vm4, %v9008_v28, 0.0 }
 0x379   :  { %v2551_v20 = vsub.f32 %v8876_v6, %v2511_v24  ;;  %v2508_v0 = vpop.xlane.xlu0 %2507  ;;  %2660 = vadd.xlane.f32.xlu1 %v2659_v62  ;;  %v2656_v63 = vsel %vm2427_vm4, %v9010_v35, 0.0 }
 0x37a   :  { %v2550_v59 = vsub.f32 %v8878_v14, %v2508_v0  ;;  %2657 = vadd.xlane.f32.xlu0 %v2656_v63 }
 0x37b   :  { %v9018_v15 = vpop.eup %7975  ;;  %v2610_v33 = vmul.f32 1.442695, %v2551_v20 }
 0x37c   :  { %v9020_v11 = vpop.eup %7977  ;;  %v2608_v36 = vmul.f32 1.442695, %v2550_v59  ;;  %v2677_v39 = vsel %vm2427_vm4, %v9018_v15, 0.0 }
 0x37d   :  { %7983 = vpow2.f32 %v2610_v33  ;;  %2678 = vadd.xlane.f32.xlu1 %v2677_v39  ;;  %v2674_v6 = vsel %vm2427_vm4, %v9020_v11, 0.0 }
 0x37e   :  { %7985 = vpow2.f32 %v2608_v36  ;;  %2675 = vadd.xlane.f32.xlu0 %v2674_v6 }
 0x37f   :  { %v9026_v51 = vpop.eup %7979 }
 0x380   :  { %v9028_v14 = vpop.eup %7981  ;;  %v2523_v34 = vpop.xlane.xlu1 %2522  ;;  %v2689_v13 = vsel %vm2427_vm4, %v9026_v51, 0.0 }
 0x381   :  { %v2555_v21 = vsub.f32 %v8884_v29, %v2523_v34  ;;  %2690 = vadd.xlane.f32.xlu1 %v2689_v13  ;;  %v2520_v8 = vpop.xlane.xlu0 %2519  ;;  %v2686_v30 = vsel %vm2427_vm4, %v9028_v14, 0.0 }
 0x382   :  { %v2554_v38 = vsub.f32 %v8886_v26, %v2520_v8  ;;  %2687 = vadd.xlane.f32.xlu0 %v2686_v30 }
 0x383   :  { %v2618_v52 = vmul.f32 1.442695, %v2555_v21 }
 0x384   :  { %v2616_v4 = vmul.f32 1.442695, %v2554_v38  ;;  %v2481_v53 = vpop.xlane.xlu1 %2480 }
 0x385   :  { %7987 = vpow2.f32 %v2618_v52  ;;  %v2541_v47 = vsub.f32 %v8889_v3, %v2481_v53  ;;  %v2478_v24 = vpop.xlane.xlu0 %2477 }
 0x386   :  { %7989 = vpow2.f32 %v2616_v4  ;;  %v2540_v62 = vsub.f32 %v8894_v49, %v2478_v24 }
 0x387   :  { %v9038_v20 = vpop.eup %7983  ;;  %v2590_v29 = vmul.f32 1.442695, %v2541_v47 }
 0x388   :  { %v9040_v0 = vpop.eup %7985  ;;  %v2588_v63 = vmul.f32 1.442695, %v2540_v62  ;;  %v2493_v59 = vpop.xlane.xlu1 %2492  ;;  %v2701_v26 = vsel %vm2427_vm4, %v9038_v20, 0.0 }
 0x389   :  { %7991 = vpow2.f32 %v2590_v29  ;;  %v2545_v33 = vsub.f32 %v8899_v23, %v2493_v59  ;;  %2702 = vadd.xlane.f32.xlu1 %v2701_v26  ;;  %v2490_v36 = vpop.xlane.xlu0 %2489  ;;  %v2698_v3 = vsel %vm2427_vm4, %v9040_v0, 0.0 }
 0x38a   :  { %7993 = vpow2.f32 %v2588_v63  ;;  %v2544_v49 = vsub.f32 %v8904_v58, %v2490_v36  ;;  %2699 = vadd.xlane.f32.xlu0 %v2698_v3 }
 0x38b   :  { %v2598_v39 = vmul.f32 1.442695, %v2545_v33 }
 0x38c   :  { %v2596_v6 = vmul.f32 1.442695, %v2544_v49  ;;  %v2505_v34 = vpop.xlane.xlu1 %2504 }
 0x38d   :  { %7995 = vpow2.f32 %v2598_v39  ;;  %v2549_v13 = vsub.f32 %v8909_v50, %v2505_v34  ;;  %v2502_v21 = vpop.xlane.xlu0 %2501 }
 0x38e   :  { %7997 = vpow2.f32 %v2596_v6  ;;  %v2548_v8 = vsub.f32 %v8914_v9, %v2502_v21 }
 0x38f   :  { %v9050_v23 = vpop.eup %7987  ;;  %v2606_v30 = vmul.f32 1.442695, %v2549_v13 }
 0x390   :  { %v9052_v38 = vpop.eup %7989  ;;  %v2604_v52 = vmul.f32 1.442695, %v2548_v8  ;;  %v2517_v4 = vpop.xlane.xlu1 %2516  ;;  %v2713_v58 = vsel %vm2427_vm4, %v9050_v23, 0.0 }
 0x391   :  { %7999 = vpow2.f32 %v2606_v30  ;;  %v2553_v53 = vsub.f32 %v8919_v16, %v2517_v4  ;;  %2714 = vadd.xlane.f32.xlu1 %v2713_v58  ;;  %v2514_v47 = vpop.xlane.xlu0 %2513  ;;  %v2710_v50 = vsel %vm2427_vm4, %v9052_v38, 0.0 }
 0x392   :  { %8001 = vpow2.f32 %v2604_v52  ;;  %v2552_v9 = vsub.f32 %v8924_v19, %v2514_v47  ;;  %2711 = vadd.xlane.f32.xlu0 %v2710_v50 }
 0x393   :  { %v9060_v24 = vpop.eup %7991  ;;  %v2614_v62 = vmul.f32 1.442695, %v2553_v53 }
 0x394   :  { %v9062_v29 = vpop.eup %7993  ;;  %v2612_v63 = vmul.f32 1.442695, %v2552_v9  ;;  %v2671_v59 = vsel %vm2427_vm4, %v9060_v24, 0.0 }
 0x395   :  { %8003 = vpow2.f32 %v2614_v62  ;;  %2672 = vadd.xlane.f32.xlu1 %v2671_v59  ;;  %v2668_v16 = vsel %vm2427_vm4, %v9062_v29, 0.0 }
 0x396   :  { %8005 = vpow2.f32 %v2612_v63  ;;  %2669 = vadd.xlane.f32.xlu0 %v2668_v16 }
 0x397   :  { %v9068_v26 = vpop.eup %7995 }
 0x398   :  { %v9070_v19 = vpop.eup %7997  ;;  %v2683_v33 = vsel %vm2427_vm4, %v9068_v26, 0.0 }
 0x399   :  { %2684 = vadd.xlane.f32.xlu1 %v2683_v33  ;;  %v2680_v36 = vsel %vm2427_vm4, %v9070_v19, 0.0 }
 0x39a   :  { %2681 = vadd.xlane.f32.xlu0 %v2680_v36 }
 0x39b   :  { %v9076_v3 = vpop.eup %7999 }
 0x39c   :  { %v9078_v49 = vpop.eup %8001  ;;  %v2695_v39 = vsel %vm2427_vm4, %v9076_v3, 0.0 }
 0x39d   :  { %2696 = vadd.xlane.f32.xlu1 %v2695_v39  ;;  %v2692_v6 = vsel %vm2427_vm4, %v9078_v49, 0.0 }
 0x39e   :  { %2693 = vadd.xlane.f32.xlu0 %v2692_v6 }
 0x39f   :  { %v9084_v34 = vpop.eup %8003 }
 0x3a0   :  { %v9086_v13 = vpop.eup %8005  ;;  %v2707_v21 = vsel %vm2427_vm4, %v9084_v34, 0.0 }
 0x3a1   :  { %2708 = vadd.xlane.f32.xlu1 %v2707_v21  ;;  %v2704_v8 = vsel %vm2427_vm4, %v9086_v13, 0.0 }
 0x3a2   :  { %2705 = vadd.xlane.f32.xlu0 %v2704_v8 }
 0x3c7   :  { %v2622_v30 = vpop.xlane.xlu0 %2621 }
 0x3c8   :  { %8007 = vrcp.f32 %v2622_v30 }
 0x3cb   :  { %v2625_v52 = vpop.xlane.xlu1 %2624 }
 0x3cc   :  { %8009 = vrcp.f32 %v2625_v52 }
 0x3cf   :  { %v2628_v4 = vpop.xlane.xlu0 %2627 }
 0x3d0   :  { %8011 = vrcp.f32 %v2628_v4 }
 0x3d2   :  { %v8008_v58 = vpop.eup %8007 }
 0x3d3   :  { %v2631_v53 = vpop.xlane.xlu1 %2630  ;;  %v2748_v47 = vmul.f32 %v8008_v58, %v8936_v40 }
 0x3d4   :  { %8013 = vrcp.f32 %v2631_v53 }
 0x3d5   :  { %7305 = vmatprep.mubr.msk.f32.mxu0 %vm2427_vm4, %v2748_v47 }
 0x3d6   :  { %v8010_v50 = vpop.eup %8009 }
 0x3d7   :  { %v2749_v9 = vmul.f32 %v8010_v50, %v8942_v7  ;;  %v2637_v62 = vpop.xlane.xlu1 %2636 }
 0x3d8   :  { %8015 = vrcp.f32 %v2637_v62  ;;  %v2634_v63 = vpop.xlane.xlu0 %2633 }
 0x3d9   :  { %8017 = vrcp.f32 %v2634_v63  ;;  %7306 = vmatmul.mubr.msk.f32.vlgmr.msra.gmra.mrb[72].mxu0 %vm2427_vm4, %v2749_v9 }
 0x3da   :  { %v8012_v59 = vpop.eup %8011  ;;  %7820 = vmatpush3.bf16.msra.mxu0 %v8429_v56 }
 0x3db   :  { %7822 = vmatprep.subr.bf16.mxu0 %v8437_v61  ;;  %v2750_v16 = vmul.f32 %v8012_v59, %v8946_v46 }
 0x3dd   :  { %7312 = vmatprep.mubr.msk.f32.mxu0 %vm2427_vm4, %v2750_v16 }
 0x3de   :  { %v8014_v40 = vpop.eup %8013  ;;  %v2643_v33 = vpop.xlane.xlu1 %2642 }
 0x3df   :  { %v2751_v36 = vmul.f32 %v8014_v40, %v8952_v18  ;;  %8019 = vrcp.f32 %v2643_v33  ;;  %v2640_v7 = vpop.xlane.xlu0 %2639 }
 0x3e0   :  { %8021 = vrcp.f32 %v2640_v7 }
 0x3e1   :  { %7313 = vmatmul.mubr.msk.f32.vlgmr.msra.gmra.mrb[74].mxu0 %vm2427_vm4, %v2751_v36 }
 0x3e2   :  { %v8016_v39 = vpop.eup %8015  ;;  %7824 = vmatpush3.bf16.msra.mxu0 %v8437_v61 }
 0x3e3   :  { %v8018_v6 = vpop.eup %8017  ;;  %v2753_v56 = vmul.f32 %v8016_v39, %v8956_v25  ;;  %7826 = vmatprep.subr.bf16.mxu0 %v8445_v2 }
 0x3e4   :  { %v2752_v46 = vmul.f32 %v8018_v6, %v8958_v44 }
 0x3e6   :  { %7319 = vmatprep.mubr.msk.f32.mxu0 %vm2427_vm4, %v2752_v46 }
 0x3e7   :  { %7320 = vmatmul.mubr.msk.f32.vlgmr.msra.gmra.mrb[76].mxu0 %vm2427_vm4, %v2753_v56 }
 0x3e8   :  { %7828 = vmatpush3.bf16.msra.mxu0 %v8445_v2 }
 0x3e9   :  { %v8020_v18 = vpop.eup %8019  ;;  %7834 = vmatprep.subr.bf16.mxu0 %v8461_v12 }
 0x3ea   :  { %v8022_v21 = vpop.eup %8021  ;;  %v2755_v61 = vmul.f32 %v8020_v18, %v8964_v31 }
 0x3eb   :  { %v2754_v8 = vmul.f32 %v8022_v21, %v8966_v41 }
 0x3ed   :  { %7326 = vmatprep.mubr.msk.f32.mxu0 %vm2427_vm4, %v2754_v8 }
 0x3ee   :  { %v2655_v25 = vpop.xlane.xlu1 %2654  ;;  %7327 = vmatmul.mubr.msk.f32.vlgmr.msra.gmra.mrb[78].mxu0 %vm2427_vm4, %v2755_v61 }
 0x3ef   :  { %8023 = vrcp.f32 %v2655_v25  ;;  %7836 = vmatpush3.bf16.msra.mxu0 %v8461_v12  ;;  %v2652_v44 = vpop.xlane.xlu0 %2651 }
 0x3f0   :  { %7842 = vmatprep.subr.bf16.mxu0 %v8477_v22  ;;  %8025 = vrcp.f32 %v2652_v44 }
 0x3f9   :  { %v8024_v2 = vpop.eup %8023 }
 0x3fa   :  { %v8026_v30 = vpop.eup %8025  ;;  %v2759_v41 = vmul.f32 %v8024_v2, %v8974_v45 }
 0x3fb   :  { %v2758_v52 = vmul.f32 %v8026_v30, %v8976_v10 }
 0x3fd   :  { %7340 = vmatprep.mubr.msk.f32.mxu0 %vm2427_vm4, %v2758_v52 }
 0x3fe   :  { %v2667_v31 = vpop.xlane.xlu1 %2666  ;;  %7341 = vmatmul.mubr.msk.f32.vlgmr.msra.gmra.mrb[80].mxu0 %vm2427_vm4, %v2759_v41 }
 0x3ff   :  { %8027 = vrcp.f32 %v2667_v31  ;;  %7844 = vmatpush3.bf16.msra.mxu0 %v8477_v22  ;;  %v2664_v4 = vpop.xlane.xlu0 %2663 }
 0x400   :  { %7850 = vmatprep.subr.bf16.mxu0 %v8493_v32  ;;  %8029 = vrcp.f32 %v2664_v4 }
 0x402   :  { %v2649_v12 = vpop.xlane.xlu1 %2648 }
 0x403   :  { %8031 = vrcp.f32 %v2649_v12  ;;  %v2646_v58 = vpop.xlane.xlu0 %2645 }
 0x404   :  { %8033 = vrcp.f32 %v2646_v58 }
 0x406   :  { %v2661_v53 = vpop.xlane.xlu1 %2660 }
 0x407   :  { %8035 = vrcp.f32 %v2661_v53  ;;  %v2658_v10 = vpop.xlane.xlu0 %2657 }
 0x408   :  { %8037 = vrcp.f32 %v2658_v10 }
 0x409   :  { %v8028_v45 = vpop.eup %8027 }
 0x40a   :  { %v8030_v47 = vpop.eup %8029  ;;  %v2679_v50 = vpop.xlane.xlu1 %2678  ;;  %v2763_v22 = vmul.f32 %v8028_v45, %v8990_v5 }
 0x40b   :  { %8039 = vrcp.f32 %v2679_v50  ;;  %v2676_v9 = vpop.xlane.xlu0 %2675  ;;  %v2762_v62 = vmul.f32 %v8030_v47, %v8992_v55 }
 0x40c   :  { %8041 = vrcp.f32 %v2676_v9 }
 0x40d   :  { %v8032_v63 = vpop.eup %8031  ;;  %7354 = vmatprep.mubr.msk.f32.mxu0 %vm2427_vm4, %v2762_v62 }
 0x40e   :  { %v8034_v59 = vpop.eup %8033  ;;  %v2691_v16 = vpop.xlane.xlu1 %2690  ;;  %7355 = vmatmul.mubr.msk.f32.vlgmr.msra.gmra.mrb[82].mxu0 %vm2427_vm4, %v2763_v22  ;;  %v2757_v36 = vmul.f32 %v8032_v63, %v9000_v57 }
 0x40f   :  { %8043 = vrcp.f32 %v2691_v16  ;;  %7852 = vmatpush3.bf16.msra.mxu0 %v8493_v32  ;;  %v2688_v40 = vpop.xlane.xlu0 %2687  ;;  %v2756_v33 = vmul.f32 %v8034_v59, %v9002_v43  ;;  %v4508_v16 = vld [vmem:[%s10001_s11] sm:$0xff] }
 0x410   :  { %7858 = vmatprep.subr.bf16.mxu0 %v8509_v42  ;;  %8045 = vrcp.f32 %v2688_v40  ;;  %v4509_v40 = vld [vmem:[%s10001_s11 + $0x8] sm:$0xff] }
 0x411   :  { %v8036_v5 = vpop.eup %8035  ;;  %7333 = vmatprep.mubr.msk.f32.mxu1 %vm2427_vm4, %v2756_v33  ;;  %v7893_v33 = vpack.c.bf16 %v4509_v40, %v4508_v16 }
 0x412   :  { %v8038_v55 = vpop.eup %8037  ;;  %7334 = vmatmul.mubr.msk.f32.vlgmr.msra.gmra.mrb[56].mxu1 %vm2427_vm4, %v2757_v36  ;;  %v2761_v32 = vmul.f32 %v8036_v5, %v9008_v28 }
 0x413   :  { %7840 = vmatpush3.bf16.msra.mxu1 %v8469_v17  ;;  %v2760_v7 = vmul.f32 %v8038_v55, %v9010_v35 }
 0x414   :  { %7846 = vmatprep.subr.bf16.mxu1 %v8485_v27 }
 0x415   :  { %v8040_v43 = vpop.eup %8039  ;;  %7347 = vmatprep.mubr.msk.f32.mxu1 %vm2427_vm4, %v2760_v7 }
 0x416   :  { %v8042_v57 = vpop.eup %8041  ;;  %v2703_v39 = vpop.xlane.xlu1 %2702  ;;  %7348 = vmatmul.mubr.msk.f32.vlgmr.msra.gmra.mrb[58].mxu1 %vm2427_vm4, %v2761_v32  ;;  %v2767_v17 = vmul.f32 %v8040_v43, %v9018_v15 }
 0x417   :  { %8047 = vrcp.f32 %v2703_v39  ;;  %7848 = vmatpush3.bf16.msra.mxu1 %v8485_v27  ;;  %v2700_v6 = vpop.xlane.xlu0 %2699  ;;  %v2766_v56 = vmul.f32 %v8042_v57, %v9020_v11 }
 0x418   :  { %7854 = vmatprep.subr.bf16.mxu1 %v8501_v37  ;;  %8049 = vrcp.f32 %v2700_v6 }
 0x419   :  { %v8044_v28 = vpop.eup %8043  ;;  %7368 = vmatprep.mubr.msk.f32.mxu0 %vm2427_vm4, %v2766_v56 }
 0x41a   :  { %v8046_v35 = vpop.eup %8045  ;;  %7369 = vmatmul.mubr.msk.f32.vlgmr.msra.gmra.mrb[84].mxu0 %vm2427_vm4, %v2767_v17  ;;  %v2771_v27 = vmul.f32 %v8044_v28, %v9026_v51  ;;  %v4189_v51 = vld [vmem:[%s9999_s9 + $0x8] sm:$0xff]  ;;  %v4510_v17 = vld [vmem:[%s10001_s11 + $0x10] sm:$0xff]  ;;  %v4511_v28 = vld [vmem:[%s10001_s11 + $0x18] sm:$0xff] }
 0x41b   :  { %7860 = vmatpush3.bf16.msra.mxu0 %v8509_v42  ;;  %v2770_v46 = vmul.f32 %v8046_v35, %v9028_v14  ;;  %v4188_v42 = vld [vmem:[%s9999_s9] sm:$0xff] }
 0x41c   :  { %7866 = vmatprep.subr.bf16.mxu0 %v8525_v54  ;;  %v7885_v25 = vpack.c.bf16 %v4189_v51, %v4188_v42 }
 0x41d   :  { %7382 = vmatprep.mubr.msk.f32.mxu0 %vm2427_vm4, %v2770_v46 }
 0x41e   :  { %v2715_v15 = vpop.xlane.xlu1 %2714  ;;  %7383 = vmatmul.mubr.msk.f32.vlgmr.msra.gmra.mrb[86].mxu0 %vm2427_vm4, %v2771_v27  ;;  %v7897_v27 = vpack.c.bf16 %v4511_v28, %v4510_v17 }
 0x41f   :  { %8051 = vrcp.f32 %v2715_v15  ;;  %7868 = vmatpush3.bf16.msra.mxu0 %v8525_v54  ;;  %v2712_v11 = vpop.xlane.xlu0 %2711 }
 0x420   :  { %7874 = vmatprep.subr.bf16.mxu0 %v8541_v1  ;;  %8053 = vrcp.f32 %v2712_v11 }
 0x421   :  { %v8048_v18 = vpop.eup %8047 }
 0x422   :  { %v8050_v14 = vpop.eup %8049  ;;  %v2673_v21 = vpop.xlane.xlu1 %2672  ;;  %v2775_v54 = vmul.f32 %v8048_v18, %v9038_v20  ;;  %v4191_v20 = vld [vmem:[%s9999_s9 + $0x18] sm:$0xff] }
 0x423   :  { %8055 = vrcp.f32 %v2673_v21  ;;  %v2670_v8 = vpop.xlane.xlu0 %2669  ;;  %v2774_v61 = vmul.f32 %v8050_v14, %v9040_v0  ;;  %v4190_v0 = vld [vmem:[%s9999_s9 + $0x10] sm:$0xff] }
 0x424   :  { %8057 = vrcp.f32 %v2670_v8  ;;  %v7889_v12 = vpack.c.bf16 %v4191_v20, %v4190_v0 }
 0x425   :  { %7396 = vmatprep.mubr.msk.f32.mxu0 %vm2427_vm4, %v2774_v61 }
 0x426   :  { %v2685_v44 = vpop.xlane.xlu1 %2684  ;;  %7397 = vmatmul.mubr.msk.f32.vlgmr.msra.gmra.mrb[88].mxu0 %vm2427_vm4, %v2775_v54 }
 0x427   :  { %8059 = vrcp.f32 %v2685_v44  ;;  %7876 = vmatpush3.bf16.msra.mxu0 %v8541_v1  ;;  %v2682_v2 = vpop.xlane.xlu0 %2681 }
 0x428   :  { %8061 = vrcp.f32 %v2682_v2  ;;  %7886 = vmatprep.subr.bf16.mxu0 %v7885_v25 }
 0x429   :  { %v8052_v30 = vpop.eup %8051 }
 0x42a   :  { %v8054_v52 = vpop.eup %8053  ;;  %v2697_v41 = vpop.xlane.xlu1 %2696  ;;  %v2779_v1 = vmul.f32 %v8052_v30, %v9050_v23 }
 0x42b   :  { %8063 = vrcp.f32 %v2697_v41  ;;  %v2694_v31 = vpop.xlane.xlu0 %2693  ;;  %v2778_v4 = vmul.f32 %v8054_v52, %v9052_v38 }
 0x42c   :  { %8065 = vrcp.f32 %v2694_v31 }
 0x42d   :  { %v8056_v58 = vpop.eup %8055  ;;  %7410 = vmatprep.mubr.msk.f32.mxu0 %vm2427_vm4, %v2778_v4 }
 0x42e   :  { %v8058_v53 = vpop.eup %8057  ;;  %v2709_v10 = vpop.xlane.xlu1 %2708  ;;  %7411 = vmatmul.mubr.msk.f32.vlgmr.msra.gmra.mrb[90].mxu0 %vm2427_vm4, %v2779_v1  ;;  %v2765_v50 = vmul.f32 %v8056_v58, %v9060_v24  ;;  %v4744_v1 = vlaneseq }
 0x42f   :  { %8067 = vrcp.f32 %v2709_v10  ;;  %v2706_v45 = vpop.xlane.xlu0 %2705  ;;  %v2764_v47 = vmul.f32 %v8058_v53, %v9062_v29  ;;  %7888 = vmatpush3.bf16.msra.mxu0 %v7885_v25 }
 0x430   :  { %8069 = vrcp.f32 %v2706_v45  ;;  %7890 = vmatprep.subr.bf16.mxu0 %v7889_v12  ;;  %v9307_v58 = vshrl.u32 %v4744_v1, 7 }
 0x431   :  { %v8060_v38 = vpop.eup %8059  ;;  %7361 = vmatprep.mubr.msk.f32.mxu1 %vm2427_vm4, %v2764_v47 }
 0x432   :  { %v8062_v23 = vpop.eup %8061  ;;  %7362 = vmatmul.mubr.msk.f32.vlgmr.msra.gmra.mrb[60].mxu1 %vm2427_vm4, %v2765_v50  ;;  %v2769_v62 = vmul.f32 %v8060_v38, %v9068_v26  ;;  %v4746_v10 = vadd.s32 8, %v9307_v58  ;;  %v4747_v50 = vadd.s32 16, %v9307_v58  ;;  %v4748_v38 = vadd.s32 24, %v9307_v58 }
 0x433   :  { %7856 = vmatpush3.bf16.msra.mxu1 %v8501_v37  ;;  %v2768_v9 = vmul.f32 %v8062_v23, %v9070_v19  ;;  %7892 = vmatpush3.bf16.msra.mxu0 %v7889_v12  ;;  %v9305_v12 = vand.u32 127, %v4744_v1  ;;  %v8143_v23 = vmov 1.0|1.0  }
 0x434   :  { %7862 = vmatprep.subr.bf16.mxu1 %v8517_v48 }
 0x435   :  { %v8064_v29 = vpop.eup %8063  ;;  %7375 = vmatprep.mubr.msk.f32.mxu1 %vm2427_vm4, %v2768_v9  ;;  %v4756_v53 = vadd.s32 1, %v9305_v12  ;;  %v4751_v45 = vmul.u32 8, %v9305_v12 }
 0x436   :  { %v8066_v24 = vpop.eup %8065  ;;  %7376 = vmatmul.mubr.msk.f32.vlgmr.msra.gmra.mrb[62].mxu1 %vm2427_vm4, %v2769_v62  ;;  %v2773_v63 = vmul.f32 %v8064_v29, %v9076_v3  ;;  %v4077_v3 = vld [vmem:[%s10000_s7 + $0x8] sm:$0xff] }
 0x437   :  { %7864 = vmatpush3.bf16.msra.mxu1 %v8517_v48  ;;  %v2772_v22 = vmul.f32 %v8066_v24, %v9078_v49  ;;  %v4076_v48 = vld [vmem:[%s10000_s7] sm:$0xff]  ;;  %v4757_v47 = vmul.u32 8, %v4756_v53  ;;  %vm4752_vm5 = vcmp.ge.s32.totalorder %v9307_v58, %v4751_v45  ;;  %vm4753_vm6 = vcmp.ge.s32.totalorder %v4746_v10, %v4751_v45 }
 0x438   :  { %7870 = vmatprep.subr.bf16.mxu1 %v8533_v60  ;;  %v7877_v49 = vpack.c.bf16 %v4077_v3, %v4076_v48  ;;  %vm4754_vm12 = vcmp.ge.s32.totalorder %v4747_v50, %v4751_v45  ;;  %vm4755_vm13 = vcmp.ge.s32.totalorder %v4748_v38, %v4751_v45 }
 0x439   :  { %v8068_v37 = vpop.eup %8067  ;;  %7389 = vmatprep.mubr.msk.f32.mxu1 %vm2427_vm4, %v2772_v22  ;;  %vm4758_vm7 = vcmp.lt.s32.totalorder %v9307_v58, %v4757_v47  ;;  %vm4759_vm8 = vcmp.lt.s32.totalorder %v4746_v10, %v4757_v47  ;;  %vm4760_vm14 = vcmp.lt.s32.totalorder %v4747_v50, %v4757_v47  ;;  %vm4761_vm15 = vcmp.lt.s32.totalorder %v4748_v38, %v4757_v47 }
 0x43a   :  { %v8070_v26 = vpop.eup %8069  ;;  %7390 = vmatmul.mubr.msk.f32.vlgmr.msra.gmra.mrb[64].mxu1 %vm2427_vm4, %v2773_v63  ;;  %v2777_v59 = vmul.f32 %v8068_v37, %v9084_v34  ;;  %v4079_v34 = vld [vmem:[%s10000_s7 + $0x18] sm:$0xff]  ;;  %vm4762_vm9 = vmand %vm4752_vm5, %vm4758_vm7 }
 0x43b   :  { %7872 = vmatpush3.bf16.msra.mxu1 %v8533_v60  ;;  %v2776_v19 = vmul.f32 %v8070_v26, %v9086_v13  ;;  %v4078_v60 = vld [vmem:[%s10000_s7 + $0x10] sm:$0xff]  ;;  %vm4763_vm10 = vmand %vm4753_vm6, %vm4759_vm8 }
 0x43c   :  { %v7881_v13 = vpack.c.bf16 %v4079_v34, %v4078_v60  ;;  %7878 = vmatprep.subr.bf16.mxu1 %v7877_v49  ;;  %vm7901_vm11 = vmpackc.low %vm4763_vm10, %vm4762_vm9 }
 0x43d   :  { %7403 = vmatprep.mubr.msk.f32.mxu1 %vm2427_vm4, %v2776_v19  ;;  %7902 = vmatprep.subr.msk.bf16.mxu0 %vm7901_vm11, %v8143_v23  ;;  %vm4764_vm3 = vmand %vm4754_vm12, %vm4760_vm14  ;;  %v9332_v19 = vld [vmem:[%s10002_s8] ss:$0 sm:$0xff] }
 0x43e   :  { %7404 = vmatmul.mubr.msk.f32.vlgmr.msra.gmra.mrb[66].mxu1 %vm2427_vm4, %v2777_v59  ;;  %vm4765_vm4 = vmand %vm4755_vm13, %vm4761_vm15  ;;  %v9337_v59 = vld [vmem:[%s10003_s10] ss:$0 sm:$0xff] }
 0x43f   :  { %7880 = vmatpush3.bf16.msra.mxu1 %v7877_v49  ;;  %vm7905_vm5 = vmpackc.low %vm4765_vm4, %vm4764_vm3 }
 0x440   :  { %7882 = vmatprep.subr.bf16.mxu1 %v7881_v13 }
 0x443   :  { %7884 = vmatpush3.bf16.msra.mxu1 %v7881_v13 }
 0x444   :  { %7894 = vmatprep.subr.bf16.mxu1 %v7893_v33 }
 0x4ac   :  { %v7307_v36 = vpop.f32.mrb[72].mxu0 }
 0x4ad   :  { %v2852_v5 = vpop.f32.mrb[73].mxu0 }
 0x4ae   :  { %7435 = vmatprep.mubr.msk.f32.mxu0 %vm445_vm2, %v2852_v5 }
 0x4af   :  { %7436 = vmatmul.mubr.msk.f32.vlgmr.msra.gmra.mrb[92].mxu0 %vm445_vm2, %v7307_v36 }
 0x4b0   :  { %7904 = vmatpush3.bf16.msk.msra.mxu0 %vm7901_vm11, %v8143_v23 }
 0x4b1   :  { %7906 = vmatprep.subr.msk.bf16.mxu0 %vm7905_vm5, %v8143_v23 }
 0x4b4   :  { %v7314_v55 = vpop.f32.mrb[74].mxu0  ;;  %7908 = vmatpush3.bf16.msk.msra.mxu0 %vm7905_vm5, %v8143_v23 }
 0x4b5   :  { %v2933_v7 = vpop.f32.mrb[75].mxu0 }
 0x4b6   :  { %7438 = vmatprep.mubr.msk.f32.mxu0 %vm445_vm2, %v2933_v7 }
 0x4b7   :  { %7439 = vmatmul.mubr.msk.f32.gmra.mrb[94].mxu0 %vm445_vm2, %v7314_v55 }
 0x4ba   :  { %v7321_v32 = vpop.f32.mrb[76].mxu0 }
 0x4bb   :  { %v3014_v43 = vpop.f32.mrb[77].mxu0 }
 0x4bc   :  { %7441 = vmatprep.mubr.msk.f32.mxu0 %vm445_vm2, %v3014_v43 }
 0x4bd   :  { %7442 = vmatmul.mubr.msk.f32.gmra.mrb[96].mxu0 %vm445_vm2, %v7321_v32 }
 0x4c1   :  { %v7328_v57 = vpop.f32.mrb[78].mxu0 }
 0x4c2   :  { %v3095_v39 = vpop.f32.mrb[79].mxu0 }
 0x4c3   :  { %7444 = vmatprep.mubr.msk.f32.mxu0 %vm445_vm2, %v3095_v39 }
 0x4c4   :  { %7445 = vmatmul.mubr.msk.f32.gmra.mrb[98].mxu0 %vm445_vm2, %v7328_v57 }
 0x4d1   :  { %v9220_v6 = vpop.f32.mrb[80].mxu0 }
 0x4d2   :  { %v3257_v56 = vpop.f32.mrb[81].mxu0 }
 0x4e1   :  { %v9228_v35 = vpop.f32.mrb[82].mxu0 }
 0x4e2   :  { %v9230_v46 = vpop.f32.mrb[83].mxu0 }
 0x4e3   :  { %7421 = vmatprep.mubr.msk.f32.mxu1 %vm445_vm2, %v9230_v46 }
 0x4e4   :  { %7422 = vmatmul.mubr.msk.f32.vlgmr.msra.gmra.mrb[68].mxu1 %vm445_vm2, %v9228_v35 }
 0x4e5   :  { %v7335_v15 = vpop.f32.mrb[56].mxu1  ;;  %7896 = vmatpush3.bf16.msra.mxu1 %v7893_v33 }
 0x4e6   :  { %v3176_v11 = vpop.f32.mrb[57].mxu1  ;;  %7898 = vmatprep.subr.bf16.mxu1 %v7897_v27 }
 0x4e7   :  { %7447 = vmatprep.mubr.msk.f32.mxu0 %vm445_vm2, %v3176_v11 }
 0x4e8   :  { %7448 = vmatmul.mubr.msk.f32.gmra.mrb[100].mxu0 %vm445_vm2, %v7335_v15 }
 0x4e9   :  { %v7349_v18 = vpop.f32.mrb[58].mxu1  ;;  %7450 = vmatprep.mubr.msk.f32.mxu0 %vm445_vm2, %v3257_v56  ;;  %7900 = vmatpush3.bf16.msra.mxu1 %v7897_v27 }
 0x4ea   :  { %v3338_v42 = vpop.f32.mrb[59].mxu1 }
 0x4ec   :  { %7451 = vmatmul.mubr.msk.f32.gmra.mrb[102].mxu0 %vm445_vm2, %v9220_v6 }
 0x4ed   :  { %v7370_v51 = vpop.f32.mrb[84].mxu0  ;;  %7453 = vmatprep.mubr.msk.f32.mxu0 %vm445_vm2, %v3338_v42 }
 0x4ee   :  { %v3581_v14 = vpop.f32.mrb[85].mxu0 }
 0x4f0   :  { %7454 = vmatmul.mubr.msk.f32.gmra.mrb[104].mxu0 %vm445_vm2, %v7349_v18 }
 0x4f1   :  { %v7384_v21 = vpop.f32.mrb[86].mxu0  ;;  %7456 = vmatprep.mubr.msk.f32.mxu0 %vm445_vm2, %v9230_v46 }
 0x4f2   :  { %v3743_v8 = vpop.f32.mrb[87].mxu0 }
 0x4f4   :  { %7457 = vmatmul.mubr.msk.f32.gmra.mrb[106].mxu0 %vm445_vm2, %v9228_v35 }
 0x4f9   :  { %v9247_v61 = vpop.f32.mrb[88].mxu0 }
 0x4fa   :  { %v9249_v54 = vpop.f32.mrb[89].mxu0 }
 0x501   :  { %v9251_v25 = vpop.f32.mrb[90].mxu0 }
 0x502   :  { %v9253_v44 = vpop.f32.mrb[91].mxu0 }
 0x503   :  { %7424 = vmatprep.mubr.msk.f32.mxu1 %vm445_vm2, %v9253_v44 }
 0x504   :  { %7425 = vmatmul.mubr.msk.f32.gmra.mrb[70].mxu1 %vm445_vm2, %v9251_v25 }
 0x505   :  { %v7363_v2 = vpop.f32.mrb[60].mxu1  ;;  %7491 = vmatprep.mubr.msk.f32.mxu1 %vm445_vm2, %v2852_v5 }
 0x506   :  { %v3500_v30 = vpop.f32.mrb[61].mxu1 }
 0x507   :  { %7459 = vmatprep.mubr.msk.f32.mxu0 %vm445_vm2, %v3500_v30 }
 0x508   :  { %7460 = vmatmul.mubr.msk.f32.gmra.mrb[108].mxu0 %vm445_vm2, %v7363_v2  ;;  %7492 = vmatmul.mubr.msk.f32.vlgmr.msra.gmra.mrb[72].mxu1 %vm445_vm2, %v7307_v36 }
 0x509   :  { %v7377_v0 = vpop.f32.mrb[62].mxu1  ;;  %7462 = vmatprep.mubr.msk.f32.mxu0 %vm445_vm2, %v3581_v14  ;;  %7494 = vmatprep.mubr.msk.f32.mxu1 %vm445_vm2, %v2933_v7 }
 0x50a   :  { %v3662_v20 = vpop.f32.mrb[63].mxu1 }
 0x50c   :  { %7463 = vmatmul.mubr.msk.f32.gmra.mrb[110].mxu0 %vm445_vm2, %v7370_v51  ;;  %7495 = vmatmul.mubr.msk.f32.gmra.mrb[74].mxu1 %vm445_vm2, %v7314_v55 }
 0x50d   :  { %v7391_v52 = vpop.f32.mrb[64].mxu1  ;;  %7465 = vmatprep.mubr.msk.f32.mxu0 %vm445_vm2, %v3662_v20  ;;  %7497 = vmatprep.mubr.msk.f32.mxu1 %vm445_vm2, %v3014_v43 }
 0x50e   :  { %v3824_v41 = vpop.f32.mrb[65].mxu1 }
 0x510   :  { %7466 = vmatmul.mubr.msk.f32.gmra.mrb[112].mxu0 %vm445_vm2, %v7377_v0  ;;  %7498 = vmatmul.mubr.msk.f32.gmra.mrb[76].mxu1 %vm445_vm2, %v7321_v32 }
 0x511   :  { %v7405_v31 = vpop.f32.mrb[66].mxu1  ;;  %7468 = vmatprep.mubr.msk.f32.mxu0 %vm445_vm2, %v3743_v8  ;;  %7500 = vmatprep.mubr.msk.f32.mxu1 %vm445_vm2, %v3095_v39 }
 0x512   :  { %v3986_v4 = vpop.f32.mrb[67].mxu1 }
 0x514   :  { %7469 = vmatmul.mubr.msk.f32.gmra.mrb[114].mxu0 %vm445_vm2, %v7384_v21  ;;  %7501 = vmatmul.mubr.msk.f32.gmra.mrb[78].mxu1 %vm445_vm2, %v7328_v57 }
 0x515   :  { %7471 = vmatprep.mubr.msk.f32.mxu0 %vm445_vm2, %v3824_v41  ;;  %7503 = vmatprep.mubr.msk.f32.mxu1 %vm445_vm2, %v3176_v11 }
 0x518   :  { %7472 = vmatmul.mubr.msk.f32.gmra.mrb[116].mxu0 %vm445_vm2, %v7391_v52  ;;  %7504 = vmatmul.mubr.msk.f32.gmra.mrb[80].mxu1 %vm445_vm2, %v7335_v15 }
 0x519   :  { %7474 = vmatprep.mubr.msk.f32.mxu0 %vm445_vm2, %v9249_v54  ;;  %7506 = vmatprep.mubr.msk.f32.mxu1 %vm445_vm2, %v3257_v56 }
 0x51c   :  { %7475 = vmatmul.mubr.msk.f32.gmra.mrb[118].mxu0 %vm445_vm2, %v9247_v61  ;;  %7507 = vmatmul.mubr.msk.f32.gmra.mrb[82].mxu1 %vm445_vm2, %v9220_v6 }
 0x51d   :  { %7477 = vmatprep.mubr.msk.f32.mxu0 %vm445_vm2, %v3986_v4  ;;  %7509 = vmatprep.mubr.msk.f32.mxu1 %vm445_vm2, %v3338_v42 }
 0x520   :  { %7478 = vmatmul.mubr.msk.f32.gmra.mrb[120].mxu0 %vm445_vm2, %v7405_v31  ;;  %7510 = vmatmul.mubr.msk.f32.gmra.mrb[84].mxu1 %vm445_vm2, %v7349_v18 }
 0x521   :  { %7480 = vmatprep.mubr.msk.f32.mxu0 %vm445_vm2, %v9253_v44  ;;  %7512 = vmatprep.mubr.msk.f32.mxu1 %vm445_vm2, %v9230_v46 }
 0x524   :  { %7481 = vmatmul.mubr.msk.f32.gmra.mrb[122].mxu0 %vm445_vm2, %v9251_v25  ;;  %7513 = vmatmul.mubr.msk.f32.gmra.mrb[86].mxu1 %vm445_vm2, %v9228_v35 }
 0x525   :  { %7515 = vmatprep.mubr.msk.f32.mxu1 %vm445_vm2, %v3500_v30 }
 0x528   :  { %7516 = vmatmul.mubr.msk.f32.gmra.mrb[88].mxu1 %vm445_vm2, %v7363_v2 }
 0x529   :  { %7518 = vmatprep.mubr.msk.f32.mxu1 %vm445_vm2, %v3581_v14 }
 0x52c   :  { %7519 = vmatmul.mubr.msk.f32.gmra.mrb[90].mxu1 %vm445_vm2, %v7370_v51 }
 0x52d   :  { %7521 = vmatprep.mubr.msk.f32.mxu1 %vm445_vm2, %v3662_v20 }
 0x530   :  { %7522 = vmatmul.mubr.msk.f32.gmra.mrb[92].mxu1 %vm445_vm2, %v7377_v0 }
 0x531   :  { %7524 = vmatprep.mubr.msk.f32.mxu1 %vm445_vm2, %v3743_v8 }
 0x534   :  { %7525 = vmatmul.mubr.msk.f32.gmra.mrb[94].mxu1 %vm445_vm2, %v7384_v21 }
 0x535   :  { %7527 = vmatprep.mubr.msk.f32.mxu1 %vm445_vm2, %v3824_v41 }
 0x538   :  { %7528 = vmatmul.mubr.msk.f32.gmra.mrb[96].mxu1 %vm445_vm2, %v7391_v52 }
 0x539   :  { %7530 = vmatprep.mubr.msk.f32.mxu1 %vm445_vm2, %v9249_v54 }
 0x53c   :  { %7531 = vmatmul.mubr.msk.f32.gmra.mrb[98].mxu1 %vm445_vm2, %v9247_v61 }
 0x53d   :  { %7533 = vmatprep.mubr.msk.f32.mxu1 %vm445_vm2, %v3986_v4 }
 0x540   :  { %7534 = vmatmul.mubr.msk.f32.gmra.mrb[100].mxu1 %vm445_vm2, %v7405_v31 }
 0x541   :  { %7536 = vmatprep.mubr.msk.f32.mxu1 %vm445_vm2, %v9253_v44 }
 0x544   :  { %7537 = vmatmul.mubr.msk.f32.gmra.mrb[102].mxu1 %vm445_vm2, %v9251_v25 }
 0x582   :  { %v7437_v9 = vpop.f32.mrb[92].mxu0 }
 0x583   :  { %v4349_v62 = vpop.f32.mrb[93].mxu0  ;;  %v4355_v49 = vadd.f32 %v7437_v9, %v9337_v59 }
 0x584   :  { %v4350_v34 = vadd.f32 %v9337_v59, %v4349_v62 }
 0x58a   :  { %v7440_v29 = vpop.f32.mrb[94].mxu0 }
 0x58b   :  { %v4359_v24 = vpop.f32.mrb[95].mxu0  ;;  %v4365_v16 = vadd.f32 %v7440_v29, %v9337_v59 }
 0x58c   :  { %v4360_v40 = vadd.f32 %v9337_v59, %v4359_v24 }
 0x590   :  { %v7443_v22 = vpop.f32.mrb[96].mxu0 }
 0x591   :  { %v4369_v63 = vpop.f32.mrb[97].mxu0  ;;  %v4375_v33 = vadd.f32 %v7443_v22, %v9337_v59 }
 0x592   :  { %v4370_v5 = vadd.f32 %v9337_v59, %v4369_v63 }
 0x597   :  { %v7446_v37 = vpop.f32.mrb[98].mxu0 }
 0x598   :  { %v4379_v26 = vpop.f32.mrb[99].mxu0  ;;  %v4385_v55 = vadd.f32 %v7446_v37, %v9337_v59 }
 0x599   :  { %v4380_v7 = vadd.f32 %v9337_v59, %v4379_v26 }
 0x5b7   :  { %v7423_v48 = vpop.f32.mrb[68].mxu1 }
 0x5b8   :  { %v4171_v3 = vadd.f32 %v7423_v48, %v9332_v19  ;;  %v4165_v60 = vpop.f32.mrb[69].mxu1 }
 0x5b9   :  { %v4166_v13 = vadd.f32 %v9332_v19, %v4165_v60 }
 0x5ba   :  { %v4185_v36 = vmul.f32 0.35355338, %v4171_v3 }
 0x5bb   :  { %v4184_v32 = vmul.f32 0.35355338, %v4166_v13  ;;  %v7449_v43 = vpop.f32.mrb[100].mxu0 }
 0x5bc   :  { %v4395_v57 = vadd.f32 %v7449_v43, %v9337_v59  ;;  %v4389_v39 = vpop.f32.mrb[101].mxu0  ;;  %v4783_v6 = vmul.f32 %v4355_v49, %v4185_v36  ;;  %v4785_v56 = vmul.f32 %v4365_v16, %v4185_v36  ;;  %v4787_v17 = vmul.f32 %v4375_v33, %v4185_v36 }
 0x5bd   :  { %v4390_v28 = vadd.f32 %v9337_v59, %v4389_v39  ;;  %v4782_v35 = vmul.f32 %v4350_v34, %v4184_v32  ;;  %v4784_v46 = vmul.f32 %v4360_v40, %v4184_v32  ;;  %v4786_v27 = vmul.f32 %v4370_v5, %v4184_v32 }
 0x5be   :  { %v4791_v15 = vmul.f32 %v4395_v57, %v4185_v36  ;;  %v4788_v11 = vmul.f32 %v4380_v7, %v4184_v32  ;;  %v4789_v18 = vmul.f32 %v4385_v55, %v4185_v36 }
 0x5bf   :  { %v4790_v42 = vmul.f32 %v4390_v28, %v4184_v32  ;;  %v7452_v51 = vpop.f32.mrb[102].mxu0  ;;  %7547 = vmatprep.mubr.msk.f32.mxu0 %vm445_vm2, %v4782_v35 }
 0x5c0   :  { %v4405_v14 = vadd.f32 %v7452_v51, %v9337_v59  ;;  %v4399_v21 = vpop.f32.mrb[103].mxu0  ;;  %7548 = vmatmul.mubr.msk.f32.vlgmr.msra.gmra.mrb[124].mxu0 %vm445_vm2, %v4783_v6 }
 0x5c1   :  { %v4400_v8 = vadd.f32 %v9337_v59, %v4399_v21  ;;  %7550 = vmatprep.mubr.msk.f32.mxu0 %vm445_vm2, %v4784_v46 }
 0x5c2   :  { %v4793_v61 = vmul.f32 %v4405_v14, %v4185_v36 }
 0x5c3   :  { %v4792_v54 = vmul.f32 %v4400_v8, %v4184_v32  ;;  %v7455_v25 = vpop.f32.mrb[104].mxu0 }
 0x5c4   :  { %v4415_v44 = vadd.f32 %v7455_v25, %v9337_v59  ;;  %v4409_v2 = vpop.f32.mrb[105].mxu0  ;;  %7551 = vmatmul.mubr.msk.f32.gmra.mrb[126].mxu0 %vm445_vm2, %v4785_v56 }
 0x5c5   :  { %v4410_v30 = vadd.f32 %v9337_v59, %v4409_v2  ;;  %7553 = vmatprep.mubr.msk.f32.mxu0 %vm445_vm2, %v4786_v27 }
 0x5c6   :  { %v4795_v0 = vmul.f32 %v4415_v44, %v4185_v36 }
 0x5c7   :  { %v4794_v20 = vmul.f32 %v4410_v30, %v4184_v32  ;;  %v7458_v52 = vpop.f32.mrb[106].mxu0 }
 0x5c8   :  { %v4425_v41 = vadd.f32 %v7458_v52, %v9337_v59  ;;  %v4419_v31 = vpop.f32.mrb[107].mxu0  ;;  %7554 = vmatmul.mubr.msk.f32.gmra.mrb[128].mxu0 %vm445_vm2, %v4787_v17 }
 0x5c9   :  { %v4420_v4 = vadd.f32 %v9337_v59, %v4419_v31  ;;  %7556 = vmatprep.mubr.msk.f32.mxu0 %vm445_vm2, %v4788_v11 }
 0x5ca   :  { %v4797_v1 = vmul.f32 %v4425_v41, %v4185_v36 }
 0x5cb   :  { %v4796_v53 = vmul.f32 %v4420_v4, %v4184_v32 }
 0x5cc   :  { %7557 = vmatmul.mubr.msk.f32.gmra.mrb[130].mxu0 %vm445_vm2, %v4789_v18 }
 0x5cd   :  { %7559 = vmatprep.mubr.msk.f32.mxu0 %vm445_vm2, %v4790_v42 }
 0x5d0   :  { %7560 = vmatmul.mubr.msk.f32.gmra.mrb[132].mxu0 %vm445_vm2, %v4791_v15 }
 0x5d1   :  { %7562 = vmatprep.mubr.msk.f32.mxu0 %vm445_vm2, %v4792_v54 }
 0x5d4   :  { %7563 = vmatmul.mubr.msk.f32.gmra.mrb[134].mxu0 %vm445_vm2, %v4793_v61 }
 0x5d5   :  { %7565 = vmatprep.mubr.msk.f32.mxu0 %vm445_vm2, %v4794_v20 }
 0x5d7   :  { %v7426_v10 = vpop.f32.mrb[70].mxu1 }
 0x5d8   :  { %v4181_v45 = vadd.f32 %v7426_v10, %v9332_v19  ;;  %v4175_v47 = vpop.f32.mrb[71].mxu1  ;;  %7566 = vmatmul.mubr.msk.f32.gmra.mrb[136].mxu0 %vm445_vm2, %v4795_v0 }
 0x5d9   :  { %v4176_v50 = vadd.f32 %v9332_v19, %v4175_v47  ;;  %7568 = vmatprep.mubr.msk.f32.mxu0 %vm445_vm2, %v4796_v53 }
 0x5da   :  { %v9376_v9 = vmul.f32 0.35355338, %v4181_v45 }
 0x5db   :  { %v7461_v38 = vpop.f32.mrb[108].mxu0  ;;  %v9374_v23 = vpop.f32.mrb[72].mxu1  ;;  %v9382_v22 = vmul.f32 0.35355338, %v4176_v50 }
 0x5dc   :  { %v4435_v62 = vadd.f32 %v7461_v38, %v9337_v59  ;;  %v4429_v29 = vpop.f32.mrb[109].mxu0  ;;  %v9379_v24 = vpop.f32.mrb[73].mxu1  ;;  %7569 = vmatmul.mubr.msk.f32.gmra.mrb[138].mxu0 %vm445_vm2, %v4797_v1 }
 0x5dd   :  { %v4430_v63 = vadd.f32 %v9337_v59, %v4429_v29 }
 0x5de   :  { %v4799_v37 = vmul.f32 %v4435_v62, %v9376_v9 }
 0x5df   :  { %v4798_v26 = vmul.f32 %v4430_v63, %v9382_v22  ;;  %v7464_v19 = vpop.f32.mrb[110].mxu0  ;;  %v9387_v48 = vpop.f32.mrb[74].mxu1 }
 0x5e0   :  { %v4445_v3 = vadd.f32 %v7464_v19, %v9337_v59  ;;  %v4439_v60 = vpop.f32.mrb[111].mxu0  ;;  %v9390_v49 = vpop.f32.mrb[75].mxu1 }
 0x5e1   :  { %v4440_v34 = vadd.f32 %v9337_v59, %v4439_v60  ;;  %7571 = vmatprep.mubr.msk.f32.mxu0 %vm445_vm2, %v4798_v26 }
 0x5e2   :  { %v4801_v13 = vmul.f32 %v4445_v3, %v9376_v9  ;;  %7572 = vmatmul.mubr.msk.f32.gmra.mrb[140].mxu0 %vm445_vm2, %v4799_v37 }
 0x5e3   :  { %v4800_v16 = vmul.f32 %v4440_v34, %v9382_v22  ;;  %v7467_v40 = vpop.f32.mrb[112].mxu0  ;;  %v9397_v33 = vpop.f32.mrb[76].mxu1 }
 0x5e4   :  { %v4455_v36 = vadd.f32 %v7467_v40, %v9337_v59  ;;  %v4449_v5 = vpop.f32.mrb[113].mxu0  ;;  %v9400_v55 = vpop.f32.mrb[77].mxu1 }
 0x5e5   :  { %v4450_v7 = vadd.f32 %v9337_v59, %v4449_v5  ;;  %7574 = vmatprep.mubr.msk.f32.mxu0 %vm445_vm2, %v4800_v16 }
 0x5e6   :  { %v4803_v32 = vmul.f32 %v4455_v36, %v9376_v9  ;;  %7575 = vmatmul.mubr.msk.f32.gmra.mrb[142].mxu0 %vm445_vm2, %v4801_v13 }
 0x5e7   :  { %v4802_v43 = vmul.f32 %v4450_v7, %v9382_v22  ;;  %v7470_v57 = vpop.f32.mrb[114].mxu0  ;;  %v9407_v39 = vpop.f32.mrb[78].mxu1 }
 0x5e8   :  { %v4465_v6 = vadd.f32 %v7470_v57, %v9337_v59  ;;  %v4459_v56 = vpop.f32.mrb[115].mxu0  ;;  %v9410_v17 = vpop.f32.mrb[79].mxu1  ;;  %v4776_v57 = vadd.s32 1, %v9307_v58 }
 0x5e9   :  { %v4460_v28 = vadd.f32 %v9337_v59, %v4459_v56  ;;  %7577 = vmatprep.mubr.msk.f32.mxu0 %vm445_vm2, %v4802_v43 }
 0x5ea   :  { %v4805_v35 = vmul.f32 %v4465_v6, %v9376_v9  ;;  %7578 = vmatmul.mubr.msk.f32.gmra.mrb[144].mxu0 %vm445_vm2, %v4803_v32  ;;  %v4774_v6 = vmul.u32 8, %v9307_v58  ;;  %v4777_v56 = vmul.u32 8, %v4776_v57 }
 0x5eb   :  { %v4804_v46 = vmul.f32 %v4460_v28, %v9382_v22  ;;  %v7473_v27 = vpop.f32.mrb[116].mxu0  ;;  %v9417_v15 = vpop.f32.mrb[80].mxu1  ;;  %v8144_v28 = vmov 0.0  }
 0x5ec   :  { %v4475_v11 = vadd.f32 %v7473_v27, %v9337_v59  ;;  %v4469_v18 = vpop.f32.mrb[117].mxu0  ;;  %v9420_v42 = vpop.f32.mrb[81].mxu1  ;;  %vm4775_vm6 = vcmp.ge.s32.totalorder %v9305_v12, %v4774_v6  ;;  %vm4778_vm7 = vcmp.lt.s32.totalorder %v9305_v12, %v4777_v56 }
 0x5ed   :  { %v4470_v51 = vadd.f32 %v9337_v59, %v4469_v18  ;;  %7580 = vmatprep.mubr.msk.f32.mxu0 %vm445_vm2, %v4804_v46  ;;  %vm4779_vm8 = vmand %vm4775_vm6, %vm4778_vm7 }
 0x5ee   :  { %v4807_v14 = vmul.f32 %v4475_v11, %v9376_v9  ;;  %7581 = vmatmul.mubr.msk.f32.gmra.mrb[146].mxu0 %vm445_vm2, %v4805_v35  ;;  %v6523_v35 = vsel %vm4779_vm8, 1.0, %v8144_v28 }
 0x5ef   :  { %v4806_v21 = vmul.f32 %v4470_v51, %v9382_v22  ;;  %v7476_v8 = vpop.f32.mrb[118].mxu0  ;;  %v9427_v61 = vpop.f32.mrb[82].mxu1  ;;  %7595 = vmatprep.subr.msk.mxu1 %vm205_vm0, %v6523_v35 }
 0x5f0   :  { %v4485_v54 = vadd.f32 %v7476_v8, %v9337_v59  ;;  %v4479_v25 = vpop.f32.mrb[119].mxu0  ;;  %v9430_v44 = vpop.f32.mrb[83].mxu1  ;;  %7596 = vmatpush3.msk.msra.mxu1 %vm205_vm0, %v6523_v35  ;;  %vm6243_vm0 = vcmask 97280  }
 0x5f1   :  { %v4480_v2 = vadd.f32 %v9337_v59, %v4479_v25  ;;  %7583 = vmatprep.mubr.msk.f32.mxu0 %vm445_vm2, %v4806_v21 }
 0x5f2   :  { %v4809_v30 = vmul.f32 %v4485_v54, %v9376_v9  ;;  %7584 = vmatmul.mubr.msk.f32.gmra.mrb[148].mxu0 %vm445_vm2, %v4807_v14 }
 0x5f3   :  { %v4808_v0 = vmul.f32 %v4480_v2, %v9382_v22  ;;  %v7479_v20 = vpop.f32.mrb[120].mxu0  ;;  %v9437_v52 = vpop.f32.mrb[84].mxu1 }
 0x5f4   :  { %v4495_v41 = vadd.f32 %v7479_v20, %v9337_v59  ;;  %v4489_v31 = vpop.f32.mrb[121].mxu0  ;;  %v9440_v4 = vpop.f32.mrb[85].mxu1 }
 0x5f5   :  { %v4490_v1 = vadd.f32 %v9337_v59, %v4489_v31  ;;  %7586 = vmatprep.mubr.msk.f32.mxu0 %vm445_vm2, %v4808_v0 }
 0x5f6   :  { %v4811_v53 = vmul.f32 %v4495_v41, %v9376_v9  ;;  %7587 = vmatmul.mubr.msk.f32.gmra.mrb[150].mxu0 %vm445_vm2, %v4809_v30 }
 0x5f7   :  { %v4810_v10 = vmul.f32 %v4490_v1, %v9382_v22  ;;  %v7482_v45 = vpop.f32.mrb[122].mxu0  ;;  %v9447_v47 = vpop.f32.mrb[86].mxu1 }
 0x5f8   :  { %10031 = vst [vmem:[#allocation2_spill] sm:$0xff] %v9447_v47  ;;  %v4505_v50 = vadd.f32 %v7482_v45, %v9337_v59  ;;  %v4499_v38 = vpop.f32.mrb[123].mxu0  ;;  %v9450_v62 = vpop.f32.mrb[87].mxu1 }
 0x5f9   :  { %10032 = vst [vmem:[#allocation3_spill] sm:$0xff] %v9450_v62  ;;  %v4500_v29 = vadd.f32 %v9337_v59, %v4499_v38  ;;  %7589 = vmatprep.mubr.msk.f32.mxu0 %vm445_vm2, %v4810_v10 }
 0x5fa   :  { %v4813_v63 = vmul.f32 %v4505_v50, %v9376_v9  ;;  %7590 = vmatmul.mubr.msk.f32.gmra.mrb[152].mxu0 %vm445_vm2, %v4811_v53 }
 0x5fb   :  { %v4812_v37 = vmul.f32 %v4500_v29, %v9382_v22  ;;  %v9457_v26 = vpop.f32.mrb[88].mxu1 }
 0x5fc   :  { %10033 = vst [vmem:[#allocation4_spill] sm:$0xff] %v9457_v26  ;;  %v9459_v19 = vpop.f32.mrb[89].mxu1 }
 0x5fd   :  { %10034 = vst [vmem:[#allocation5_spill] sm:$0xff] %v9459_v19  ;;  %7592 = vmatprep.mubr.msk.f32.mxu0 %vm445_vm2, %v4812_v37 }
 0x5fe   :  { %7593 = vmatmul.mubr.msk.f32.gmra.mrb[154].mxu0 %vm445_vm2, %v4813_v63 }
 0x5ff   :  { %v9463_v3 = vpop.f32.mrb[90].mxu1 }
 0x600   :  { %10035 = vst [vmem:[#allocation6_spill] sm:$0xff] %v9463_v3  ;;  %v9465_v60 = vpop.f32.mrb[91].mxu1 }
 0x601   :  { %10036 = vst [vmem:[#allocation7_spill] sm:$0xff] %v9465_v60 }
 0x603   :  { %v9467_v59 = vpop.f32.mrb[92].mxu1 }
 0x604   :  { %10037 = vst [vmem:[#allocation8_spill] sm:$0xff] %v9467_v59  ;;  %v9469_v34 = vpop.f32.mrb[93].mxu1 }
 0x605   :  { %10038 = vst [vmem:[#allocation9_spill] sm:$0xff] %v9469_v34 }
 0x607   :  { %v9471_v9 = vpop.f32.mrb[94].mxu1 }
 0x608   :  { %10039 = vst [vmem:[#allocation10_spill] sm:$0xff] %v9471_v9  ;;  %v9473_v13 = vpop.f32.mrb[95].mxu1 }
 0x609   :  { %10040 = vst [vmem:[#allocation11_spill] sm:$0xff] %v9473_v13 }
 0x60b   :  { %v9475_v22 = vpop.f32.mrb[96].mxu1 }
 0x60c   :  { %10041 = vst [vmem:[#allocation12_spill] sm:$0xff] %v9475_v22  ;;  %v9477_v16 = vpop.f32.mrb[97].mxu1 }
 0x60d   :  { %10042 = vst [vmem:[#allocation13_spill] sm:$0xff] %v9477_v16 }
 0x60f   :  { %v9479_v40 = vpop.f32.mrb[98].mxu1 }
 0x610   :  { %10043 = vst [vmem:[#allocation14_spill] sm:$0xff] %v9479_v40  ;;  %v9481_v36 = vpop.f32.mrb[99].mxu1 }
 0x611   :  { %10044 = vst [vmem:[#allocation15_spill] sm:$0xff] %v9481_v36 }
 0x613   :  { %v9483_v5 = vpop.f32.mrb[100].mxu1 }
 0x614   :  { %10045 = vst [vmem:[#allocation16_spill] sm:$0xff] %v9483_v5  ;;  %v9485_v7 = vpop.f32.mrb[101].mxu1 }
 0x615   :  { %10046 = vst [vmem:[#allocation17_spill] sm:$0xff] %v9485_v7 }
 0x617   :  { %v9487_v32 = vpop.f32.mrb[102].mxu1 }
 0x618   :  { %10047 = vst [vmem:[#allocation18_spill] sm:$0xff] %v9487_v32  ;;  %v9489_v43 = vpop.f32.mrb[103].mxu1 }
 0x619   :  { %10048 = vst [vmem:[#allocation19_spill] sm:$0xff] %v9489_v43 }
 0x693   :  { %v7549_v46 = vpop.f32.mrb[124].mxu0 }
 0x694   :  { %v9497_v27 = vpop.f32.mrb[125].mxu0  ;;  %v5150_v18 = vsel %vm108_vm1, %v7549_v46, -inf }
 0x695   :  { %v5135_v12 = vsel %vm108_vm1, %v9497_v27, -inf }
 0x697   :  { %v7552_v11 = vpop.f32.mrb[126].mxu0 }
 0x698   :  { %v5151_v58 = vsel %vm108_vm1, %v7552_v11, -inf  ;;  %v9501_v51 = vpop.f32.mrb[127].mxu0 }
 0x699   :  { %v5152_v14 = vmax.f32 %v5150_v18, %v5151_v58  ;;  %v5136_v21 = vsel %vm108_vm1, %v9501_v51, -inf }
 0x69a   :  { %v5137_v8 = vmax.f32 %v5135_v12, %v5136_v21 }
 0x69b   :  { %v7555_v54 = vpop.f32.mrb[128].mxu0 }
 0x69c   :  { %v5153_v25 = vsel %vm108_vm1, %v7555_v54, -inf  ;;  %v9508_v2 = vpop.f32.mrb[129].mxu0 }
 0x69d   :  { %v5154_v30 = vmax.f32 %v5152_v14, %v5153_v25  ;;  %v5138_v0 = vsel %vm108_vm1, %v9508_v2, -inf }
 0x69e   :  { %v5139_v20 = vmax.f32 %v5137_v8, %v5138_v0 }
 0x69f   :  { %v7558_v41 = vpop.f32.mrb[130].mxu0 }
 0x6a0   :  { %v5155_v31 = vsel %vm108_vm1, %v7558_v41, -inf  ;;  %v9513_v1 = vpop.f32.mrb[131].mxu0 }
 0x6a1   :  { %v5156_v53 = vmax.f32 %v5154_v30, %v5155_v31  ;;  %v5140_v10 = vsel %vm108_vm1, %v9513_v1, -inf }
 0x6a2   :  { %v5141_v45 = vmax.f32 %v5139_v20, %v5140_v10 }
 0x6a3   :  { %v7561_v50 = vpop.f32.mrb[132].mxu0 }
 0x6a4   :  { %v5157_v38 = vsel %vm108_vm1, %v7561_v50, -inf  ;;  %v9518_v29 = vpop.f32.mrb[133].mxu0 }
 0x6a5   :  { %v5158_v63 = vmax.f32 %v5156_v53, %v5157_v38  ;;  %v5142_v37 = vsel %vm108_vm1, %v9518_v29, -inf }
 0x6a6   :  { %v5143_v57 = vmax.f32 %v5141_v45, %v5142_v37 }
 0x6a7   :  { %v7564_v6 = vpop.f32.mrb[134].mxu0 }
 0x6a8   :  { %v5159_v56 = vsel %vm108_vm1, %v7564_v6, -inf  ;;  %v9523_v28 = vpop.f32.mrb[135].mxu0 }
 0x6a9   :  { %v5160_v35 = vmax.f32 %v5158_v63, %v5159_v56  ;;  %v5144_v18 = vsel %vm108_vm1, %v9523_v28, -inf }
 0x6aa   :  { %v5145_v58 = vmax.f32 %v5143_v57, %v5144_v18 }
 0x6ab   :  { %v7567_v12 = vpop.f32.mrb[136].mxu0 }
 0x6ac   :  { %v5161_v14 = vsel %vm108_vm1, %v7567_v12, -inf  ;;  %v9528_v21 = vpop.f32.mrb[137].mxu0 }
 0x6ad   :  { %v5162_v8 = vmax.f32 %v5160_v35, %v5161_v14  ;;  %v5146_v25 = vsel %vm108_vm1, %v9528_v21, -inf }
 0x6ae   :  { %v5147_v30 = vmax.f32 %v5145_v58, %v5146_v25 }
 0x6af   :  { %v7570_v0 = vpop.f32.mrb[138].mxu0 }
 0x6b0   :  { %v5163_v20 = vsel %vm108_vm1, %v7570_v0, -inf  ;;  %v9533_v31 = vpop.f32.mrb[139].mxu0 }
 0x6b1   :  { %v5164_v53 = vmax.f32 %v5162_v8, %v5163_v20  ;;  %v5148_v10 = vsel %vm108_vm1, %v9533_v31, -inf }
 0x6b2   :  { %v9537_v45 = vmax.f32 %v5147_v30, %v5148_v10 }
 0x6b3   :  { %v5196_v38 = vsub.f32 %v7549_v46, %v5164_v53  ;;  %v5198_v63 = vsub.f32 %v7552_v11, %v5164_v53  ;;  %v5200_v37 = vsub.f32 %v7555_v54, %v5164_v53  ;;  %v5202_v57 = vsub.f32 %v7558_v41, %v5164_v53 }
 0x6b4   :  { %v5204_v56 = vsub.f32 %v7561_v50, %v5164_v53  ;;  %v5206_v35 = vsub.f32 %v7564_v6, %v5164_v53  ;;  %v5208_v18 = vsub.f32 %v7567_v12, %v5164_v53  ;;  %v5210_v14 = vsub.f32 %v7570_v0, %v5164_v53 }
 0x6b5   :  { %v5229_v58 = vmul.f32 1.442695, %v5196_v38  ;;  %v5233_v25 = vmul.f32 1.442695, %v5198_v63  ;;  %v5237_v43 = vmul.f32 1.442695, %v5200_v37  ;;  %v5195_v32 = vsub.f32 %v9497_v27, %v9537_v45 }
 0x6b6   :  { %v5241_v8 = vmul.f32 1.442695, %v5202_v57  ;;  %v5197_v20 = vsub.f32 %v9501_v51, %v9537_v45  ;;  %v5245_v30 = vmul.f32 1.442695, %v5204_v56  ;;  %v5249_v46 = vmul.f32 1.442695, %v5206_v35 }
 0x6b7   :  { %8071 = vpow2.f32 %v5229_v58  ;;  %v5199_v11 = vsub.f32 %v9508_v2, %v9537_v45  ;;  %v9545_v54 = vpop.f32.mrb[140].mxu0  ;;  %v5201_v41 = vsub.f32 %v9513_v1, %v9537_v45  ;;  %v5203_v50 = vsub.f32 %v9518_v29, %v9537_v45 }
 0x6b8   :  { %8073 = vpow2.f32 %v5233_v25  ;;  %v5205_v27 = vsub.f32 %v9523_v28, %v9537_v45  ;;  %v9553_v6 = vpop.f32.mrb[141].mxu0  ;;  %v5253_v51 = vmul.f32 1.442695, %v5208_v18  ;;  %v5207_v12 = vsub.f32 %v9528_v21, %v9537_v45 }
 0x6b9   :  { %8075 = vpow2.f32 %v5237_v43  ;;  %v5209_v2 = vsub.f32 %v9533_v31, %v9537_v45  ;;  %v9559_v0 = vpop.f32.mrb[142].mxu0  ;;  %v5257_v1 = vmul.f32 1.442695, %v5210_v14  ;;  %v5227_v53 = vmul.f32 1.442695, %v5195_v32 }
 0x6ba   :  { %8077 = vpow2.f32 %v5241_v8  ;;  %v5231_v29 = vmul.f32 1.442695, %v5197_v20  ;;  %v5235_v10 = vmul.f32 1.442695, %v5199_v11  ;;  %v5239_v28 = vmul.f32 1.442695, %v5201_v41 }
 0x6bb   :  { %8079 = vpow2.f32 %v5245_v30  ;;  %v5180_v43 = vsel %vm108_vm1, %v9545_v54, -inf  ;;  %v9563_v38 = vpop.f32.mrb[143].mxu0  ;;  %v5165_v21 = vsel %vm108_vm1, %v9553_v6, -inf  ;;  %v5181_v31 = vsel %vm108_vm1, %v9559_v0, -inf }
 0x6bc   :  { %8081 = vpow2.f32 %v5249_v46  ;;  %v5166_v45 = vsel %vm108_vm1, %v9563_v38, -inf  ;;  %v5182_v63 = vmax.f32 %v5180_v43, %v5181_v31  ;;  %v5243_v18 = vmul.f32 1.442695, %v5203_v50 }
 0x6bd   :  { %8083 = vpow2.f32 %v5253_v51  ;;  %v9571_v32 = vpop.f32.mrb[144].mxu0  ;;  %v5167_v37 = vmax.f32 %v5165_v21, %v5166_v45  ;;  %v5247_v46 = vmul.f32 1.442695, %v5205_v27 }
 0x6be   :  { %8085 = vpow2.f32 %v5257_v1  ;;  %v5183_v57 = vsel %vm108_vm1, %v9571_v32, -inf  ;;  %v9575_v56 = vpop.f32.mrb[145].mxu0  ;;  %v5251_v1 = vmul.f32 1.442695, %v5207_v12  ;;  %v5255_v12 = vmul.f32 1.442695, %v5209_v2 }
 0x6bf   :  { %8087 = vpow2.f32 %v5227_v53  ;;  %v5168_v35 = vsel %vm108_vm1, %v9575_v56, -inf  ;;  %v5184_v14 = vmax.f32 %v5182_v63, %v5183_v57 }
 0x6c0   :  { %8089 = vpow2.f32 %v5231_v29  ;;  %v5169_v58 = vmax.f32 %v5167_v37, %v5168_v35 }
 0x6c1   :  { %v9579_v25 = vpop.eup %8071  ;;  %8091 = vpow2.f32 %v5235_v10  ;;  %v9581_v8 = vpop.f32.mrb[146].mxu0 }
 0x6c2   :  { %v9583_v20 = vpop.eup %8073  ;;  %v5306_v30 = vsel %vm108_vm1, %v9579_v25, 0.0  ;;  %8093 = vpow2.f32 %v5239_v28  ;;  %v5185_v11 = vsel %vm108_vm1, %v9581_v8, -inf  ;;  %v9589_v41 = vpop.f32.mrb[147].mxu0 }
 0x6c3   :  { %v9591_v50 = vpop.eup %8075  ;;  %v5307_v51 = vsel %vm108_vm1, %v9583_v20, 0.0  ;;  %v5186_v53 = vmax.f32 %v5184_v14, %v5185_v11  ;;  %v5170_v29 = vsel %vm108_vm1, %v9589_v41, -inf  ;;  %8095 = vpow2.f32 %v5243_v18 }
 0x6c4   :  { %v9597_v10 = vpop.eup %8077  ;;  %v5308_v43 = vadd.f32 %v5307_v51, %v5306_v30  ;;  %v5171_v27 = vmax.f32 %v5169_v58, %v5170_v29  ;;  %v5309_v21 = vsel %vm108_vm1, %v9591_v50, 0.0  ;;  %8097 = vpow2.f32 %v5247_v46 }
 0x6c5   :  { %v9599_v28 = vpop.eup %8079  ;;  %v9603_v31 = vpop.f32.mrb[148].mxu0  ;;  %v5311_v18 = vsel %vm108_vm1, %v9597_v10, 0.0  ;;  %8099 = vpow2.f32 %v5251_v1 }
 0x6c6   :  { %v9605_v45 = vpop.eup %8081  ;;  %v5310_v63 = vadd.f32 %v5309_v21, %v5308_v43  ;;  %v5187_v37 = vsel %vm108_vm1, %v9603_v31, -inf  ;;  %v9609_v57 = vpop.f32.mrb[149].mxu0  ;;  %v5313_v51 = vsel %vm108_vm1, %v9599_v28, 0.0  ;;  %8101 = vpow2.f32 %v5255_v12 }
 0x6c7   :  { %v9611_v35 = vpop.eup %8083  ;;  %v5188_v14 = vmax.f32 %v5186_v53, %v5187_v37  ;;  %v5172_v58 = vsel %vm108_vm1, %v9609_v57, -inf }
 0x6c8   :  { %v9617_v30 = vpop.eup %8085  ;;  %v5312_v11 = vadd.f32 %v5311_v18, %v5310_v63  ;;  %v5173_v46 = vmax.f32 %v5171_v27, %v5172_v58  ;;  %v5315_v63 = vsel %vm108_vm1, %v9605_v45, 0.0  ;;  %v5317_v36 = vsel %vm108_vm1, %v9611_v35, 0.0 }
 0x6c9   :  { %v9619_v2 = vpop.eup %8087  ;;  %v9623_v29 = vpop.f32.mrb[150].mxu0 }
 0x6ca   :  { %v9625_v43 = vpop.eup %8089  ;;  %v5314_v21 = vadd.f32 %v5313_v51, %v5312_v11  ;;  %v5291_v1 = vsel %vm108_vm1, %v9619_v2, 0.0  ;;  %v5189_v53 = vsel %vm108_vm1, %v9623_v29, -inf  ;;  %v9631_v37 = vpop.f32.mrb[151].mxu0 }
 0x6cb   :  { %v9633_v27 = vpop.eup %8091  ;;  %v5292_v18 = vsel %vm108_vm1, %v9625_v43, 0.0  ;;  %v5190_v58 = vmax.f32 %v5188_v14, %v5189_v53  ;;  %v5174_v12 = vsel %vm108_vm1, %v9631_v37, -inf }
 0x6cc   :  { %v9641_v11 = vpop.eup %8093  ;;  %v5316_v51 = vadd.f32 %v5315_v63, %v5314_v21  ;;  %v5293_v7 = vadd.f32 %v5292_v18, %v5291_v1  ;;  %v5175_v5 = vmax.f32 %v5173_v46, %v5174_v12  ;;  %v5294_v40 = vsel %vm108_vm1, %v9633_v27, 0.0 }
 0x6cd   :  { %v7591_v16 = vpop.f32.mrb[152].mxu0  ;;  %v9647_v22 = vpop.eup %8095  ;;  %v5319_v21 = vsel %vm108_vm1, %v9617_v30, 0.0  ;;  %v5296_v46 = vsel %vm108_vm1, %v9641_v11, 0.0 }
 0x6ce   :  { %v5318_v13 = vadd.f32 %v5317_v36, %v5316_v51  ;;  %v5295_v9 = vadd.f32 %v5294_v40, %v5293_v7  ;;  %v5191_v14 = vsel %vm108_vm1, %v7591_v16, -inf  ;;  %v9650_v53 = vpop.f32.mrb[153].mxu0  ;;  %v9658_v18 = vpop.eup %8097  ;;  %v5298_v7 = vsel %vm108_vm1, %v9647_v22, 0.0 }
 0x6cf   :  { %v5192_v1 = vmax.f32 %v5190_v58, %v5191_v14  ;;  %v5176_v63 = vsel %vm108_vm1, %v9650_v53, -inf  ;;  %v9660_v40 = vpop.eup %8099  ;;  %v5300_v58 = vsel %vm108_vm1, %v9658_v18, 0.0 }
 0x6d0   :  { %v5320_v12 = vadd.f32 %v5319_v21, %v5318_v13  ;;  %v5297_v34 = vadd.f32 %v5296_v46, %v5295_v9  ;;  %v5177_v36 = vmax.f32 %v5175_v5, %v5176_v63  ;;  %v9671_v13 = vpop.eup %8101  ;;  %v5302_v21 = vsel %vm108_vm1, %v9660_v40, 0.0 }
 0x6d1   :  { %v7594_v51 = vpop.f32.mrb[154].mxu0 }
 0x6d2   :  { %8103 = vrcp.f32 %v5320_v12  ;;  %v5299_v59 = vadd.f32 %v5298_v7, %v5297_v34  ;;  %v5193_v60 = vsel %vm108_vm1, %v7594_v51, -inf  ;;  %v9665_v3 = vpop.f32.mrb[155].mxu0 }
 0x6d3   :  { %v5194_v14 = vmax.f32 %v5192_v1, %v5193_v60  ;;  %v5178_v9 = vsel %vm108_vm1, %v9665_v3, -inf }
 0x6d4   :  { %v5301_v5 = vadd.f32 %v5300_v58, %v5299_v59  ;;  %v9675_v46 = vmax.f32 %v5177_v36, %v5178_v9  ;;  %v5304_v59 = vsel %vm108_vm1, %v9671_v13, 0.0 }
 0x6d5   :  { %v5212_v34 = vsub.f32 %v9545_v54, %v5194_v14  ;;  %v5214_v63 = vsub.f32 %v9559_v0, %v5194_v14  ;;  %v5216_v12 = vsub.f32 %v9571_v32, %v5194_v14  ;;  %v5218_v7 = vsub.f32 %v9581_v8, %v5194_v14 }
 0x6d6   :  { %v5303_v60 = vadd.f32 %v5302_v21, %v5301_v5  ;;  %v5220_v1 = vsub.f32 %v9603_v31, %v5194_v14  ;;  %v5222_v19 = vsub.f32 %v9623_v29, %v5194_v14  ;;  %v5224_v26 = vsub.f32 %v7591_v16, %v5194_v14 }
 0x6d7   :  { %v5226_v58 = vsub.f32 %v7594_v51, %v5194_v14  ;;  %v5261_v36 = vmul.f32 1.442695, %v5212_v34  ;;  %v5265_v9 = vmul.f32 1.442695, %v5214_v63  ;;  %v5269_v54 = vmul.f32 1.442695, %v5216_v12 }
 0x6d8   :  { %v5305_v62 = vadd.f32 %v5304_v59, %v5303_v60  ;;  %v5273_v47 = vmul.f32 1.442695, %v5218_v7  ;;  %v5277_v0 = vmul.f32 1.442695, %v5220_v1  ;;  %v5281_v32 = vmul.f32 1.442695, %v5222_v19 }
 0x6d9   :  { %8105 = vpow2.f32 %v5261_v36  ;;  %v5211_v8 = vsub.f32 %v9553_v6, %v9675_v46  ;;  %v5213_v31 = vsub.f32 %v9563_v38, %v9675_v46  ;;  %v5215_v16 = vsub.f32 %v9575_v56, %v9675_v46 }
 0x6da   :  { %8107 = vrcp.f32 %v5305_v62  ;;  %v5217_v29 = vsub.f32 %v9589_v41, %v9675_v46  ;;  %v5219_v51 = vsub.f32 %v9609_v57, %v9675_v46  ;;  %v5221_v19 = vsub.f32 %v9631_v37, %v9675_v46 }
 0x6db   :  { %8109 = vpow2.f32 %v5265_v9  ;;  %v5223_v6 = vsub.f32 %v9650_v53, %v9675_v46  ;;  %v5285_v14 = vmul.f32 1.442695, %v5224_v26  ;;  %v5225_v38 = vsub.f32 %v9665_v3, %v9675_v46 }
 0x6dc   :  { %v8104_v62 = vpop.eup %8103  ;;  %8111 = vpow2.f32 %v5269_v54  ;;  %v5289_v56 = vmul.f32 1.442695, %v5226_v58  ;;  %v5259_v41 = vmul.f32 1.442695, %v5211_v8  ;;  %v5263_v5 = vmul.f32 1.442695, %v5213_v31 }
 0x6dd   :  { %8113 = vpow2.f32 %v5273_v47  ;;  %v5267_v21 = vmul.f32 1.442695, %v5215_v16  ;;  %v5356_v57 = vmul.f32 %v8104_v62, %v9579_v25  ;;  %v5358_v37 = vmul.f32 %v8104_v62, %v9583_v20 }
 0x6de   :  { %8115 = vpow2.f32 %v5277_v0  ;;  %v9704_v34 = vmul.f32 %v8104_v62, %v9591_v50  ;;  %v9707_v26 = vmul.f32 %v8104_v62, %v9597_v10  ;;  %v9710_v3 = vmul.f32 %v8104_v62, %v9599_v28 }
 0x6df   :  { %8117 = vpow2.f32 %v5281_v32  ;;  %v9713_v47 = vmul.f32 %v8104_v62, %v9605_v45  ;;  %v5271_v53 = vmul.f32 1.442695, %v5217_v29  ;;  %v9716_v46 = vmul.f32 %v8104_v62, %v9611_v35 }
 0x6e0   :  { %8119 = vpow2.f32 %v5285_v14  ;;  %v9719_v25 = vmul.f32 %v8104_v62, %v9617_v30  ;;  %v5275_v50 = vmul.f32 1.442695, %v5219_v51  ;;  %v5279_v45 = vmul.f32 1.442695, %v5221_v19 }
 0x6e1   :  { %8121 = vpow2.f32 %v5289_v56  ;;  %v5283_v9 = vmul.f32 1.442695, %v5223_v6  ;;  %v5287_v32 = vmul.f32 1.442695, %v5225_v38 }
 0x6e2   :  { %8123 = vpow2.f32 %v5259_v41 }
 0x6e3   :  { %v9721_v20 = vpop.eup %8105  ;;  %8125 = vpow2.f32 %v5263_v5 }
 0x6e4   :  { %v8108_v10 = vpop.eup %8107  ;;  %v5336_v28 = vsel %vm108_vm1, %v9721_v20, 0.0  ;;  %8127 = vpow2.f32 %v5267_v21 }
 0x6e5   :  { %v9725_v63 = vpop.eup %8109  ;;  %8129 = vpow2.f32 %v5271_v53  ;;  %v5355_v35 = vmul.f32 %v8108_v10, %v9619_v2  ;;  %v5357_v12 = vmul.f32 %v8108_v10, %v9625_v43  ;;  %v5359_v30 = vmul.f32 %v8108_v10, %v9633_v27 }
 0x6e6   :  { %v9730_v7 = vpop.eup %8111  ;;  %v5337_v60 = vsel %vm108_vm1, %v9725_v63, 0.0  ;;  %v5361_v1 = vmul.f32 %v8108_v10, %v9641_v11  ;;  %v5363_v59 = vmul.f32 %v8108_v10, %v9647_v22  ;;  %8131 = vpow2.f32 %v5275_v50 }
 0x6e7   :  { %v9736_v58 = vpop.eup %8113  ;;  %v5338_v36 = vadd.f32 %v5337_v60, %v5336_v28  ;;  %7597 = vmatprep.mubr.msk.f32.mxu1 %vm108_vm1, %v5355_v35  ;;  %v5365_v2 = vmul.f32 %v8108_v10, %v9658_v18  ;;  %v5339_v27 = vsel %vm108_vm1, %v9730_v7, 0.0  ;;  %v5367_v11 = vmul.f32 %v8108_v10, %v9660_v40 }
 0x6e8   :  { %v9740_v43 = vpop.eup %8115  ;;  %7598 = vmatmul.mubr.msk.f32.vlgmr.msra.gmra.mrb[104].mxu1 %vm108_vm1, %v5356_v57  ;;  %v5369_v22 = vmul.f32 %v8108_v10, %v9671_v13  ;;  %8133 = vpow2.f32 %v5279_v45  ;;  %v5341_v18 = vsel %vm108_vm1, %v9736_v58, 0.0 }
 0x6e9   :  { %v8118_v54 = vpop.eup %8117  ;;  %v5340_v0 = vadd.f32 %v5339_v27, %v5338_v36  ;;  %7600 = vmatprep.mubr.msk.f32.mxu1 %vm108_vm1, %v5357_v12  ;;  %8135 = vpow2.f32 %v5283_v9  ;;  %v5343_v51 = vsel %vm108_vm1, %v9740_v43, 0.0 }
 0x6ea   :  { %v8120_v8 = vpop.eup %8119  ;;  %8137 = vpow2.f32 %v5287_v32  ;;  %v5345_v62 = vsel %vm108_vm1, %v8118_v54, 0.0 }
 0x6eb   :  { %v8122_v31 = vpop.eup %8121  ;;  %v5342_v16 = vadd.f32 %v5341_v18, %v5340_v0  ;;  %v5347_v5 = vsel %vm108_vm1, %v8120_v8, 0.0 }
 0x6ec   :  { %v8124_v29 = vpop.eup %8123  ;;  %7601 = vmatmul.mubr.msk.f32.gmra.mrb[106].mxu1 %vm108_vm1, %v5358_v37  ;;  %v5349_v50 = vsel %vm108_vm1, %v8122_v31, 0.0 }
 0x6ed   :  { %v8126_v40 = vpop.eup %8125  ;;  %v5344_v13 = vadd.f32 %v5343_v51, %v5342_v16  ;;  %v5321_v19 = vsel %vm108_vm1, %v8124_v29, 0.0  ;;  %7603 = vmatprep.mubr.msk.f32.mxu1 %vm108_vm1, %v5359_v30 }
 0x6ee   :  { %v8128_v6 = vpop.eup %8127  ;;  %v5322_v14 = vsel %vm108_vm1, %v8126_v40, 0.0 }
 0x6ef   :  { %v8130_v38 = vpop.eup %8129  ;;  %v5346_v56 = vadd.f32 %v5345_v62, %v5344_v13  ;;  %v5323_v41 = vadd.f32 %v5322_v14, %v5321_v19  ;;  %v5324_v21 = vsel %vm108_vm1, %v8128_v6, 0.0 }
 0x6f0   :  { %7604 = vmatmul.mubr.msk.f32.gmra.mrb[108].mxu1 %vm108_vm1, %v9704_v34  ;;  %v8132_v57 = vpop.eup %8131  ;;  %v5326_v10 = vsel %vm108_vm1, %v8130_v38, 0.0 }
 0x6f1   :  { %v5348_v37 = vadd.f32 %v5347_v5, %v5346_v56  ;;  %v5325_v53 = vadd.f32 %v5324_v21, %v5323_v41  ;;  %7606 = vmatprep.mubr.msk.f32.mxu1 %vm108_vm1, %v5361_v1  ;;  %v5328_v12 = vsel %vm108_vm1, %v8132_v57, 0.0 }
 0x6f2   :  { %v8134_v28 = vpop.eup %8133 }
 0x6f3   :  { %v5350_v45 = vadd.f32 %v5349_v50, %v5348_v37  ;;  %v5327_v35 = vadd.f32 %v5326_v10, %v5325_v53  ;;  %v8136_v30 = vpop.eup %8135  ;;  %v5330_v60 = vsel %vm108_vm1, %v8134_v28, 0.0 }
 0x6f4   :  { %7607 = vmatmul.mubr.msk.f32.gmra.mrb[110].mxu1 %vm108_vm1, %v9707_v26  ;;  %v8138_v1 = vpop.eup %8137  ;;  %v5332_v9 = vsel %vm108_vm1, %v8136_v30, 0.0 }
 0x6f5   :  { %8139 = vrcp.f32 %v5350_v45  ;;  %v5329_v34 = vadd.f32 %v5328_v12, %v5327_v35  ;;  %7609 = vmatprep.mubr.msk.f32.mxu1 %vm108_vm1, %v5363_v59  ;;  %v5334_v0 = vsel %vm108_vm1, %v8138_v1, 0.0 }
 0x6f7   :  { %v5331_v36 = vadd.f32 %v5330_v60, %v5329_v34 }
 0x6f8   :  { %7610 = vmatmul.mubr.msk.f32.gmra.mrb[112].mxu1 %vm108_vm1, %v9710_v3 }
 0x6f9   :  { %v5333_v27 = vadd.f32 %v5332_v9, %v5331_v36  ;;  %7612 = vmatprep.mubr.msk.f32.mxu1 %vm108_vm1, %v5365_v2 }
 0x6fb   :  { %v5335_v26 = vadd.f32 %v5334_v0, %v5333_v27 }
 0x6fc   :  { %7613 = vmatmul.mubr.msk.f32.gmra.mrb[114].mxu1 %vm108_vm1, %v9713_v47 }
 0x6fd   :  { %8141 = vrcp.f32 %v5335_v26  ;;  %7615 = vmatprep.mubr.msk.f32.mxu1 %vm108_vm1, %v5367_v11 }
 0x6ff   :  { %v8140_v59 = vpop.eup %8139 }
 0x700   :  { %7616 = vmatmul.mubr.msk.f32.gmra.mrb[116].mxu1 %vm108_vm1, %v9716_v46  ;;  %v5372_v32 = vmul.f32 %v8140_v59, %v9721_v20  ;;  %v5374_v3 = vmul.f32 %v8140_v59, %v9725_v63  ;;  %v5376_v18 = vmul.f32 %v8140_v59, %v9730_v7  ;;  %v5378_v2 = vmul.f32 %v8140_v59, %v9736_v58  ;;  %v5804_v58 = vld [vmem:[%s10004_s13 + $0x8] sm:$0xff] }
 0x701   :  { %7618 = vmatprep.mubr.msk.f32.mxu1 %vm108_vm1, %v5369_v22  ;;  %v5380_v16 = vmul.f32 %v8140_v59, %v9740_v43  ;;  %v5382_v47 = vmul.f32 %v8140_v59, %v8118_v54  ;;  %v5384_v51 = vmul.f32 %v8140_v59, %v8120_v8  ;;  %v5386_v13 = vmul.f32 %v8140_v59, %v8122_v31  ;;  %v5805_v22 = vld [vmem:[%s10004_s13 + $0x10] sm:$0xff]  ;;  %v5806_v54 = vld [vmem:[%s10004_s13 + $0x18] sm:$0xff]  ;;  %v5911_v31 = vld [vmem:[%s10005_s15] sm:$0xff] }
 0x702   :  { %v7913_v8 = vpack.c.bf16 %v5806_v54, %v5805_v22 }
 0x704   :  { %7619 = vmatmul.mubr.msk.f32.gmra.mrb[118].mxu1 %vm108_vm1, %v9719_v25  ;;  %v5803_v25 = vld [vmem:[%s10004_s13] sm:$0xff] }
 0x705   :  { %v7909_v43 = vpack.c.bf16 %v5804_v58, %v5803_v25 }
 0x707   :  { %v8142_v11 = vpop.eup %8141  ;;  %7910 = vmatprep.subr.bf16.mxu0 %v7909_v43 }
 0x708   :  { %v5371_v46 = vmul.f32 %v8142_v11, %v8124_v29  ;;  %v5373_v19 = vmul.f32 %v8142_v11, %v8126_v40  ;;  %v5375_v20 = vmul.f32 %v8142_v11, %v8128_v6  ;;  %v5377_v62 = vmul.f32 %v8142_v11, %v8130_v38  ;;  %7912 = vmatpush3.bf16.msra.mxu0 %v7909_v43  ;;  %v5912_v29 = vld [vmem:[%s10005_s15 + $0x8] sm:$0xff]  ;;  %v9824_v6 = vld [vmem:[%s10006_s12] ss:$0 sm:$0xff] }
 0x709   :  { %v5379_v63 = vmul.f32 %v8142_v11, %v8132_v57  ;;  %v5381_v14 = vmul.f32 %v8142_v11, %v8134_v28  ;;  %v5383_v7 = vmul.f32 %v8142_v11, %v8136_v30  ;;  %v5385_v56 = vmul.f32 %v8142_v11, %v8138_v1  ;;  %7914 = vmatprep.subr.bf16.mxu0 %v7913_v8 }
 0x70a   :  { %7621 = vmatprep.mubr.msk.f32.mxu1 %vm108_vm1, %v5371_v46  ;;  %v7917_v40 = vpack.c.bf16 %v5912_v29, %v5911_v31  ;;  %v4591_v38 = vadd.f32 %v9374_v23, %v9824_v6  ;;  %v4586_v41 = vadd.f32 %v9824_v6, %v9379_v24  ;;  %v4601_v53 = vadd.f32 %v9387_v48, %v9824_v6 }
 0x70b   :  { %7622 = vmatmul.mubr.msk.f32.gmra.mrb[120].mxu1 %vm108_vm1, %v5372_v32  ;;  %v4596_v50 = vadd.f32 %v9824_v6, %v9390_v49  ;;  %v4611_v23 = vadd.f32 %v9397_v33, %v9824_v6  ;;  %v4606_v30 = vadd.f32 %v9824_v6, %v9400_v55  ;;  %v4621_v33 = vadd.f32 %v9407_v39, %v9824_v6 }
 0x70c   :  { %7624 = vmatprep.mubr.msk.f32.mxu1 %vm108_vm1, %v5373_v19  ;;  %7916 = vmatpush3.bf16.msra.mxu0 %v7913_v8  ;;  %v4616_v26 = vadd.f32 %v9824_v6, %v9410_v17  ;;  %v4626_v39 = vadd.f32 %v9824_v6, %v9420_v42  ;;  %v4651_v54 = vadd.f32 %v9437_v52, %v9824_v6 }
 0x70d   :  { %7918 = vmatprep.subr.bf16.mxu1 %v7917_v40 }
 0x70e   :  { %7920 = vmatpush3.bf16.msra.mxu1 %v7917_v40 }
 0x70f   :  { %7625 = vmatmul.mubr.msk.f32.gmra.mrb[122].mxu1 %vm108_vm1, %v5374_v3 }
 0x710   :  { %7627 = vmatprep.mubr.msk.f32.mxu1 %vm108_vm1, %v5375_v20 }
 0x713   :  { %7628 = vmatmul.mubr.msk.f32.gmra.mrb[124].mxu1 %vm108_vm1, %v5376_v18 }
 0x714   :  { %7630 = vmatprep.mubr.msk.f32.mxu1 %vm108_vm1, %v5377_v62 }
 0x717   :  { %7631 = vmatmul.mubr.msk.f32.gmra.mrb[126].mxu1 %vm108_vm1, %v5378_v2 }
 0x718   :  { %7633 = vmatprep.mubr.msk.f32.mxu1 %vm108_vm1, %v5379_v63  ;;  %v4641_v63 = vadd.f32 %v9427_v61, %v9824_v6  ;;  %v4646_v61 = vadd.f32 %v9824_v6, %v9440_v4 }
 0x71b   :  { %7634 = vmatmul.mubr.msk.f32.gmra.mrb[128].mxu1 %vm108_vm1, %v5380_v16 }
 0x71c   :  { %7636 = vmatprep.mubr.msk.f32.mxu1 %vm108_vm1, %v5381_v14 }
 0x71f   :  { %7637 = vmatmul.mubr.msk.f32.gmra.mrb[130].mxu1 %vm108_vm1, %v5382_v47  ;;  %v4631_v47 = vadd.f32 %v9417_v15, %v9824_v6  ;;  %v4636_v15 = vadd.f32 %v9824_v6, %v9430_v44 }
 0x720   :  { %7639 = vmatprep.mubr.msk.f32.mxu1 %vm108_vm1, %v5383_v7 }
 0x723   :  { %7640 = vmatmul.mubr.msk.f32.gmra.mrb[132].mxu1 %vm108_vm1, %v5384_v51 }
 0x724   :  { %7642 = vmatprep.mubr.msk.f32.mxu1 %vm108_vm1, %v5385_v56 }
 0x727   :  { %7643 = vmatmul.mubr.msk.f32.gmra.mrb[134].mxu1 %vm108_vm1, %v5386_v13 }
 0x7bb   :  { %v7599_v5 = vpop.f32.mrb[104].mxu1 }
 0x7bc   :  { %v5712_v21 = vmul.f32 %v7599_v5, %v4591_v38  ;;  %v5552_v57 = vpop.f32.mrb[105].mxu1 }
 0x7bd   :  { %v5711_v37 = vmul.f32 %v5552_v57, %v4586_v41 }
 0x7be   :  { %v5758_v12 = vsel %vm445_vm2, %v5712_v21, 0.0  ;;  %v10049_v21 = vld [vmem:[#allocation2_spill] sm:$0xff] }
 0x7bf   :  { %v7602_v10 = vpop.f32.mrb[106].mxu1  ;;  %v5743_v34 = vsel %vm445_vm2, %v5711_v37, 0.0  ;;  %v4661_v57 = vadd.f32 %v10049_v21, %v9824_v6 }
 0x7c0   :  { %v5714_v28 = vmul.f32 %v7602_v10, %v4601_v53  ;;  %v5562_v45 = vpop.f32.mrb[107].mxu1  ;;  %v10050_v53 = vld [vmem:[#allocation3_spill] sm:$0xff] }
 0x7c1   :  { %v5713_v35 = vmul.f32 %v5562_v45, %v4596_v50  ;;  %v4656_v52 = vadd.f32 %v9824_v6, %v10050_v53 }
 0x7c2   :  { %v5759_v24 = vsel %vm445_vm2, %v5714_v28, 0.0 }
 0x7c3   :  { %v5760_v48 = vadd.f32 %v5759_v24, %v5758_v12  ;;  %v5744_v60 = vsel %vm445_vm2, %v5713_v35, 0.0  ;;  %v7605_v49 = vpop.f32.mrb[108].mxu1 }
 0x7c4   :  { %v5745_v1 = vadd.f32 %v5744_v60, %v5743_v34  ;;  %v5716_v36 = vmul.f32 %v7605_v49, %v4611_v23  ;;  %v5572_v9 = vpop.f32.mrb[109].mxu1  ;;  %v10052_v49 = vld [vmem:[#allocation5_spill] sm:$0xff] }
 0x7c5   :  { %v5715_v27 = vmul.f32 %v5572_v9, %v4606_v30 }
 0x7c6   :  { %v5761_v0 = vsel %vm445_vm2, %v5716_v36, 0.0 }
 0x7c7   :  { %v5762_v59 = vadd.f32 %v5761_v0, %v5760_v48  ;;  %v5746_v55 = vsel %vm445_vm2, %v5715_v27, 0.0  ;;  %v7608_v32 = vpop.f32.mrb[110].mxu1  ;;  %v10051_v48 = vld [vmem:[#allocation4_spill] sm:$0xff]  ;;  %v10053_v0 = vld [vmem:[#allocation6_spill] sm:$0xff] }
 0x7c8   :  { %v5747_v3 = vadd.f32 %v5746_v55, %v5745_v1  ;;  %v5718_v18 = vmul.f32 %v7608_v32, %v4621_v33  ;;  %v5582_v2 = vpop.f32.mrb[111].mxu1  ;;  %v4671_v60 = vadd.f32 %v10051_v48, %v9824_v6  ;;  %v4666_v1 = vadd.f32 %v9824_v6, %v10052_v49 }
 0x7c9   :  { %v5717_v16 = vmul.f32 %v5582_v2, %v4616_v26  ;;  %v4681_v26 = vadd.f32 %v10053_v0, %v9824_v6 }
 0x7ca   :  { %v5763_v51 = vsel %vm445_vm2, %v5718_v18, 0.0 }
 0x7cb   :  { %v5764_v13 = vadd.f32 %v5763_v51, %v5762_v59  ;;  %v5748_v11 = vsel %vm445_vm2, %v5717_v16, 0.0  ;;  %v7611_v17 = vpop.f32.mrb[112].mxu1  ;;  %v10054_v59 = vld [vmem:[#allocation7_spill] sm:$0xff]  ;;  %v10055_v16 = vld [vmem:[#allocation8_spill] sm:$0xff] }
 0x7cc   :  { %v5749_v46 = vadd.f32 %v5748_v11, %v5747_v3  ;;  %v5720_v19 = vmul.f32 %v7611_v17, %v4631_v47  ;;  %v5592_v20 = vpop.f32.mrb[113].mxu1  ;;  %v4676_v55 = vadd.f32 %v9824_v6, %v10054_v59  ;;  %v4691_v47 = vadd.f32 %v10055_v16, %v9824_v6 }
 0x7cd   :  { %v5719_v62 = vmul.f32 %v5592_v20, %v4626_v39 }
 0x7ce   :  { %v5765_v14 = vsel %vm445_vm2, %v5720_v19, 0.0 }
 0x7cf   :  { %v5766_v7 = vadd.f32 %v5765_v14, %v5764_v13  ;;  %v5750_v56 = vsel %vm445_vm2, %v5719_v62, 0.0  ;;  %v7614_v42 = vpop.f32.mrb[114].mxu1  ;;  %v10056_v13 = vld [vmem:[#allocation9_spill] sm:$0xff] }
 0x7d0   :  { %v5751_v25 = vadd.f32 %v5750_v56, %v5749_v46  ;;  %v5722_v58 = vmul.f32 %v7614_v42, %v4641_v63  ;;  %v5602_v43 = vpop.f32.mrb[115].mxu1  ;;  %v4686_v11 = vadd.f32 %v9824_v6, %v10056_v13 }
 0x7d1   :  { %v5721_v22 = vmul.f32 %v5602_v43, %v4636_v15 }
 0x7d2   :  { %v5767_v8 = vsel %vm445_vm2, %v5722_v58, 0.0 }
 0x7d3   :  { %v5768_v31 = vadd.f32 %v5767_v8, %v5766_v7  ;;  %v5752_v29 = vsel %vm445_vm2, %v5721_v22, 0.0  ;;  %v7617_v44 = vpop.f32.mrb[116].mxu1  ;;  %v10057_v7 = vld [vmem:[#allocation10_spill] sm:$0xff] }
 0x7d4   :  { %v5753_v40 = vadd.f32 %v5752_v29, %v5751_v25  ;;  %v5724_v38 = vmul.f32 %v7617_v44, %v4651_v54  ;;  %v5612_v41 = vpop.f32.mrb[117].mxu1  ;;  %v4701_v56 = vadd.f32 %v10057_v7, %v9824_v6  ;;  %v10058_v25 = vld [vmem:[#allocation11_spill] sm:$0xff]  ;;  %v10059_v44 = vld [vmem:[#allocation12_spill] sm:$0xff] }
 0x7d5   :  { %v5723_v5 = vmul.f32 %v5612_v41, %v4646_v61  ;;  %v4696_v58 = vadd.f32 %v9824_v6, %v10058_v25  ;;  %v10060_v41 = vld [vmem:[#allocation13_spill] sm:$0xff]  ;;  %v6023_v25 = vld [vmem:[%s10007_s17] sm:$0xff] }
 0x7d6   :  { %v5769_v37 = vsel %vm445_vm2, %v5724_v38, 0.0 }
 0x7d7   :  { %v5770_v50 = vadd.f32 %v5769_v37, %v5768_v31  ;;  %v5754_v10 = vsel %vm445_vm2, %v5723_v5, 0.0  ;;  %v7620_v4 = vpop.f32.mrb[118].mxu1  ;;  %v4706_v5 = vadd.f32 %v9824_v6, %v10060_v41  ;;  %v6025_v41 = vld [vmem:[%s10007_s17 + $0x10] sm:$0xff] }
 0x7d8   :  { %v5755_v28 = vadd.f32 %v5754_v10, %v5753_v40  ;;  %v5726_v45 = vmul.f32 %v7620_v4, %v4661_v57  ;;  %v5622_v35 = vpop.f32.mrb[119].mxu1  ;;  %v4711_v40 = vadd.f32 %v10059_v44, %v9824_v6  ;;  %v10061_v4 = vld [vmem:[#allocation14_spill] sm:$0xff] }
 0x7d9   :  { %v5725_v23 = vmul.f32 %v5622_v35, %v4656_v52  ;;  %v10062_v35 = vld [vmem:[#allocation15_spill] sm:$0xff] }
 0x7da   :  { %v5771_v12 = vsel %vm445_vm2, %v5726_v45, 0.0 }
 0x7db   :  { %v5772_v24 = vadd.f32 %v5771_v12, %v5770_v50  ;;  %v5756_v30 = vsel %vm445_vm2, %v5725_v23, 0.0  ;;  %v4716_v23 = vadd.f32 %v9824_v6, %v10062_v35 }
 0x7dc   :  { %v5757_v34 = vadd.f32 %v5756_v30, %v5755_v28  ;;  %v4721_v28 = vadd.f32 %v10061_v4, %v9824_v6 }
 0x7de   :  { %v7623_v36 = vpop.f32.mrb[120].mxu1  ;;  %7653 = vmatprep.mubr.msk.f32.mxu0 %vm445_vm2, %v5757_v34 }
 0x7df   :  { %v5728_v9 = vmul.f32 %v7623_v36, %v4671_v60  ;;  %v5632_v27 = vpop.f32.mrb[121].mxu1  ;;  %7654 = vmatmul.mubr.msk.f32.vlgmr.msra.gmra.mrb[156].mxu0 %vm445_vm2, %v5772_v24 }
 0x7e0   :  { %v5727_v33 = vmul.f32 %v5632_v27, %v4666_v1  ;;  %v10063_v1 = vld [vmem:[#allocation16_spill] sm:$0xff]  ;;  %v10064_v27 = vld [vmem:[#allocation17_spill] sm:$0xff] }
 0x7e1   :  { %v5788_v51 = vsel %vm445_vm2, %v5728_v9, 0.0  ;;  %v4731_v36 = vadd.f32 %v10063_v1, %v9824_v6 }
 0x7e2   :  { %v7626_v32 = vpop.f32.mrb[122].mxu1  ;;  %v5773_v17 = vsel %vm445_vm2, %v5727_v33, 0.0  ;;  %v4726_v33 = vadd.f32 %v9824_v6, %v10064_v27 }
 0x7e3   :  { %v5730_v3 = vmul.f32 %v7626_v32, %v4681_v26  ;;  %v5642_v18 = vpop.f32.mrb[123].mxu1 }
 0x7e4   :  { %v5729_v2 = vmul.f32 %v5642_v18, %v4676_v55 }
 0x7e5   :  { %v5789_v39 = vsel %vm445_vm2, %v5730_v3, 0.0 }
 0x7e6   :  { %v5790_v46 = vadd.f32 %v5789_v39, %v5788_v51  ;;  %v5774_v19 = vsel %vm445_vm2, %v5729_v2, 0.0  ;;  %v7629_v20 = vpop.f32.mrb[124].mxu1  ;;  %v10065_v2 = vld [vmem:[#allocation18_spill] sm:$0xff]  ;;  %v10066_v51 = vld [vmem:[#allocation19_spill] sm:$0xff] }
 0x7e7   :  { %v5775_v62 = vadd.f32 %v5774_v19, %v5773_v17  ;;  %v5732_v63 = vmul.f32 %v7629_v20, %v4691_v47  ;;  %v5652_v14 = vpop.f32.mrb[125].mxu1  ;;  %v4741_v16 = vadd.f32 %v10065_v2, %v9824_v6  ;;  %v4736_v39 = vadd.f32 %v9824_v6, %v10066_v51  ;;  %v5913_v6 = vld [vmem:[%s10005_s15 + $0x10] sm:$0xff] }
 0x7e8   :  { %v5731_v15 = vmul.f32 %v5652_v14, %v4686_v11 }
 0x7e9   :  { %v5791_v42 = vsel %vm445_vm2, %v5732_v63, 0.0 }
 0x7ea   :  { %v5792_v43 = vadd.f32 %v5791_v42, %v5790_v46  ;;  %v5776_v22 = vsel %vm445_vm2, %v5731_v15, 0.0  ;;  %v7632_v54 = vpop.f32.mrb[126].mxu1 }
 0x7eb   :  { %v5777_v8 = vadd.f32 %v5776_v22, %v5775_v62  ;;  %v5734_v61 = vmul.f32 %v7632_v54, %v4701_v56  ;;  %v5662_v31 = vpop.f32.mrb[127].mxu1  ;;  %v5914_v56 = vld [vmem:[%s10005_s15 + $0x18] sm:$0xff]  ;;  %v6593_v22 = vld [vmem:[%s10008_s14] ss:$0 sm:$0xff] }
 0x7ec   :  { %v5733_v29 = vmul.f32 %v5662_v31, %v4696_v58  ;;  %v7921_v42 = vpack.c.bf16 %v5914_v56, %v5913_v6  ;;  %v6024_v58 = vld [vmem:[%s10007_s17 + $0x8] sm:$0xff] }
 0x7ed   :  { %v5793_v38 = vsel %vm445_vm2, %v5734_v61, 0.0 }
 0x7ee   :  { %v5794_v21 = vadd.f32 %v5793_v38, %v5792_v43  ;;  %v5778_v57 = vsel %vm445_vm2, %v5733_v29, 0.0  ;;  %v7635_v37 = vpop.f32.mrb[128].mxu1  ;;  %7922 = vmatprep.subr.bf16.mxu1 %v7921_v42  ;;  %v7925_v43 = vpack.c.bf16 %v6024_v58, %v6023_v25 }
 0x7ef   :  { %v5779_v53 = vadd.f32 %v5778_v57, %v5777_v8  ;;  %v5736_v52 = vmul.f32 %v7635_v37, %v4711_v40  ;;  %v5672_v50 = vpop.f32.mrb[129].mxu1  ;;  %7924 = vmatpush3.bf16.msra.mxu1 %v7921_v42  ;;  %v6135_v57 = vld [vmem:[%s10009_s19] sm:$0xff]  ;;  %v6136_v37 = vld [vmem:[%s10009_s19 + $0x8] sm:$0xff] }
 0x7f0   :  { %v5735_v10 = vmul.f32 %v5672_v50, %v4706_v5  ;;  %7926 = vmatprep.subr.bf16.mxu0 %v7925_v43  ;;  %v6026_v5 = vld [vmem:[%s10007_s17 + $0x18] sm:$0xff] }
 0x7f1   :  { %v5795_v45 = vsel %vm445_vm2, %v5736_v52, 0.0  ;;  %7928 = vmatpush3.bf16.msra.mxu0 %v7925_v43  ;;  %v6598_v52 = vld [vmem:[%s10010_s16] ss:$0 sm:$0xff] }
 0x7f2   :  { %v5796_v12 = vadd.f32 %v5795_v45, %v5794_v21  ;;  %v5780_v24 = vsel %vm445_vm2, %v5735_v10, 0.0  ;;  %v7638_v30 = vpop.f32.mrb[130].mxu1  ;;  %v7929_v21 = vpack.c.bf16 %v6026_v5, %v6025_v41 }
 0x7f3   :  { %v5781_v34 = vadd.f32 %v5780_v24, %v5779_v53  ;;  %v5738_v48 = vmul.f32 %v7638_v30, %v4721_v28  ;;  %v5682_v60 = vpop.f32.mrb[131].mxu1  ;;  %v7933_v53 = vpack.c.bf16 %v6136_v37, %v6135_v57 }
 0x7f4   :  { %v5737_v49 = vmul.f32 %v5682_v60, %v4716_v23  ;;  %7930 = vmatprep.subr.bf16.mxu0 %v7929_v21  ;;  %v6137_v60 = vld [vmem:[%s10009_s19 + $0x10] sm:$0xff] }
 0x7f5   :  { %v5797_v9 = vsel %vm445_vm2, %v5738_v48, 0.0  ;;  %7932 = vmatpush3.bf16.msra.mxu0 %v7929_v21  ;;  %7934 = vmatprep.subr.bf16.mxu1 %v7933_v53 }
 0x7f6   :  { %v5798_v0 = vadd.f32 %v5797_v9, %v5796_v12  ;;  %v5782_v26 = vsel %vm445_vm2, %v5737_v49, 0.0  ;;  %v7641_v59 = vpop.f32.mrb[132].mxu1  ;;  %v6138_v49 = vld [vmem:[%s10009_s19 + $0x18] sm:$0xff] }
 0x7f7   :  { %v5783_v55 = vadd.f32 %v5782_v26, %v5781_v34  ;;  %v5740_v32 = vmul.f32 %v7641_v59, %v4731_v36  ;;  %v5692_v3 = vpop.f32.mrb[133].mxu1  ;;  %v7937_v1 = vpack.c.bf16 %v6138_v49, %v6137_v60  ;;  %v6603_v36 = vld [vmem:[%s10011_s18] ss:$0 sm:$0xff] }
 0x7f8   :  { %v5739_v18 = vmul.f32 %v5692_v3, %v4726_v33 }
 0x7f9   :  { %v5799_v47 = vsel %vm445_vm2, %v5740_v32, 0.0 }
 0x7fa   :  { %v5800_v13 = vadd.f32 %v5799_v47, %v5798_v0  ;;  %v5784_v11 = vsel %vm445_vm2, %v5739_v18, 0.0  ;;  %v7644_v17 = vpop.f32.mrb[134].mxu1  ;;  %v6608_v47 = vld [vmem:[%s10012_s20] ss:$0 sm:$0xff] }
 0x7fb   :  { %v5785_v46 = vadd.f32 %v5784_v11, %v5783_v55  ;;  %v5742_v19 = vmul.f32 %v7644_v17, %v4741_v16  ;;  %v5702_v20 = vpop.f32.mrb[135].mxu1 }
 0x7fc   :  { %v5741_v62 = vmul.f32 %v5702_v20, %v4736_v39 }
 0x7fd   :  { %v5801_v63 = vsel %vm445_vm2, %v5742_v19, 0.0 }
 0x7fe   :  { %v5802_v14 = vadd.f32 %v5801_v63, %v5800_v13  ;;  %v5786_v15 = vsel %vm445_vm2, %v5741_v62, 0.0 }
 0x7ff   :  { %v5787_v7 = vadd.f32 %v5786_v15, %v5785_v46 }
 0x801   :  { %7656 = vmatprep.mubr.msk.f32.mxu0 %vm445_vm2, %v5787_v7 }
 0x802   :  { %7657 = vmatmul.mubr.msk.f32.gmra.mrb[158].mxu0 %vm445_vm2, %v5802_v14 }
 0x8b2   :  { %v7655_v54 = vpop.f32.mrb[156].mxu0 }
 0x8b3   :  { %v5892_v8 = vpop.f32.mrb[157].mxu0  ;;  %v5898_v31 = vadd.f32 %v7655_v54, %v6593_v22 }
 0x8b4   :  { %v5893_v61 = vadd.f32 %v6593_v22, %v5892_v8 }
 0x8b6   :  { %7667 = vmatprep.mubr.msk.f32.mxu1 %vm445_vm2, %v5893_v61 }
 0x8b7   :  { %7668 = vmatmul.mubr.msk.f32.vlgmr.msra.gmra.mrb[136].mxu1 %vm445_vm2, %v5898_v31 }
 0x8b8   :  { %7936 = vmatpush3.bf16.msra.mxu1 %v7933_v53 }
 0x8b9   :  { %7938 = vmatprep.subr.bf16.mxu1 %v7937_v1 }
 0x8bc   :  { %7940 = vmatpush3.bf16.msra.mxu1 %v7937_v1 }
 0x8d5   :  { %v7658_v29 = vpop.f32.mrb[158].mxu0 }
 0x8d6   :  { %v5902_v44 = vpop.f32.mrb[159].mxu0  ;;  %v5908_v38 = vadd.f32 %v7658_v29, %v6593_v22 }
 0x8d7   :  { %v5903_v40 = vadd.f32 %v6593_v22, %v5902_v44 }
 0x8d9   :  { %7670 = vmatprep.mubr.msk.f32.mxu1 %vm445_vm2, %v5903_v40 }
 0x8da   :  { %7671 = vmatmul.mubr.msk.f32.gmra.mrb[138].mxu1 %vm445_vm2, %v5908_v38 }
 0x98a   :  { %v7669_v50 = vpop.f32.mrb[136].mxu1 }
 0x98b   :  { %v6006_v10 = vadd.f32 %v7669_v50, %v6598_v52  ;;  %v6000_v4 = vpop.f32.mrb[137].mxu1 }
 0x98c   :  { %v6001_v28 = vadd.f32 %v6598_v52, %v6000_v4 }
 0x98d   :  { %v6020_v35 = vmax.f32 %v6006_v10, 0.0 }
 0x98e   :  { %v6019_v45 = vmax.f32 %v6001_v28, 0.0 }
 0x990   :  { %7681 = vmatprep.mubr.msk.f32.mxu0 %vm445_vm2, %v6019_v45 }
 0x991   :  { %7682 = vmatmul.mubr.msk.f32.vlgmr.msra.gmra.mrb[160].mxu0 %vm445_vm2, %v6020_v35 }
 0x9ad   :  { %v7672_v23 = vpop.f32.mrb[138].mxu1 }
 0x9ae   :  { %v6016_v12 = vadd.f32 %v7672_v23, %v6598_v52  ;;  %v6010_v24 = vpop.f32.mrb[139].mxu1 }
 0x9af   :  { %v6011_v30 = vadd.f32 %v6598_v52, %v6010_v24 }
 0x9b0   :  { %v6022_v48 = vmax.f32 %v6016_v12, 0.0 }
 0x9b1   :  { %v6021_v34 = vmax.f32 %v6011_v30, 0.0 }
 0x9b3   :  { %7684 = vmatprep.mubr.msk.f32.mxu0 %vm445_vm2, %v6021_v34 }
 0x9b4   :  { %7685 = vmatmul.mubr.msk.f32.gmra.mrb[162].mxu0 %vm445_vm2, %v6022_v48 }
 0xa64   :  { %v7683_v9 = vpop.f32.mrb[160].mxu0 }
 0xa65   :  { %v6118_v27 = vadd.f32 %v7683_v9, %v6603_v36  ;;  %v6112_v33 = vpop.f32.mrb[161].mxu0 }
 0xa66   :  { %v6113_v0 = vadd.f32 %v6603_v36, %v6112_v33 }
 0xa67   :  { %v6132_v59 = vmax.f32 %v6118_v27, 0.0 }
 0xa68   :  { %v6131_v26 = vmax.f32 %v6113_v0, 0.0 }
 0xa6a   :  { %7695 = vmatprep.mubr.msk.f32.mxu1 %vm445_vm2, %v6131_v26 }
 0xa6b   :  { %7696 = vmatmul.mubr.msk.f32.vlgmr.msra.gmra.mrb[140].mxu1 %vm445_vm2, %v6132_v59 }
 0xa87   :  { %v7686_v55 = vpop.f32.mrb[162].mxu0 }
 0xa88   :  { %v6128_v32 = vadd.f32 %v7686_v55, %v6603_v36  ;;  %v6122_v3 = vpop.f32.mrb[163].mxu0 }
 0xa89   :  { %v6123_v18 = vadd.f32 %v6603_v36, %v6122_v3 }
 0xa8a   :  { %v6134_v16 = vmax.f32 %v6128_v32, 0.0 }
 0xa8b   :  { %v6133_v2 = vmax.f32 %v6123_v18, 0.0 }
 0xa8d   :  { %7698 = vmatprep.mubr.msk.f32.mxu1 %vm445_vm2, %v6133_v2 }
 0xa8e   :  { %7699 = vmatmul.mubr.msk.f32.gmra.mrb[142].mxu1 %vm445_vm2, %v6134_v16 }
 0xb3e   :  { %v7697_v51 = vpop.f32.mrb[140].mxu1 }
 0xb3f   :  { %v6230_v39 = vadd.f32 %v7697_v51, %v6608_v47  ;;  %v6224_v13 = vpop.f32.mrb[141].mxu1 }
 0xb40   :  { %v6225_v11 = vadd.f32 %v6608_v47, %v6224_v13 }
 0xb41   :  { %6245 = vst.msk [vmem:[%s10013_s21 + $0x8] sm:$0xff] %vm6243_vm0, %v6230_v39 }
 0xb42   :  { %6244 = vst.msk [vmem:[%s10013_s21] sm:$0xff] %vm6243_vm0, %v6225_v11 }
 0xb61   :  { %v7700_v17 = vpop.f32.mrb[142].mxu1 }
 0xb62   :  { %v6240_v46 = vadd.f32 %v7700_v17, %v6608_v47  ;;  %v6234_v19 = vpop.f32.mrb[143].mxu1 }
 0xb63   :  { %v6235_v20 = vadd.f32 %v6608_v47, %v6234_v19 }
 0xb64   :  { %6247 = vst.msk [vmem:[%s10013_s21 + $0x18] sm:$0xff] %vm6243_vm0, %v6240_v46 }
 0xb65   :  { %6246 = vst.msk [vmem:[%s10013_s21 + $0x10] sm:$0xff] %vm6243_vm0, %v6235_v20 }

</bundles_post_ra>
